<compile_context>
chip_gen: v5e
topology: v5e:2x2
jax: 0.10.0
libtpu: 0.0.40
codegen_flags: <defaults>
</compile_context>

<pallas_src>
import functools

import numpy as np
import jax
import jax.numpy as jnp
from jax.experimental import pallas as pl
from jax.experimental.pallas import tpu as pltpu


def _round_up(x, m):
    return ((x + m - 1) // m) * m


def _pick_tm(M, cap=2048):
    """Largest multiple-of-8 divisor of M that is <= cap (avoids padded ragged tiles)."""
    if M <= cap:
        return M
    for tm in range(cap - cap % 8, 7, -8):
        if M % tm == 0:
            return tm
    return 512  # fallback (padding path); never hit for the shapes in this model


# ----------------------------------------------------------------------------
# Stem: im2col (XLA) + fused matmul/BN/ReLU6 (Pallas)
# ----------------------------------------------------------------------------

def _stem_kernel(x_ref, w_ref, s_ref, b_ref, o_ref):
    y = jnp.dot(x_ref[...], w_ref[...], preferred_element_type=jnp.float32)
    y = jnp.clip(y * s_ref[...] + b_ref[...], 0.0, 6.0)
    o_ref[...] = y.astype(o_ref.dtype)


@jax.jit
def stem_forward(x_nchw, w, s, b):
    x = jnp.transpose(x_nchw, (0, 2, 3, 1)).astype(jnp.bfloat16)        # NCHW -> NHWC bf16
    B, H, W, _ = x.shape
    Ho, Wo = H // 2, W // 2
    xp = jnp.pad(x, ((0, 0), (1, 1), (1, 1), (0, 0)))
    patches = jnp.concatenate(
        [xp[:, di:di + 2 * Ho:2, dj:dj + 2 * Wo:2, :] for di in range(3) for dj in range(3)],
        axis=-1).reshape(B * Ho * Wo, 27)
    M = B * Ho * Wo
    TM = _pick_tm(M)
    Mp = ((M + TM - 1) // TM) * TM
    pin = patches if Mp == M else jnp.pad(patches, ((0, Mp - M), (0, 0)))
    out = pl.pallas_call(
        _stem_kernel,
        out_shape=jax.ShapeDtypeStruct((Mp, 32), jnp.bfloat16),
        grid_spec=pltpu.PrefetchScalarGridSpec(
            num_scalar_prefetch=0,
            grid=(Mp // TM,),
            in_specs=[pl.BlockSpec((TM, 27), lambda i: (i, 0)),
                      pl.BlockSpec((27, 32), lambda i: (0, 0)),
                      pl.BlockSpec((1, 32), lambda i: (0, 0)),
                      pl.BlockSpec((1, 32), lambda i: (0, 0))],
            out_specs=pl.BlockSpec((TM, 32), lambda i: (i, 0)),
        ),
        compiler_params=pltpu.CompilerParams(
            dimension_semantics=("parallel",),
            vmem_limit_bytes=32 * 1024 * 1024,
        ),
    )(pin, w, s, b)
    if Mp != M:
        out = out[:M]
    return out.reshape(B, Ho * Wo, 32)


# ----------------------------------------------------------------------------
# Fused inverted-residual block, stride 1
#   expand 1x1 + BN + ReLU6  ->  3x3 depthwise + BN + ReLU6  ->  project 1x1 + BN [+ residual]
#   Whole image per grid step; hidden kept f32 in a flat zero-padded VMEM buffer (row pitch W).
# ----------------------------------------------------------------------------

def _ir_s1_kernel(*refs, W, P, n_chunks, has_expand, has_residual):
    if has_expand:
        (x_ref, ew_ref, es_ref, eb_ref, dw_ref, ds_ref, db_ref,
         pw_ref, ps_ref, pb_ref, o_ref, hbuf_ref) = refs
    else:
        (x_ref, dw_ref, ds_ref, db_ref, pw_ref, ps_ref, pb_ref,
         o_ref, hbuf_ref) = refs
        ew_ref = es_ref = eb_ref = None
    HW = x_ref.shape[1]
    hid = hbuf_ref.shape[1]

    if has_expand:
        h = jnp.dot(x_ref[0], ew_ref[...], preferred_element_type=jnp.float32)
        h = jnp.clip(h * es_ref[...] + eb_ref[...], 0.0, 6.0)
    else:
        h = x_ref[0].astype(jnp.float32)
    # zero halo rows (top/bottom) + hidden activation; buffer is (2P + HW, hid), data at [P, P+HW)
    hbuf_ref[0:P, :] = jnp.zeros((P, hid), jnp.float32)
    hbuf_ref[P + HW:2 * P + HW, :] = jnp.zeros((P, hid), jnp.float32)
    hbuf_ref[P:P + HW, :] = h

    w = dw_ref[...]              # (9, hid) f32, row k = 3*di + dj
    ds = ds_ref[...]
    db = db_ref[...]
    pw = pw_ref[...]
    ps = ps_ref[...]
    pb = pb_ref[...]

    rows = HW // n_chunks        # n_chunks divides H -> chunk base is a multiple of W
    col = jax.lax.broadcasted_iota(jnp.int32, (rows, 1), 0) % W
    m_l = (col != 0).astype(jnp.float32)        # left-neighbour taps invalid at w == 0
    m_r = (col != W - 1).astype(jnp.float32)    # right-neighbour taps invalid at w == W-1

    for ci in range(n_chunks):
        base = ci * rows

        def tap(off, _b=base):
            s0 = P + _b + off
            return hbuf_ref[s0:s0 + rows, :]

        acc_c = tap(-W) * w[1:2] + tap(0) * w[4:5] + tap(W) * w[7:8]
        acc_l = tap(-W - 1) * w[0:1] + tap(-1) * w[3:4] + tap(W - 1) * w[6:7]
        acc_r = tap(-W + 1) * w[2:3] + tap(1) * w[5:6] + tap(W + 1) * w[8:9]
        acc = acc_c + acc_l * m_l + acc_r * m_r
        y = jnp.clip(acc * ds + db, 0.0, 6.0).astype(jnp.bfloat16)
        out = jnp.dot(y, pw, preferred_element_type=jnp.float32) * ps + pb
        if has_residual:
            out = out + x_ref[0, base:base + rows, :].astype(jnp.float32)
        o_ref[0, base:base + rows, :] = out.astype(o_ref.dtype)


@functools.partial(jax.jit, static_argnames=("W", "has_expand", "has_residual"))
def fused_block_s1(x, ew, es, eb, dw, ds, db, pw, ps, pb, *, W, has_expand, has_residual):
    B, HW, Cin = x.shape
    hid = dw.shape[1]
    Cout = pw.shape[1]
    H = HW // W
    P = _round_up(W + 1, 8)
    n_chunks = 4 if (HW >= 8192 and H % 4 == 0) else 1    # keeps 112x112 block under VMEM

    inputs = [x]
    in_specs = [pl.BlockSpec((1, HW, Cin), lambda b: (b, 0, 0))]
    if has_expand:
        inputs += [ew, es, eb]
        in_specs += [pl.BlockSpec(ew.shape, lambda b: (0, 0)),
                     pl.BlockSpec(es.shape, lambda b: (0, 0)),
                     pl.BlockSpec(eb.shape, lambda b: (0, 0))]
    inputs += [dw, ds, db, pw, ps, pb]
    in_specs += [pl.BlockSpec(a.shape, lambda b: (0, 0)) for a in (dw, ds, db, pw, ps, pb)]

    kernel = functools.partial(_ir_s1_kernel, W=W, P=P, n_chunks=n_chunks,
                               has_expand=has_expand, has_residual=has_residual)
    return pl.pallas_call(
        kernel,
        out_shape=jax.ShapeDtypeStruct((B, HW, Cout), jnp.bfloat16),
        grid_spec=pltpu.PrefetchScalarGridSpec(
            num_scalar_prefetch=0,
            grid=(B,),
            in_specs=in_specs,
            out_specs=pl.BlockSpec((1, HW, Cout), lambda b: (b, 0, 0)),
            scratch_shapes=[pltpu.VMEM((2 * P + HW, hid), jnp.float32)],
        ),
        compiler_params=pltpu.CompilerParams(
            dimension_semantics=("parallel",),
            vmem_limit_bytes=48 * 1024 * 1024,
        ),
    )(*inputs)


# ----------------------------------------------------------------------------
# Fused inverted-residual block, stride 2 (polyphase: expand the 4 input phases in-kernel,
# depthwise computed directly at output resolution with unit-stride taps, then project).
# ----------------------------------------------------------------------------

def _ir_s2_kernel(*refs, Wo, P, has_expand):
    if has_expand:
        (xee_ref, xeo_ref, xoe_ref, xoo_ref, ew_ref, es_ref, eb_ref,
         dw_ref, ds_ref, db_ref, pw_ref, ps_ref, pb_ref,
         o_ref, oo_buf, oe_buf, eo_buf) = refs
    else:
        (xee_ref, xeo_ref, xoe_ref, xoo_ref, dw_ref, ds_ref, db_ref,
         pw_ref, ps_ref, pb_ref, o_ref, oo_buf, oe_buf, eo_buf) = refs
        ew_ref = es_ref = eb_ref = None
    HWo = xee_ref.shape[1]
    hid = oo_buf.shape[1]

    def expand(ref):
        xv = ref[0]
        if has_expand:
            hv = jnp.dot(xv, ew_ref[...], preferred_element_type=jnp.float32)
            return jnp.clip(hv * es_ref[...] + eb_ref[...], 0.0, 6.0)
        return xv.astype(jnp.float32)

    # padded phase buffers (P zero rows on top; only non-positive shifts are ever needed)
    for buf, ref in ((oo_buf, xoo_ref), (oe_buf, xoe_ref), (eo_buf, xeo_ref)):
        buf[0:P, :] = jnp.zeros((P, hid), jnp.float32)
        buf[P:P + HWo, :] = expand(ref)
    ee = expand(xee_ref)

    def tap(buf, off):
        return buf[P + off:P + off + HWo, :]

    w = dw_ref[...]              # (9, hid) f32, row k = 3*di + dj
    col = jax.lax.broadcasted_iota(jnp.int32, (HWo, 1), 0) % Wo
    m0 = (col != 0).astype(jnp.float32)          # j-1 taps invalid at j == 0
    acc = (ee * w[4:5]
           + tap(oe_buf, -Wo) * w[1:2] + tap(oo_buf, -Wo) * w[2:3]
           + tap(eo_buf, 0) * w[5:6] + tap(oe_buf, 0) * w[7:8] + tap(oo_buf, 0) * w[8:9])
    acc_m = (tap(oo_buf, -Wo - 1) * w[0:1] + tap(eo_buf, -1) * w[3:4]
             + tap(oo_buf, -1) * w[6:7])
    acc = acc + acc_m * m0
    y = jnp.clip(acc * ds_ref[...] + db_ref[...], 0.0, 6.0).astype(jnp.bfloat16)
    out = jnp.dot(y, pw_ref[...], preferred_element_type=jnp.float32) * ps_ref[...] + pb_ref[...]
    o_ref[0] = out.astype(o_ref.dtype)


@functools.partial(jax.jit, static_argnames=("H", "W", "has_expand"))
def fused_block_s2(x, ew, es, eb, dw, ds, db, pw, ps, pb, *, H, W, has_expand):
    B, HW, Cin = x.shape
    hid = dw.shape[1]
    Cout = pw.shape[1]
    Ho, Wo = H // 2, W // 2
    HWo = Ho * Wo
    P = _round_up(Wo + 1, 8)

    # phase split of the NARROW pre-expansion input (cheap XLA strided slices)
    x4 = x.reshape(B, H, W, Cin)
    phases = [x4[:, 0::2, 0::2, :], x4[:, 0::2, 1::2, :],
              x4[:, 1::2, 0::2, :], x4[:, 1::2, 1::2, :]]          # ee, eo, oe, oo
    phases = [ph.reshape(B, HWo, Cin) for ph in phases]

    inputs = list(phases)
    phase_spec = pl.BlockSpec((1, HWo, Cin), lambda b: (b, 0, 0))
    in_specs = [phase_spec] * 4
    if has_expand:
        inputs += [ew, es, eb]
        in_specs += [pl.BlockSpec(ew.shape, lambda b: (0, 0)),
                     pl.BlockSpec(es.shape, lambda b: (0, 0)),
                     pl.BlockSpec(eb.shape, lambda b: (0, 0))]
    inputs += [dw, ds, db, pw, ps, pb]
    in_specs += [pl.BlockSpec(a.shape, lambda b: (0, 0)) for a in (dw, ds, db, pw, ps, pb)]

    kernel = functools.partial(_ir_s2_kernel, Wo=Wo, P=P, has_expand=has_expand)
    return pl.pallas_call(
        kernel,
        out_shape=jax.ShapeDtypeStruct((B, HWo, Cout), jnp.bfloat16),
        grid_spec=pltpu.PrefetchScalarGridSpec(
            num_scalar_prefetch=0,
            grid=(B,),
            in_specs=in_specs,
            out_specs=pl.BlockSpec((1, HWo, Cout), lambda b: (b, 0, 0)),
            scratch_shapes=[pltpu.VMEM((P + HWo, hid), jnp.float32) for _ in range(3)],
        ),
        compiler_params=pltpu.CompilerParams(
            dimension_semantics=("parallel",),
            vmem_limit_bytes=32 * 1024 * 1024,
        ),
    )(*inputs)


# ----------------------------------------------------------------------------
# Decoder head (everything before the 224x224 upsample) + bilinear upsample / sigmoid
# ----------------------------------------------------------------------------

def _decoder_core_kernel(x_ref, w1_ref, s_ref, b_ref, w2a_ref, w2b_ref, w3_ref, o_ref):
    x = x_ref[0]                                                       # (49, 320) bf16
    s = s_ref[...]
    b = b_ref[...]
    # seq2: conv2d1 (1x1, 320->256) -> shared BN -> ReLU
    h2 = jnp.maximum(jnp.dot(x, w1_ref[...], preferred_element_type=jnp.float32) * s + b, 0.0)
    # seq1: AvgPool(7,7) -> conv2d1 -> shared BN -> ReLU -> Resize 1x1->7x7 (== broadcast)
    xm = jnp.mean(x.astype(jnp.float32), axis=0, keepdims=True).astype(jnp.bfloat16)
    h1 = jnp.maximum(jnp.dot(xm, w1_ref[...], preferred_element_type=jnp.float32) * s + b, 0.0)
    # seq3: conv2d2 on concat([s1, s2], ch) -> shared BN -> ReLU -> Dropout(id) -> conv2d3
    z = (jnp.dot(h1.astype(jnp.bfloat16), w2a_ref[...], preferred_element_type=jnp.float32)
         + jnp.dot(h2.astype(jnp.bfloat16), w2b_ref[...], preferred_element_type=jnp.float32))
    h3 = jnp.maximum(z * s + b, 0.0)
    o_ref[0] = jnp.dot(h3.astype(jnp.bfloat16), w3_ref[...], preferred_element_type=jnp.float32)


def _resize_sigmoid_kernel(l_ref, rh_ref, rwT_ref, o_ref):
    """Separable bilinear 7x7 -> 224x224 (align_corners=False) as matmuls, then sigmoid.
    The column pass is batched over all classes; the row pass loops (small) classes."""
    C = o_ref.shape[1]
    a = jnp.dot(l_ref[0], rwT_ref[...], preferred_element_type=jnp.float32)   # (C*7, 224)
    for c in range(C):
        y = jnp.dot(rh_ref[...], a[c * 7:(c + 1) * 7, :],
                    preferred_element_type=jnp.float32)                       # (224, 224)
        o_ref[0, c] = 1.0 / (1.0 + jnp.exp(-y))


@jax.jit
def decoder_forward(feat, dp):
    """feat: (B, 49, 320) bf16 -> (B, classes, 224, 224) f32."""
    B = feat.shape[0]
    C = dp["w3"].shape[1]
    logits = pl.pallas_call(
        _decoder_core_kernel,
        out_shape=jax.ShapeDtypeStruct((B, 49, C), jnp.float32),
        grid_spec=pltpu.PrefetchScalarGridSpec(
            num_scalar_prefetch=0,
            grid=(B,),
            in_specs=[pl.BlockSpec((1, 49, 320), lambda b: (b, 0, 0)),
                      pl.BlockSpec((320, 256), lambda b: (0, 0)),
                      pl.BlockSpec((1, 256), lambda b: (0, 0)),
                      pl.BlockSpec((1, 256), lambda b: (0, 0)),
                      pl.BlockSpec((256, 256), lambda b: (0, 0)),
                      pl.BlockSpec((256, 256), lambda b: (0, 0)),
                      pl.BlockSpec((256, C), lambda b: (0, 0))],
            out_specs=pl.BlockSpec((1, 49, C), lambda b: (b, 0, 0)),
        ),
        compiler_params=pltpu.CompilerParams(dimension_semantics=("parallel",)),
    )(feat, dp["w1"], dp["s1"], dp["b1"], dp["w2a"], dp["w2b"], dp["w3"])

    # tiny XLA transpose: (B,49,C) -> (B, C*7, 7) so the upsample kernel is a clean matmul
    l_r = jnp.transpose(logits.reshape(B, 7, 7, C), (0, 3, 1, 2)).reshape(B, C * 7, 7)
    HO = dp["rh"].shape[0]
    WO = dp["rwT"].shape[1]
    return pl.pallas_call(
        _resize_sigmoid_kernel,
        out_shape=jax.ShapeDtypeStruct((B, C, HO, WO), jnp.float32),
        grid_spec=pltpu.PrefetchScalarGridSpec(
            num_scalar_prefetch=0,
            grid=(B,),
            in_specs=[pl.BlockSpec((1, C * 7, 7), lambda b: (b, 0, 0)),
                      pl.BlockSpec((HO, 7), lambda b: (0, 0)),
                      pl.BlockSpec((7, WO), lambda b: (0, 0))],
            out_specs=pl.BlockSpec((1, C, HO, WO), lambda b: (b, 0, 0, 0)),
        ),
        compiler_params=pltpu.CompilerParams(dimension_semantics=("parallel",)),
    )(l_r, dp["rh"], dp["rwT"])


# ----------------------------------------------------------------------------
# Parameters (deterministic synthetic init) and model glue
# ----------------------------------------------------------------------------

_CFG = [  # MobileNetV2 inverted-residual settings: (expand t, out c, repeats n, first stride s)
    (1, 16, 1, 1),
    (6, 24, 2, 2),
    (6, 32, 3, 2),
    (6, 64, 4, 2),
    (6, 96, 3, 1),
    (6, 160, 3, 2),
    (6, 320, 1, 1),
]

_ROOT_KEY = jax.random.PRNGKey(0)
_PARAM_IDX = [0]


def _rand(shape, scale=1.0):
    k = jax.random.fold_in(_ROOT_KEY, _PARAM_IDX[0])
    _PARAM_IDX[0] += 1
    return scale * jax.random.normal(k, shape, jnp.float32)


def _bn(c, shape):
    """Eval-mode BatchNorm folded into (scale, bias)."""
    gamma = 1.0 + 0.1 * _rand((c,))
    beta = 0.1 * _rand((c,))
    mean = 0.1 * _rand((c,))
    var = 1.0 + 0.1 * jnp.abs(_rand((c,)))
    s = gamma * jax.lax.rsqrt(var + 1e-5)
    b = beta - mean * s
    return s.reshape(shape), b.reshape(shape)


def _bilinear_matrix(out_size, in_size):
    """Interpolation matrix (out,in) for bilinear resize, align_corners=False (PyTorch semantics)."""
    scale = in_size / out_size
    dst = np.arange(out_size, dtype=np.float64)
    src = np.maximum((dst + 0.5) * scale - 0.5, 0.0)
    i0 = np.minimum(np.floor(src).astype(np.int64), in_size - 1)
    i1 = np.minimum(i0 + 1, in_size - 1)
    lam = src - i0
    M = np.zeros((out_size, in_size), np.float32)
    M[np.arange(out_size), i0] += (1.0 - lam).astype(np.float32)
    M[np.arange(out_size), i1] += lam.astype(np.float32)
    return M


def init_encoder_params():
    p = {"stem_w": _rand((27, 32), float(np.sqrt(2.0 / 27))).astype(jnp.bfloat16)}
    p["stem_s"], p["stem_b"] = _bn(32, (1, 32))
    blocks = []
    in_c = 32
    for t, c, n, s in _CFG:
        for i in range(n):
            stride = s if i == 0 else 1
            hidden = in_c * t
            blk = {"stride": stride, "expand": (t != 1),
                   "residual": (stride == 1 and in_c == c)}
            if t != 1:
                blk["ew"] = _rand((in_c, hidden), float(np.sqrt(2.0 / in_c))).astype(jnp.bfloat16)
                blk["es"], blk["eb"] = _bn(hidden, (1, hidden))
            blk["dw"] = _rand((9, hidden), float(np.sqrt(2.0 / 9)))      # (9, C): row k = 3*di + dj
            blk["ds"], blk["db"] = _bn(hidden, (1, hidden))
            blk["pw"] = _rand((hidden, c), float(np.sqrt(2.0 / hidden))).astype(jnp.bfloat16)
            blk["ps"], blk["pb"] = _bn(c, (1, c))
            blocks.append(blk)
            in_c = c
    p["blocks"] = blocks
    return p


def init_decoder_params(classes):
    dp = {"w1": _rand((320, 256), float(np.sqrt(2.0 / 320))).astype(jnp.bfloat16)}
    dp["s1"], dp["b1"] = _bn(256, (1, 256))          # the single shared BatchNorm2d(256)
    w2 = _rand((512, 256), float(np.sqrt(2.0 / 512)))
    dp["w2a"] = w2[:256].astype(jnp.bfloat16)        # cat order: (s1, s2) along channels
    dp["w2b"] = w2[256:].astype(jnp.bfloat16)
    dp["w3"] = _rand((256, classes), float(np.sqrt(2.0 / 256))).astype(jnp.bfloat16)
    rh = _bilinear_matrix(224, 7)
    dp["rh"] = jnp.asarray(rh)
    dp["rwT"] = jnp.asarray(rh.T)
    return dp


def encoder_forward(x_nchw, p):
    h = stem_forward(x_nchw, p["stem_w"], p["stem_s"], p["stem_b"])      # (B, 112*112, 32) bf16
    H = W = x_nchw.shape[2] // 2
    for blk in p["blocks"]:
        if blk["stride"] == 1:
            h = fused_block_s1(h, blk.get("ew"), blk.get("es"), blk.get("eb"),
                               blk["dw"], blk["ds"], blk["db"],
                               blk["pw"], blk["ps"], blk["pb"],
                               W=W, has_expand=blk["expand"], has_residual=blk["residual"])
        else:
            h = fused_block_s2(h, blk.get("ew"), blk.get("es"), blk.get("eb"),
                               blk["dw"], blk["ds"], blk["db"],
                               blk["pw"], blk["ps"], blk["pb"],
                               H=H, W=W, has_expand=blk["expand"])
            H //= 2
            W //= 2
    return h                                                             # (B, 49, 320) bf16


def mobilenet_v2_with_decoder(x_nchw, enc_params, dec_params):
    feat = encoder_forward(x_nchw, enc_params)
    return decoder_forward(feat, dec_params)


# ----------------------------------------------------------------------------
# Main
# ----------------------------------------------------------------------------

if __name__ == "__main__":
    CLASSES = 3
    enc_params = init_encoder_params()
    dec_params = init_decoder_params(CLASSES)

    # 224x224 is required: the decoder hard-codes a 7x7 bottleneck (AvgPool(7,7), Resize((7,7))).
    x = jax.random.normal(jax.random.PRNGKey(0), (2, 3, 224, 224), jnp.float32)

    out = mobilenet_v2_with_decoder(x, enc_params, dec_params)
    out = jax.block_until_ready(out)

    assert out.shape == (2, CLASSES, 224, 224), out.shape
    assert bool(jnp.all(jnp.isfinite(out)))
    assert bool(jnp.all((out >= 0.0) & (out <= 1.0)))
    print("KERNEL_OK")
</pallas_src>

<mosaic_0001>
module attributes {stable_mosaic.version = 11 : i64} {
  func.func @_stem_kernel(%arg0: i32, %arg1: memref<1792x27xbf16, #tpu.memory_space<vmem>>, %arg2: memref<27x32xbf16, #tpu.memory_space<vmem>>, %arg3: memref<1x32xf32, #tpu.memory_space<vmem>>, %arg4: memref<1x32xf32, #tpu.memory_space<vmem>>, %arg5: memref<1792x32xbf16, #tpu.memory_space<vmem>>) attributes {dimension_semantics = [#tpu.dimension_semantics<parallel>], iteration_bounds = array<i64: 14>, scalar_prefetch = 0 : i64, scratch_operands = 0 : i64, tpu.core_type = #tpu.core_type<tc>, window_params = [{transform_indices = @transform_0, window_bounds = array<i64: 1792, 27>}, {pipeline_mode = #tpu.pipeline_mode<synchronous>, transform_indices = @transform_1, window_bounds = array<i64: 27, 32>}, {pipeline_mode = #tpu.pipeline_mode<synchronous>, transform_indices = @transform_2, window_bounds = array<i64: 1, 32>}, {pipeline_mode = #tpu.pipeline_mode<synchronous>, transform_indices = @transform_3, window_bounds = array<i64: 1, 32>}, {transform_indices = @transform_4, window_bounds = array<i64: 1792, 32>}]} {
    %c0 = arith.constant 0 : index
    %c0_0 = arith.constant 0 : index
    %0 = vector.load %arg1[%c0, %c0_0] : memref<1792x27xbf16, #tpu.memory_space<vmem>>, vector<1792x27xbf16>
    %c0_1 = arith.constant 0 : index
    %c0_2 = arith.constant 0 : index
    %1 = vector.load %arg2[%c0_1, %c0_2] : memref<27x32xbf16, #tpu.memory_space<vmem>>, vector<27x32xbf16>
    %cst = arith.constant dense<0.000000e+00> : vector<1792x32xf32>
    %2 = tpu.matmul %0, %1, %cst {dimension_numbers = #tpu.dot_dimension_numbers<[1], [0], [0], [1], [0, 0, 1, 1], [], []>} : vector<1792x27xbf16>, vector<27x32xbf16>, vector<1792x32xf32> -> vector<1792x32xf32>
    %c0_3 = arith.constant 0 : index
    %c0_4 = arith.constant 0 : index
    %3 = vector.load %arg3[%c0_3, %c0_4] : memref<1x32xf32, #tpu.memory_space<vmem>>, vector<1x32xf32>
    %4 = vector.broadcast %3 : vector<1x32xf32> to vector<1792x32xf32>
    %5 = arith.mulf %2, %4 : vector<1792x32xf32>
    %c0_5 = arith.constant 0 : index
    %c0_6 = arith.constant 0 : index
    %6 = vector.load %arg4[%c0_5, %c0_6] : memref<1x32xf32, #tpu.memory_space<vmem>>, vector<1x32xf32>
    %7 = vector.broadcast %6 : vector<1x32xf32> to vector<1792x32xf32>
    %8 = arith.addf %5, %7 : vector<1792x32xf32>
    %cst_7 = arith.constant 0.000000e+00 : f32
    %cst_8 = arith.constant 6.000000e+00 : f32
    %9 = vector.broadcast %cst_7 : f32 to vector<1792x32xf32>
    %10 = arith.maximumf %9, %8 : vector<1792x32xf32>
    %11 = vector.broadcast %cst_8 : f32 to vector<1792x32xf32>
    %12 = arith.minimumf %11, %10 : vector<1792x32xf32>
    %13 = arith.truncf %12 : vector<1792x32xf32> to vector<1792x32xbf16>
    %c0_9 = arith.constant 0 : index
    %c0_10 = arith.constant 0 : index
    %14 = vector.load %arg5[%c0_9, %c0_10] : memref<1792x32xbf16, #tpu.memory_space<vmem>>, vector<1792x32xbf16>
    tpu.vector_store %arg5[%c0_9, %c0_10], %13 {strides = array<i32>} : memref<1792x32xbf16, #tpu.memory_space<vmem>>, vector<1792x32xbf16>,
    return
  }
  func.func @transform_0(%arg0: i32) -> (i32, i32) {
    %c0_i32 = arith.constant 0 : i32
    %c0_i32_0 = arith.constant 0 : i32
    return %arg0, %c0_i32 : i32, i32
  }
  func.func @transform_1(%arg0: i32) -> (i32, i32) {
    %c0_i32 = arith.constant 0 : i32
    %c0_i32_0 = arith.constant 0 : i32
    %c0_i32_1 = arith.constant 0 : i32
    return %c0_i32, %c0_i32_0 : i32, i32
  }
  func.func @transform_2(%arg0: i32) -> (i32, i32) {
    %c0_i32 = arith.constant 0 : i32
    %c0_i32_0 = arith.constant 0 : i32
    %c0_i32_1 = arith.constant 0 : i32
    return %c0_i32, %c0_i32_0 : i32, i32
  }
  func.func @transform_3(%arg0: i32) -> (i32, i32) {
    %c0_i32 = arith.constant 0 : i32
    %c0_i32_0 = arith.constant 0 : i32
    %c0_i32_1 = arith.constant 0 : i32
    return %c0_i32, %c0_i32_0 : i32, i32
  }
  func.func @transform_4(%arg0: i32) -> (i32, i32) {
    %c0_i32 = arith.constant 0 : i32
    %c0_i32_0 = arith.constant 0 : i32
    return %arg0, %c0_i32 : i32, i32
  }
}

</mosaic_0001>

<bundles_post_ra>
// kernel: stem_forward.1
= control target key start
LH: loop header
LB: loop body
LE: loop exit
PB: predicated region body
PF: predicated region fallthrough
CT: control target
= control target key end

     0   :  { %s4071_s15 = smov 0   ;;  %s5268_s0 = inlined_call_operand.vmem [shape: bf16[25088,27], index: 0, kind: input, shape index: {}]   ;;  %s5269_s1 = inlined_call_operand.vmem [shape: bf16[27,32], index: 1, kind: input, shape index: {}]   ;;  %s5270_s2 = inlined_call_operand.vmem [shape: f32[1,32], index: 2, kind: input, shape index: {}]   ;;  %s5271_s3 = inlined_call_operand.vmem [shape: f32[1,32], index: 3, kind: input, shape index: {}]   ;;  %s5272_s4 = inlined_call_operand.vmem [shape: bf16[25088,32], index: 4, kind: output, shape index: {}]  }
   0x1 LB: > { %s3323_s16 = sadd.s32 4294967295, %s4043_s15   ;;  %p3327_p0 = scmp.ge.s32.totalorder %s4043_s15, 1  ;;  %s4043_s15 = sphi %s4071_s15, %s14_s15  }
   0x2   : > { %p163_p1 = scmp.lt.s32.totalorder %s4043_s15, 15 }
   0x4   : > { %p164_p2 = pnand %p3327_p0, %p163_p1 }
   0x5   : > { %s189_s21 = smul.u32 (!%p164_p2), 224, %s3323_s16 }
   0x6   : > { %167 = sbr.rel (%p164_p2) target bundleno = 609 (0x261), region = 36 }
   0x7   : > { %p190_p3 = scmp.lt.s32.totalorder (!%p164_p2), %s189_s21, 3135 }
   0xb   : > { %v3784_v0 = vld [vmem:[%s5269_s1 + $0x8] sm:$0xf]  ;;  %v4013_v1 = vld [vmem:[%s5269_s1 + $0x8] sm:$0x30]  ;;  %vm1338_vm0 = vcmask 1044480   ;;  %vm1339_vm1 = vcmask 1045504  }
   0xc   : > { %v3785_v2 = vor.u32 %v4013_v1, %v3784_v0  ;;  %v4045_v3 = vmov 65535   ;;  %s5274_s21 = smov (!%p190_p3, %s189_s21), 3135  ;;  %v4012_v7 = vld [vmem:[%s5269_s1] sm:$0xff]  ;;  %vm1001_vm2 = vcmask 220160   ;;  %vm3042_vm3 = vcmask 257024  }
   0xd   : > { %v1340_v4 = vsel %vm1338_vm0, 4294967295, %v4045_v3  ;;  %s3328_s24 = sshll.u32 %s5274_s21, 2  ;;  %v4165_v40 = vld [vmem:[%s5270_s2] ss:$0 sm:$0xff] }
   0xe   : > { %v1341_v5 = vsel %vm1339_vm1, %v1340_v4, 0  ;;  %s4096_s27 = scalar_lea.vmem %s5268_s0, %s3328_s24  ;;  %v4170_v41 = vld [vmem:[%s5271_s3] ss:$0 sm:$0xff]  ;;  %s4189_s8 = scalar_lea.vmem %s5272_s4, %s3328_s24 }
   0xf   : > { %v1343_v6 = vand.u32 %v3785_v2, %v1341_v5  ;;  %v3900_v8 = vld [vmem:[%s4096_s27] sm:$0xff]  ;;  %v3901_v12 = vld [vmem:[%s4096_s27 + $0x8] sm:$0xff]  ;;  %v3902_v16 = vld [vmem:[%s4096_s27 + $0x10] sm:$0xff] }
  0x10   : > { %v3928_v9 = vld [vmem:[%s4096_s27 + $0xe0] sm:$0xff]  ;;  %v3929_v13 = vld [vmem:[%s4096_s27 + $0xe8] sm:$0xff]  ;;  %v3930_v17 = vld [vmem:[%s4096_s27 + $0xf0] sm:$0xff] }
  0x11   : > { %1351 = vmatpush.bf16.msra.mxu0 %v1343_v6  ;;  %4014 = vmatpush.bf16.msra.mxu1 %v1343_v6  ;;  %v3956_v10 = vld [vmem:[%s4096_s27 + $0x1c0] sm:$0xff]  ;;  %v3957_v14 = vld [vmem:[%s4096_s27 + $0x1c8] sm:$0xff]  ;;  %v3958_v18 = vld [vmem:[%s4096_s27 + $0x1d0] sm:$0xff] }
  0x12   : > { %4015 = vmatpush.bf16.msra.mxu2 %v1343_v6  ;;  %4016 = vmatpush.bf16.msra.mxu3 %v1343_v6  ;;  %v3984_v11 = vld [vmem:[%s4096_s27 + $0x2a0] sm:$0xff]  ;;  %v3985_v15 = vld [vmem:[%s4096_s27 + $0x2a8] sm:$0xff]  ;;  %v3986_v19 = vld [vmem:[%s4096_s27 + $0x2b0] sm:$0xff] }
  0x13   : > { %v3903_v20 = vld [vmem:[%s4096_s27 + $0x18] sm:$0xff]  ;;  %v3904_v24 = vld [vmem:[%s4096_s27 + $0x20] sm:$0xff]  ;;  %v3905_v28 = vld [vmem:[%s4096_s27 + $0x28] sm:$0xff] }
  0x14   : > { %v3931_v21 = vld [vmem:[%s4096_s27 + $0xf8] sm:$0xff]  ;;  %v3932_v25 = vld [vmem:[%s4096_s27 + $0x100] sm:$0xff]  ;;  %v3933_v29 = vld [vmem:[%s4096_s27 + $0x108] sm:$0xff] }
  0x15   : > { %1352 = vmatpush.bf16.msra.mxu0 %v4012_v7  ;;  %4017 = vmatpush.bf16.msra.mxu1 %v4012_v7  ;;  %v3959_v22 = vld [vmem:[%s4096_s27 + $0x1d8] sm:$0xff]  ;;  %v3960_v26 = vld [vmem:[%s4096_s27 + $0x1e0] sm:$0xff]  ;;  %v3961_v30 = vld [vmem:[%s4096_s27 + $0x1e8] sm:$0xff] }
  0x16   : > { %4018 = vmatpush.bf16.msra.mxu2 %v4012_v7  ;;  %4019 = vmatpush.bf16.msra.mxu3 %v4012_v7  ;;  %v3987_v23 = vld [vmem:[%s4096_s27 + $0x2b8] sm:$0xff]  ;;  %v3988_v27 = vld [vmem:[%s4096_s27 + $0x2c0] sm:$0xff]  ;;  %v3989_v31 = vld [vmem:[%s4096_s27 + $0x2c8] sm:$0xff] }
  0x17   : > { %v3906_v32 = vld [vmem:[%s4096_s27 + $0x30] sm:$0xff]  ;;  %v3907_v36 = vld [vmem:[%s4096_s27 + $0x38] sm:$0xff]  ;;  %v3908_v42 = vld [vmem:[%s4096_s27 + $0x40] sm:$0xff] }
  0x18   : > { %3786 = vmatmul.msk.bf16.vlgmr.msra.gmra.mxu0 %vm1001_vm2, %v3900_v8  ;;  %3814 = vmatmul.msk.bf16.vlgmr.msra.gmra.mxu1 %vm1001_vm2, %v3928_v9  ;;  %v3934_v33 = vld [vmem:[%s4096_s27 + $0x110] sm:$0xff]  ;;  %v3935_v37 = vld [vmem:[%s4096_s27 + $0x118] sm:$0xff]  ;;  %v3936_v43 = vld [vmem:[%s4096_s27 + $0x120] sm:$0xff] }
  0x19   : > { %3842 = vmatmul.msk.bf16.vlgmr.msra.gmra.mxu2 %vm1001_vm2, %v3956_v10  ;;  %3870 = vmatmul.msk.bf16.vlgmr.msra.gmra.mxu3 %vm1001_vm2, %v3984_v11  ;;  %v3962_v34 = vld [vmem:[%s4096_s27 + $0x1f0] sm:$0xff]  ;;  %v3963_v38 = vld [vmem:[%s4096_s27 + $0x1f8] sm:$0xff]  ;;  %v3964_v46 = vld [vmem:[%s4096_s27 + $0x200] sm:$0xff] }
  0x1a   : > { %v3990_v35 = vld [vmem:[%s4096_s27 + $0x2d0] sm:$0xff]  ;;  %v3991_v39 = vld [vmem:[%s4096_s27 + $0x2d8] sm:$0xff]  ;;  %v3992_v47 = vld [vmem:[%s4096_s27 + $0x2e0] sm:$0xff] }
  0x28   : > { %3787 = vmatmul.msk.bf16.gmra.mxu0 %vm1001_vm2, %v3901_v12  ;;  %3815 = vmatmul.msk.bf16.gmra.mxu1 %vm1001_vm2, %v3929_v13 }
  0x29   : > { %3843 = vmatmul.msk.bf16.gmra.mxu2 %vm1001_vm2, %v3957_v14  ;;  %3871 = vmatmul.msk.bf16.gmra.mxu3 %vm1001_vm2, %v3985_v15 }
  0x38   : > { %3788 = vmatmul.msk.bf16.gmra.mxu0 %vm1001_vm2, %v3902_v16  ;;  %3816 = vmatmul.msk.bf16.gmra.mxu1 %vm1001_vm2, %v3930_v17  ;;  %v3909_v16 = vld [vmem:[%s4096_s27 + $0x48] sm:$0xff] }
  0x39   : > { %3844 = vmatmul.msk.bf16.gmra.mxu2 %vm1001_vm2, %v3958_v18  ;;  %3872 = vmatmul.msk.bf16.gmra.mxu3 %vm1001_vm2, %v3986_v19  ;;  %v3937_v17 = vld [vmem:[%s4096_s27 + $0x128] sm:$0xff] }
  0x48   : > { %3789 = vmatmul.msk.bf16.gmra.mxu0 %vm1001_vm2, %v3903_v20  ;;  %3817 = vmatmul.msk.bf16.gmra.mxu1 %vm1001_vm2, %v3931_v21 }
  0x49   : > { %3845 = vmatmul.msk.bf16.gmra.mxu2 %vm1001_vm2, %v3959_v22  ;;  %3873 = vmatmul.msk.bf16.gmra.mxu3 %vm1001_vm2, %v3987_v23 }
  0x58   : > { %3790 = vmatmul.msk.bf16.gmra.mxu0 %vm1001_vm2, %v3904_v24  ;;  %3818 = vmatmul.msk.bf16.gmra.mxu1 %vm1001_vm2, %v3932_v25  ;;  %v3965_v24 = vld [vmem:[%s4096_s27 + $0x208] sm:$0xff] }
  0x59   : > { %3846 = vmatmul.msk.bf16.gmra.mxu2 %vm1001_vm2, %v3960_v26  ;;  %3874 = vmatmul.msk.bf16.gmra.mxu3 %vm1001_vm2, %v3988_v27  ;;  %v3993_v25 = vld [vmem:[%s4096_s27 + $0x2e8] sm:$0xff] }
  0x68   : > { %3791 = vmatmul.msk.bf16.gmra.mxu0 %vm1001_vm2, %v3905_v28  ;;  %3819 = vmatmul.msk.bf16.gmra.mxu1 %vm1001_vm2, %v3933_v29 }
  0x69   : > { %3847 = vmatmul.msk.bf16.gmra.mxu2 %vm1001_vm2, %v3961_v30  ;;  %3875 = vmatmul.msk.bf16.gmra.mxu3 %vm1001_vm2, %v3989_v31 }
  0x78   : > { %3792 = vmatmul.msk.bf16.gmra.mxu0 %vm1001_vm2, %v3906_v32  ;;  %3820 = vmatmul.msk.bf16.gmra.mxu1 %vm1001_vm2, %v3934_v33 }
  0x79   : > { %3848 = vmatmul.msk.bf16.gmra.mxu2 %vm1001_vm2, %v3962_v34  ;;  %3876 = vmatmul.msk.bf16.gmra.mxu3 %vm1001_vm2, %v3990_v35 }
  0x88   : > { %3793 = vmatmul.msk.bf16.gmra.mxu0 %vm1001_vm2, %v3907_v36  ;;  %3821 = vmatmul.msk.bf16.gmra.mxu1 %vm1001_vm2, %v3935_v37 }
  0x89   : > { %3849 = vmatmul.msk.bf16.gmra.mxu2 %vm1001_vm2, %v3963_v38  ;;  %3877 = vmatmul.msk.bf16.gmra.mxu3 %vm1001_vm2, %v3991_v39 }
  0x95   : > { %v1354_v44 = vpop.f32.mrf.mxu0  ;;  %v1494_v45 = vpop.f32.mrf.mxu1 }
  0x96   : > { %v1918_v48 = vmul.f32 %v4165_v40, %v1354_v44  ;;  %v1974_v49 = vmul.f32 %v4165_v40, %v1494_v45 }
  0x98   : > { %v2146_v50 = vadd.f32 %v4170_v41, %v1918_v48  ;;  %v2202_v51 = vadd.f32 %v4170_v41, %v1974_v49  ;;  %3794 = vmatmul.msk.bf16.gmra.mxu0 %vm1001_vm2, %v3908_v42  ;;  %3822 = vmatmul.msk.bf16.gmra.mxu1 %vm1001_vm2, %v3936_v43 }
  0x99   : > { %3850 = vmatmul.msk.bf16.gmra.mxu2 %vm1001_vm2, %v3964_v46  ;;  %3878 = vmatmul.msk.bf16.gmra.mxu3 %vm1001_vm2, %v3992_v47 }
  0x9a   : > { %v2370_v52 = vmax.f32 %v2146_v50, 0.0  ;;  %v2426_v53 = vmax.f32 %v2202_v51, 0.0 }
  0x9c   : > { %v2594_v54 = vmin.f32 %v2370_v52, 6.0  ;;  %v2650_v55 = vmin.f32 %v2426_v53, 6.0  ;;  %v1634_v56 = vpop.f32.mrf.mxu2  ;;  %v1774_v57 = vpop.f32.mrf.mxu3 }
  0x9d   : > { %v2030_v58 = vmul.f32 %v4165_v40, %v1634_v56  ;;  %v2086_v59 = vmul.f32 %v4165_v40, %v1774_v57  ;;  %v1356_v60 = vpop.f32.mrf.mxu0  ;;  %v1496_v61 = vpop.f32.mrf.mxu1 }
  0x9e   : > { %v2818_v62 = vpack.c.bf16 %v2594_v54, %v2594_v54  ;;  %v2874_v63 = vpack.c.bf16 %v2650_v55, %v2650_v55  ;;  %v1919_v0 = vmul.f32 %v4165_v40, %v1356_v60  ;;  %v1975_v1 = vmul.f32 %v4165_v40, %v1496_v61 }
  0x9f   : > { %v2258_v2 = vadd.f32 %v4170_v41, %v2030_v58  ;;  %v2314_v3 = vadd.f32 %v4170_v41, %v2086_v59 }
  0xa0   : > { %3043 = vst.msk [vmem:[%s4189_s8] sm:$0xf] %vm3042_vm3, %v2818_v62  ;;  %v2147_v4 = vadd.f32 %v4170_v41, %v1919_v0  ;;  %v2203_v5 = vadd.f32 %v4170_v41, %v1975_v1 }
  0xa1   : > { %3099 = vst.msk [vmem:[%s4189_s8 + $0xe0] sm:$0xf] %vm3042_vm3, %v2874_v63  ;;  %v2482_v6 = vmax.f32 %v2258_v2, 0.0  ;;  %v2538_v7 = vmax.f32 %v2314_v3, 0.0 }
  0xa2   : > { %v2371_v8 = vmax.f32 %v2147_v4, 0.0  ;;  %v2427_v9 = vmax.f32 %v2203_v5, 0.0 }
  0xa3   : > { %v2706_v10 = vmin.f32 %v2482_v6, 6.0  ;;  %v2762_v11 = vmin.f32 %v2538_v7, 6.0  ;;  %v3910_v6 = vld [vmem:[%s4096_s27 + $0x50] sm:$0xff] }
  0xa4   : > { %v2595_v12 = vmin.f32 %v2371_v8, 6.0  ;;  %v2651_v13 = vmin.f32 %v2427_v9, 6.0  ;;  %v1636_v14 = vpop.f32.mrf.mxu2  ;;  %v1776_v15 = vpop.f32.mrf.mxu3  ;;  %v3938_v7 = vld [vmem:[%s4096_s27 + $0x130] sm:$0xff] }
  0xa5   : > { %v2930_v18 = vpack.c.bf16 %v2706_v10, %v2706_v10  ;;  %v2986_v19 = vpack.c.bf16 %v2762_v11, %v2762_v11  ;;  %v2031_v20 = vmul.f32 %v4165_v40, %v1636_v14  ;;  %v2087_v21 = vmul.f32 %v4165_v40, %v1776_v15  ;;  %v1359_v22 = vpop.f32.mrf.mxu0  ;;  %v1499_v23 = vpop.f32.mrf.mxu1  ;;  %v3966_v14 = vld [vmem:[%s4096_s27 + $0x210] sm:$0xff] }
  0xa6   : > { %v2819_v26 = vpack.c.bf16 %v2595_v12, %v2595_v12  ;;  %v2875_v27 = vpack.c.bf16 %v2651_v13, %v2651_v13  ;;  %v1920_v28 = vmul.f32 %v4165_v40, %v1359_v22  ;;  %v1976_v29 = vmul.f32 %v4165_v40, %v1499_v23  ;;  %v3994_v15 = vld [vmem:[%s4096_s27 + $0x2f0] sm:$0xff] }
  0xa7   : > { %3155 = vst.msk [vmem:[%s4189_s8 + $0x1c0] sm:$0xf] %vm3042_vm3, %v2930_v18  ;;  %v2259_v30 = vadd.f32 %v4170_v41, %v2031_v20  ;;  %v2315_v31 = vadd.f32 %v4170_v41, %v2087_v21 }
  0xa8   : > { %3211 = vst.msk [vmem:[%s4189_s8 + $0x2a0] sm:$0xf] %vm3042_vm3, %v2986_v19  ;;  %v2148_v32 = vadd.f32 %v4170_v41, %v1920_v28  ;;  %v2204_v33 = vadd.f32 %v4170_v41, %v1976_v29  ;;  %3795 = vmatmul.msk.bf16.gmra.mxu0 %vm1001_vm2, %v3909_v16  ;;  %3823 = vmatmul.msk.bf16.gmra.mxu1 %vm1001_vm2, %v3937_v17 }
  0xa9   : > { %3044 = vst.msk [vmem:[%s4189_s8 + $0x4] sm:$0xf] %vm3042_vm3, %v2819_v26  ;;  %v2483_v34 = vmax.f32 %v2259_v30, 0.0  ;;  %v2539_v35 = vmax.f32 %v2315_v31, 0.0  ;;  %3851 = vmatmul.msk.bf16.gmra.mxu2 %vm1001_vm2, %v3965_v24  ;;  %3879 = vmatmul.msk.bf16.gmra.mxu3 %vm1001_vm2, %v3993_v25 }
  0xaa   : > { %3100 = vst.msk [vmem:[%s4189_s8 + $0xe4] sm:$0xf] %vm3042_vm3, %v2875_v27  ;;  %v2372_v36 = vmax.f32 %v2148_v32, 0.0  ;;  %v2428_v37 = vmax.f32 %v2204_v33, 0.0 }
  0xab   : > { %v2707_v38 = vmin.f32 %v2483_v34, 6.0  ;;  %v2763_v39 = vmin.f32 %v2539_v35, 6.0 }
  0xac   : > { %v2596_v42 = vmin.f32 %v2372_v36, 6.0  ;;  %v2652_v43 = vmin.f32 %v2428_v37, 6.0  ;;  %v1639_v44 = vpop.f32.mrf.mxu2  ;;  %v1779_v45 = vpop.f32.mrf.mxu3 }
  0xad   : > { %v2931_v46 = vpack.c.bf16 %v2707_v38, %v2707_v38  ;;  %v2987_v47 = vpack.c.bf16 %v2763_v39, %v2763_v39  ;;  %v2032_v48 = vmul.f32 %v4165_v40, %v1639_v44  ;;  %v2088_v49 = vmul.f32 %v4165_v40, %v1779_v45  ;;  %v1361_v50 = vpop.f32.mrf.mxu0  ;;  %v1501_v51 = vpop.f32.mrf.mxu1 }
  0xae   : > { %v2820_v52 = vpack.c.bf16 %v2596_v42, %v2596_v42  ;;  %v2876_v53 = vpack.c.bf16 %v2652_v43, %v2652_v43  ;;  %v1921_v54 = vmul.f32 %v4165_v40, %v1361_v50  ;;  %v1977_v55 = vmul.f32 %v4165_v40, %v1501_v51 }
  0xaf   : > { %3156 = vst.msk [vmem:[%s4189_s8 + $0x1c4] sm:$0xf] %vm3042_vm3, %v2931_v46  ;;  %v2260_v56 = vadd.f32 %v4170_v41, %v2032_v48  ;;  %v2316_v57 = vadd.f32 %v4170_v41, %v2088_v49 }
  0xb0   : > { %3212 = vst.msk [vmem:[%s4189_s8 + $0x2a4] sm:$0xf] %vm3042_vm3, %v2987_v47  ;;  %v2149_v58 = vadd.f32 %v4170_v41, %v1921_v54  ;;  %v2205_v59 = vadd.f32 %v4170_v41, %v1977_v55 }
  0xb1   : > { %3045 = vst.msk [vmem:[%s4189_s8 + $0x8] sm:$0xf] %vm3042_vm3, %v2820_v52  ;;  %v2484_v60 = vmax.f32 %v2260_v56, 0.0  ;;  %v2540_v61 = vmax.f32 %v2316_v57, 0.0 }
  0xb2   : > { %3101 = vst.msk [vmem:[%s4189_s8 + $0xe8] sm:$0xf] %vm3042_vm3, %v2876_v53  ;;  %v2373_v62 = vmax.f32 %v2149_v58, 0.0  ;;  %v2429_v63 = vmax.f32 %v2205_v59, 0.0 }
  0xb3   : > { %v2708_v0 = vmin.f32 %v2484_v60, 6.0  ;;  %v2764_v1 = vmin.f32 %v2540_v61, 6.0  ;;  %v3911_v60 = vld [vmem:[%s4096_s27 + $0x58] sm:$0xff] }
  0xb4   : > { %v2597_v2 = vmin.f32 %v2373_v62, 6.0  ;;  %v2653_v3 = vmin.f32 %v2429_v63, 6.0  ;;  %v1641_v4 = vpop.f32.mrf.mxu2  ;;  %v1781_v5 = vpop.f32.mrf.mxu3  ;;  %v3939_v61 = vld [vmem:[%s4096_s27 + $0x138] sm:$0xff] }
  0xb5   : > { %v2932_v8 = vpack.c.bf16 %v2708_v0, %v2708_v0  ;;  %v2988_v9 = vpack.c.bf16 %v2764_v1, %v2764_v1  ;;  %v2033_v10 = vmul.f32 %v4165_v40, %v1641_v4  ;;  %v2089_v11 = vmul.f32 %v4165_v40, %v1781_v5  ;;  %v1364_v12 = vpop.f32.mrf.mxu0  ;;  %v1504_v13 = vpop.f32.mrf.mxu1  ;;  %v3967_v4 = vld [vmem:[%s4096_s27 + $0x218] sm:$0xff] }
  0xb6   : > { %v2821_v16 = vpack.c.bf16 %v2597_v2, %v2597_v2  ;;  %v2877_v17 = vpack.c.bf16 %v2653_v3, %v2653_v3  ;;  %v1922_v18 = vmul.f32 %v4165_v40, %v1364_v12  ;;  %v1978_v19 = vmul.f32 %v4165_v40, %v1504_v13  ;;  %v3995_v5 = vld [vmem:[%s4096_s27 + $0x2f8] sm:$0xff] }
  0xb7   : > { %3157 = vst.msk [vmem:[%s4189_s8 + $0x1c8] sm:$0xf] %vm3042_vm3, %v2932_v8  ;;  %v2261_v20 = vadd.f32 %v4170_v41, %v2033_v10  ;;  %v2317_v21 = vadd.f32 %v4170_v41, %v2089_v11 }
  0xb8   : > { %3213 = vst.msk [vmem:[%s4189_s8 + $0x2a8] sm:$0xf] %vm3042_vm3, %v2988_v9  ;;  %v2150_v22 = vadd.f32 %v4170_v41, %v1922_v18  ;;  %v2206_v23 = vadd.f32 %v4170_v41, %v1978_v19  ;;  %3796 = vmatmul.msk.bf16.gmra.mxu0 %vm1001_vm2, %v3910_v6  ;;  %3824 = vmatmul.msk.bf16.gmra.mxu1 %vm1001_vm2, %v3938_v7 }
  0xb9   : > { %3046 = vst.msk [vmem:[%s4189_s8 + $0xc] sm:$0xf] %vm3042_vm3, %v2821_v16  ;;  %v2485_v24 = vmax.f32 %v2261_v20, 0.0  ;;  %v2541_v25 = vmax.f32 %v2317_v21, 0.0  ;;  %3852 = vmatmul.msk.bf16.gmra.mxu2 %vm1001_vm2, %v3966_v14  ;;  %3880 = vmatmul.msk.bf16.gmra.mxu3 %vm1001_vm2, %v3994_v15 }
  0xba   : > { %3102 = vst.msk [vmem:[%s4189_s8 + $0xec] sm:$0xf] %vm3042_vm3, %v2877_v17  ;;  %v2374_v26 = vmax.f32 %v2150_v22, 0.0  ;;  %v2430_v27 = vmax.f32 %v2206_v23, 0.0 }
  0xbb   : > { %v2709_v28 = vmin.f32 %v2485_v24, 6.0  ;;  %v2765_v29 = vmin.f32 %v2541_v25, 6.0 }
  0xbc   : > { %v2598_v30 = vmin.f32 %v2374_v26, 6.0  ;;  %v2654_v31 = vmin.f32 %v2430_v27, 6.0  ;;  %v1644_v32 = vpop.f32.mrf.mxu2  ;;  %v1784_v33 = vpop.f32.mrf.mxu3 }
  0xbd   : > { %v2933_v34 = vpack.c.bf16 %v2709_v28, %v2709_v28  ;;  %v2989_v35 = vpack.c.bf16 %v2765_v29, %v2765_v29  ;;  %v2034_v36 = vmul.f32 %v4165_v40, %v1644_v32  ;;  %v2090_v37 = vmul.f32 %v4165_v40, %v1784_v33  ;;  %v1366_v38 = vpop.f32.mrf.mxu0  ;;  %v1506_v39 = vpop.f32.mrf.mxu1 }
  0xbe   : > { %v2822_v42 = vpack.c.bf16 %v2598_v30, %v2598_v30  ;;  %v2878_v43 = vpack.c.bf16 %v2654_v31, %v2654_v31  ;;  %v1923_v44 = vmul.f32 %v4165_v40, %v1366_v38  ;;  %v1979_v45 = vmul.f32 %v4165_v40, %v1506_v39 }
  0xbf   : > { %3158 = vst.msk [vmem:[%s4189_s8 + $0x1cc] sm:$0xf] %vm3042_vm3, %v2933_v34  ;;  %v2262_v46 = vadd.f32 %v4170_v41, %v2034_v36  ;;  %v2318_v47 = vadd.f32 %v4170_v41, %v2090_v37 }
  0xc0   : > { %3214 = vst.msk [vmem:[%s4189_s8 + $0x2ac] sm:$0xf] %vm3042_vm3, %v2989_v35  ;;  %v2151_v48 = vadd.f32 %v4170_v41, %v1923_v44  ;;  %v2207_v49 = vadd.f32 %v4170_v41, %v1979_v45 }
  0xc1   : > { %3047 = vst.msk [vmem:[%s4189_s8 + $0x10] sm:$0xf] %vm3042_vm3, %v2822_v42  ;;  %v2486_v50 = vmax.f32 %v2262_v46, 0.0  ;;  %v2542_v51 = vmax.f32 %v2318_v47, 0.0 }
  0xc2   : > { %3103 = vst.msk [vmem:[%s4189_s8 + $0xf0] sm:$0xf] %vm3042_vm3, %v2878_v43  ;;  %v2375_v52 = vmax.f32 %v2151_v48, 0.0  ;;  %v2431_v53 = vmax.f32 %v2207_v49, 0.0 }
  0xc3   : > { %v2710_v54 = vmin.f32 %v2486_v50, 6.0  ;;  %v2766_v55 = vmin.f32 %v2542_v51, 6.0  ;;  %v3912_v50 = vld [vmem:[%s4096_s27 + $0x60] sm:$0xff] }
  0xc4   : > { %v2599_v56 = vmin.f32 %v2375_v52, 6.0  ;;  %v2655_v57 = vmin.f32 %v2431_v53, 6.0  ;;  %v1646_v58 = vpop.f32.mrf.mxu2  ;;  %v1786_v59 = vpop.f32.mrf.mxu3  ;;  %v3940_v51 = vld [vmem:[%s4096_s27 + $0x140] sm:$0xff] }
  0xc5   : > { %v2934_v62 = vpack.c.bf16 %v2710_v54, %v2710_v54  ;;  %v2990_v63 = vpack.c.bf16 %v2766_v55, %v2766_v55  ;;  %v2035_v0 = vmul.f32 %v4165_v40, %v1646_v58  ;;  %v2091_v1 = vmul.f32 %v4165_v40, %v1786_v59  ;;  %v1369_v2 = vpop.f32.mrf.mxu0  ;;  %v1509_v3 = vpop.f32.mrf.mxu1  ;;  %v3968_v58 = vld [vmem:[%s4096_s27 + $0x220] sm:$0xff] }
  0xc6   : > { %v2823_v6 = vpack.c.bf16 %v2599_v56, %v2599_v56  ;;  %v2879_v7 = vpack.c.bf16 %v2655_v57, %v2655_v57  ;;  %v1924_v8 = vmul.f32 %v4165_v40, %v1369_v2  ;;  %v1980_v9 = vmul.f32 %v4165_v40, %v1509_v3  ;;  %v3996_v59 = vld [vmem:[%s4096_s27 + $0x300] sm:$0xff] }
  0xc7   : > { %3159 = vst.msk [vmem:[%s4189_s8 + $0x1d0] sm:$0xf] %vm3042_vm3, %v2934_v62  ;;  %v2263_v10 = vadd.f32 %v4170_v41, %v2035_v0  ;;  %v2319_v11 = vadd.f32 %v4170_v41, %v2091_v1 }
  0xc8   : > { %3215 = vst.msk [vmem:[%s4189_s8 + $0x2b0] sm:$0xf] %vm3042_vm3, %v2990_v63  ;;  %v2152_v12 = vadd.f32 %v4170_v41, %v1924_v8  ;;  %v2208_v13 = vadd.f32 %v4170_v41, %v1980_v9  ;;  %3797 = vmatmul.msk.bf16.gmra.mxu0 %vm1001_vm2, %v3911_v60  ;;  %3825 = vmatmul.msk.bf16.gmra.mxu1 %vm1001_vm2, %v3939_v61 }
  0xc9   : > { %3048 = vst.msk [vmem:[%s4189_s8 + $0x14] sm:$0xf] %vm3042_vm3, %v2823_v6  ;;  %v2487_v14 = vmax.f32 %v2263_v10, 0.0  ;;  %v2543_v15 = vmax.f32 %v2319_v11, 0.0  ;;  %3853 = vmatmul.msk.bf16.gmra.mxu2 %vm1001_vm2, %v3967_v4  ;;  %3881 = vmatmul.msk.bf16.gmra.mxu3 %vm1001_vm2, %v3995_v5 }
  0xca   : > { %3104 = vst.msk [vmem:[%s4189_s8 + $0xf4] sm:$0xf] %vm3042_vm3, %v2879_v7  ;;  %v2376_v16 = vmax.f32 %v2152_v12, 0.0  ;;  %v2432_v17 = vmax.f32 %v2208_v13, 0.0 }
  0xcb   : > { %v2711_v18 = vmin.f32 %v2487_v14, 6.0  ;;  %v2767_v19 = vmin.f32 %v2543_v15, 6.0 }
  0xcc   : > { %v2600_v20 = vmin.f32 %v2376_v16, 6.0  ;;  %v2656_v21 = vmin.f32 %v2432_v17, 6.0  ;;  %v1649_v22 = vpop.f32.mrf.mxu2  ;;  %v1789_v23 = vpop.f32.mrf.mxu3 }
  0xcd   : > { %v2935_v24 = vpack.c.bf16 %v2711_v18, %v2711_v18  ;;  %v2991_v25 = vpack.c.bf16 %v2767_v19, %v2767_v19  ;;  %v2036_v26 = vmul.f32 %v4165_v40, %v1649_v22  ;;  %v2092_v27 = vmul.f32 %v4165_v40, %v1789_v23  ;;  %v1371_v28 = vpop.f32.mrf.mxu0  ;;  %v1511_v29 = vpop.f32.mrf.mxu1 }
  0xce   : > { %v2824_v30 = vpack.c.bf16 %v2600_v20, %v2600_v20  ;;  %v2880_v31 = vpack.c.bf16 %v2656_v21, %v2656_v21  ;;  %v1925_v32 = vmul.f32 %v4165_v40, %v1371_v28  ;;  %v1981_v33 = vmul.f32 %v4165_v40, %v1511_v29 }
  0xcf   : > { %3160 = vst.msk [vmem:[%s4189_s8 + $0x1d4] sm:$0xf] %vm3042_vm3, %v2935_v24  ;;  %v2264_v34 = vadd.f32 %v4170_v41, %v2036_v26  ;;  %v2320_v35 = vadd.f32 %v4170_v41, %v2092_v27 }
  0xd0   : > { %3216 = vst.msk [vmem:[%s4189_s8 + $0x2b4] sm:$0xf] %vm3042_vm3, %v2991_v25  ;;  %v2153_v36 = vadd.f32 %v4170_v41, %v1925_v32  ;;  %v2209_v37 = vadd.f32 %v4170_v41, %v1981_v33 }
  0xd1   : > { %3049 = vst.msk [vmem:[%s4189_s8 + $0x18] sm:$0xf] %vm3042_vm3, %v2824_v30  ;;  %v2488_v38 = vmax.f32 %v2264_v34, 0.0  ;;  %v2544_v39 = vmax.f32 %v2320_v35, 0.0 }
  0xd2   : > { %3105 = vst.msk [vmem:[%s4189_s8 + $0xf8] sm:$0xf] %vm3042_vm3, %v2880_v31  ;;  %v2377_v42 = vmax.f32 %v2153_v36, 0.0  ;;  %v2433_v43 = vmax.f32 %v2209_v37, 0.0 }
  0xd3   : > { %v2712_v44 = vmin.f32 %v2488_v38, 6.0  ;;  %v2768_v45 = vmin.f32 %v2544_v39, 6.0  ;;  %v3913_v38 = vld [vmem:[%s4096_s27 + $0x68] sm:$0xff] }
  0xd4   : > { %v2601_v46 = vmin.f32 %v2377_v42, 6.0  ;;  %v2657_v47 = vmin.f32 %v2433_v43, 6.0  ;;  %v1651_v48 = vpop.f32.mrf.mxu2  ;;  %v1791_v49 = vpop.f32.mrf.mxu3  ;;  %v3941_v39 = vld [vmem:[%s4096_s27 + $0x148] sm:$0xff] }
  0xd5   : > { %v2936_v52 = vpack.c.bf16 %v2712_v44, %v2712_v44  ;;  %v2992_v53 = vpack.c.bf16 %v2768_v45, %v2768_v45  ;;  %v2037_v54 = vmul.f32 %v4165_v40, %v1651_v48  ;;  %v2093_v55 = vmul.f32 %v4165_v40, %v1791_v49  ;;  %v1374_v56 = vpop.f32.mrf.mxu0  ;;  %v1514_v57 = vpop.f32.mrf.mxu1  ;;  %v3969_v48 = vld [vmem:[%s4096_s27 + $0x228] sm:$0xff] }
  0xd6   : > { %v2825_v60 = vpack.c.bf16 %v2601_v46, %v2601_v46  ;;  %v2881_v61 = vpack.c.bf16 %v2657_v47, %v2657_v47  ;;  %v1926_v62 = vmul.f32 %v4165_v40, %v1374_v56  ;;  %v1982_v63 = vmul.f32 %v4165_v40, %v1514_v57  ;;  %v3997_v49 = vld [vmem:[%s4096_s27 + $0x308] sm:$0xff] }
  0xd7   : > { %3161 = vst.msk [vmem:[%s4189_s8 + $0x1d8] sm:$0xf] %vm3042_vm3, %v2936_v52  ;;  %v2265_v0 = vadd.f32 %v4170_v41, %v2037_v54  ;;  %v2321_v1 = vadd.f32 %v4170_v41, %v2093_v55 }
  0xd8   : > { %3217 = vst.msk [vmem:[%s4189_s8 + $0x2b8] sm:$0xf] %vm3042_vm3, %v2992_v53  ;;  %v2154_v2 = vadd.f32 %v4170_v41, %v1926_v62  ;;  %v2210_v3 = vadd.f32 %v4170_v41, %v1982_v63  ;;  %3798 = vmatmul.msk.bf16.gmra.mxu0 %vm1001_vm2, %v3912_v50  ;;  %3826 = vmatmul.msk.bf16.gmra.mxu1 %vm1001_vm2, %v3940_v51 }
  0xd9   : > { %3050 = vst.msk [vmem:[%s4189_s8 + $0x1c] sm:$0xf] %vm3042_vm3, %v2825_v60  ;;  %v2489_v4 = vmax.f32 %v2265_v0, 0.0  ;;  %v2545_v5 = vmax.f32 %v2321_v1, 0.0  ;;  %3854 = vmatmul.msk.bf16.gmra.mxu2 %vm1001_vm2, %v3968_v58  ;;  %3882 = vmatmul.msk.bf16.gmra.mxu3 %vm1001_vm2, %v3996_v59 }
  0xda   : > { %3106 = vst.msk [vmem:[%s4189_s8 + $0xfc] sm:$0xf] %vm3042_vm3, %v2881_v61  ;;  %v2378_v6 = vmax.f32 %v2154_v2, 0.0  ;;  %v2434_v7 = vmax.f32 %v2210_v3, 0.0 }
  0xdb   : > { %v2713_v8 = vmin.f32 %v2489_v4, 6.0  ;;  %v2769_v9 = vmin.f32 %v2545_v5, 6.0 }
  0xdc   : > { %v2602_v10 = vmin.f32 %v2378_v6, 6.0  ;;  %v2658_v11 = vmin.f32 %v2434_v7, 6.0  ;;  %v1654_v12 = vpop.f32.mrf.mxu2  ;;  %v1794_v13 = vpop.f32.mrf.mxu3 }
  0xdd   : > { %v2937_v14 = vpack.c.bf16 %v2713_v8, %v2713_v8  ;;  %v2993_v15 = vpack.c.bf16 %v2769_v9, %v2769_v9  ;;  %v2038_v16 = vmul.f32 %v4165_v40, %v1654_v12  ;;  %v2094_v17 = vmul.f32 %v4165_v40, %v1794_v13  ;;  %v1376_v18 = vpop.f32.mrf.mxu0  ;;  %v1516_v19 = vpop.f32.mrf.mxu1 }
  0xde   : > { %v2826_v20 = vpack.c.bf16 %v2602_v10, %v2602_v10  ;;  %v2882_v21 = vpack.c.bf16 %v2658_v11, %v2658_v11  ;;  %v1927_v22 = vmul.f32 %v4165_v40, %v1376_v18  ;;  %v1983_v23 = vmul.f32 %v4165_v40, %v1516_v19 }
  0xdf   : > { %3162 = vst.msk [vmem:[%s4189_s8 + $0x1dc] sm:$0xf] %vm3042_vm3, %v2937_v14  ;;  %v2266_v24 = vadd.f32 %v4170_v41, %v2038_v16  ;;  %v2322_v25 = vadd.f32 %v4170_v41, %v2094_v17 }
  0xe0   : > { %3218 = vst.msk [vmem:[%s4189_s8 + $0x2bc] sm:$0xf] %vm3042_vm3, %v2993_v15  ;;  %v2155_v26 = vadd.f32 %v4170_v41, %v1927_v22  ;;  %v2211_v27 = vadd.f32 %v4170_v41, %v1983_v23 }
  0xe1   : > { %3051 = vst.msk [vmem:[%s4189_s8 + $0x20] sm:$0xf] %vm3042_vm3, %v2826_v20  ;;  %v2490_v28 = vmax.f32 %v2266_v24, 0.0  ;;  %v2546_v29 = vmax.f32 %v2322_v25, 0.0 }
  0xe2   : > { %3107 = vst.msk [vmem:[%s4189_s8 + $0x100] sm:$0xf] %vm3042_vm3, %v2882_v21  ;;  %v2379_v30 = vmax.f32 %v2155_v26, 0.0  ;;  %v2435_v31 = vmax.f32 %v2211_v27, 0.0 }
  0xe3   : > { %v2714_v32 = vmin.f32 %v2490_v28, 6.0  ;;  %v2770_v33 = vmin.f32 %v2546_v29, 6.0  ;;  %v3914_v28 = vld [vmem:[%s4096_s27 + $0x70] sm:$0xff] }
  0xe4   : > { %v2603_v34 = vmin.f32 %v2379_v30, 6.0  ;;  %v2659_v35 = vmin.f32 %v2435_v31, 6.0  ;;  %v1656_v36 = vpop.f32.mrf.mxu2  ;;  %v1796_v37 = vpop.f32.mrf.mxu3  ;;  %v3942_v29 = vld [vmem:[%s4096_s27 + $0x150] sm:$0xff] }
  0xe5   : > { %v2938_v42 = vpack.c.bf16 %v2714_v32, %v2714_v32  ;;  %v2994_v43 = vpack.c.bf16 %v2770_v33, %v2770_v33  ;;  %v2039_v44 = vmul.f32 %v4165_v40, %v1656_v36  ;;  %v2095_v45 = vmul.f32 %v4165_v40, %v1796_v37  ;;  %v1379_v46 = vpop.f32.mrf.mxu0  ;;  %v1519_v47 = vpop.f32.mrf.mxu1  ;;  %v3970_v36 = vld [vmem:[%s4096_s27 + $0x230] sm:$0xff] }
  0xe6   : > { %v2827_v50 = vpack.c.bf16 %v2603_v34, %v2603_v34  ;;  %v2883_v51 = vpack.c.bf16 %v2659_v35, %v2659_v35  ;;  %v1928_v52 = vmul.f32 %v4165_v40, %v1379_v46  ;;  %v1984_v53 = vmul.f32 %v4165_v40, %v1519_v47  ;;  %v3998_v37 = vld [vmem:[%s4096_s27 + $0x310] sm:$0xff] }
  0xe7   : > { %3163 = vst.msk [vmem:[%s4189_s8 + $0x1e0] sm:$0xf] %vm3042_vm3, %v2938_v42  ;;  %v2267_v54 = vadd.f32 %v4170_v41, %v2039_v44  ;;  %v2323_v55 = vadd.f32 %v4170_v41, %v2095_v45 }
  0xe8   : > { %3219 = vst.msk [vmem:[%s4189_s8 + $0x2c0] sm:$0xf] %vm3042_vm3, %v2994_v43  ;;  %v2156_v56 = vadd.f32 %v4170_v41, %v1928_v52  ;;  %v2212_v57 = vadd.f32 %v4170_v41, %v1984_v53  ;;  %3799 = vmatmul.msk.bf16.gmra.mxu0 %vm1001_vm2, %v3913_v38  ;;  %3827 = vmatmul.msk.bf16.gmra.mxu1 %vm1001_vm2, %v3941_v39 }
  0xe9   : > { %3052 = vst.msk [vmem:[%s4189_s8 + $0x24] sm:$0xf] %vm3042_vm3, %v2827_v50  ;;  %v2491_v58 = vmax.f32 %v2267_v54, 0.0  ;;  %v2547_v59 = vmax.f32 %v2323_v55, 0.0  ;;  %3855 = vmatmul.msk.bf16.gmra.mxu2 %vm1001_vm2, %v3969_v48  ;;  %3883 = vmatmul.msk.bf16.gmra.mxu3 %vm1001_vm2, %v3997_v49 }
  0xea   : > { %3108 = vst.msk [vmem:[%s4189_s8 + $0x104] sm:$0xf] %vm3042_vm3, %v2883_v51  ;;  %v2380_v60 = vmax.f32 %v2156_v56, 0.0  ;;  %v2436_v61 = vmax.f32 %v2212_v57, 0.0 }
  0xeb   : > { %v2715_v62 = vmin.f32 %v2491_v58, 6.0  ;;  %v2771_v63 = vmin.f32 %v2547_v59, 6.0 }
  0xec   : > { %v2604_v0 = vmin.f32 %v2380_v60, 6.0  ;;  %v2660_v1 = vmin.f32 %v2436_v61, 6.0  ;;  %v1659_v2 = vpop.f32.mrf.mxu2  ;;  %v1799_v3 = vpop.f32.mrf.mxu3 }
  0xed   : > { %v2939_v4 = vpack.c.bf16 %v2715_v62, %v2715_v62  ;;  %v2995_v5 = vpack.c.bf16 %v2771_v63, %v2771_v63  ;;  %v2040_v6 = vmul.f32 %v4165_v40, %v1659_v2  ;;  %v2096_v7 = vmul.f32 %v4165_v40, %v1799_v3  ;;  %v1381_v8 = vpop.f32.mrf.mxu0  ;;  %v1521_v9 = vpop.f32.mrf.mxu1 }
  0xee   : > { %v2828_v10 = vpack.c.bf16 %v2604_v0, %v2604_v0  ;;  %v2884_v11 = vpack.c.bf16 %v2660_v1, %v2660_v1  ;;  %v1929_v12 = vmul.f32 %v4165_v40, %v1381_v8  ;;  %v1985_v13 = vmul.f32 %v4165_v40, %v1521_v9 }
  0xef   : > { %3164 = vst.msk [vmem:[%s4189_s8 + $0x1e4] sm:$0xf] %vm3042_vm3, %v2939_v4  ;;  %v2268_v14 = vadd.f32 %v4170_v41, %v2040_v6  ;;  %v2324_v15 = vadd.f32 %v4170_v41, %v2096_v7 }
  0xf0   : > { %3220 = vst.msk [vmem:[%s4189_s8 + $0x2c4] sm:$0xf] %vm3042_vm3, %v2995_v5  ;;  %v2157_v16 = vadd.f32 %v4170_v41, %v1929_v12  ;;  %v2213_v17 = vadd.f32 %v4170_v41, %v1985_v13 }
  0xf1   : > { %3053 = vst.msk [vmem:[%s4189_s8 + $0x28] sm:$0xf] %vm3042_vm3, %v2828_v10  ;;  %v2492_v18 = vmax.f32 %v2268_v14, 0.0  ;;  %v2548_v19 = vmax.f32 %v2324_v15, 0.0 }
  0xf2   : > { %3109 = vst.msk [vmem:[%s4189_s8 + $0x108] sm:$0xf] %vm3042_vm3, %v2884_v11  ;;  %v2381_v20 = vmax.f32 %v2157_v16, 0.0  ;;  %v2437_v21 = vmax.f32 %v2213_v17, 0.0 }
  0xf3   : > { %v2716_v22 = vmin.f32 %v2492_v18, 6.0  ;;  %v2772_v23 = vmin.f32 %v2548_v19, 6.0  ;;  %v3915_v18 = vld [vmem:[%s4096_s27 + $0x78] sm:$0xff] }
  0xf4   : > { %v2605_v24 = vmin.f32 %v2381_v20, 6.0  ;;  %v2661_v25 = vmin.f32 %v2437_v21, 6.0  ;;  %v1661_v26 = vpop.f32.mrf.mxu2  ;;  %v1801_v27 = vpop.f32.mrf.mxu3  ;;  %v3943_v19 = vld [vmem:[%s4096_s27 + $0x158] sm:$0xff] }
  0xf5   : > { %v2940_v30 = vpack.c.bf16 %v2716_v22, %v2716_v22  ;;  %v2996_v31 = vpack.c.bf16 %v2772_v23, %v2772_v23  ;;  %v2041_v32 = vmul.f32 %v4165_v40, %v1661_v26  ;;  %v2097_v33 = vmul.f32 %v4165_v40, %v1801_v27  ;;  %v1384_v34 = vpop.f32.mrf.mxu0  ;;  %v1524_v35 = vpop.f32.mrf.mxu1  ;;  %v3971_v26 = vld [vmem:[%s4096_s27 + $0x238] sm:$0xff] }
  0xf6   : > { %v2829_v38 = vpack.c.bf16 %v2605_v24, %v2605_v24  ;;  %v2885_v39 = vpack.c.bf16 %v2661_v25, %v2661_v25  ;;  %v1930_v42 = vmul.f32 %v4165_v40, %v1384_v34  ;;  %v1986_v43 = vmul.f32 %v4165_v40, %v1524_v35  ;;  %v3999_v27 = vld [vmem:[%s4096_s27 + $0x318] sm:$0xff] }
  0xf7   : > { %3165 = vst.msk [vmem:[%s4189_s8 + $0x1e8] sm:$0xf] %vm3042_vm3, %v2940_v30  ;;  %v2269_v44 = vadd.f32 %v4170_v41, %v2041_v32  ;;  %v2325_v45 = vadd.f32 %v4170_v41, %v2097_v33 }
  0xf8   : > { %3221 = vst.msk [vmem:[%s4189_s8 + $0x2c8] sm:$0xf] %vm3042_vm3, %v2996_v31  ;;  %v2158_v46 = vadd.f32 %v4170_v41, %v1930_v42  ;;  %v2214_v47 = vadd.f32 %v4170_v41, %v1986_v43  ;;  %3800 = vmatmul.msk.bf16.gmra.mxu0 %vm1001_vm2, %v3914_v28  ;;  %3828 = vmatmul.msk.bf16.gmra.mxu1 %vm1001_vm2, %v3942_v29 }
  0xf9   : > { %3054 = vst.msk [vmem:[%s4189_s8 + $0x2c] sm:$0xf] %vm3042_vm3, %v2829_v38  ;;  %v2493_v48 = vmax.f32 %v2269_v44, 0.0  ;;  %v2549_v49 = vmax.f32 %v2325_v45, 0.0  ;;  %3856 = vmatmul.msk.bf16.gmra.mxu2 %vm1001_vm2, %v3970_v36  ;;  %3884 = vmatmul.msk.bf16.gmra.mxu3 %vm1001_vm2, %v3998_v37 }
  0xfa   : > { %3110 = vst.msk [vmem:[%s4189_s8 + $0x10c] sm:$0xf] %vm3042_vm3, %v2885_v39  ;;  %v2382_v50 = vmax.f32 %v2158_v46, 0.0  ;;  %v2438_v51 = vmax.f32 %v2214_v47, 0.0 }
  0xfb   : > { %v2717_v52 = vmin.f32 %v2493_v48, 6.0  ;;  %v2773_v53 = vmin.f32 %v2549_v49, 6.0 }
  0xfc   : > { %v2606_v54 = vmin.f32 %v2382_v50, 6.0  ;;  %v2662_v55 = vmin.f32 %v2438_v51, 6.0  ;;  %v1664_v56 = vpop.f32.mrf.mxu2  ;;  %v1804_v57 = vpop.f32.mrf.mxu3 }
  0xfd   : > { %v2941_v58 = vpack.c.bf16 %v2717_v52, %v2717_v52  ;;  %v2997_v59 = vpack.c.bf16 %v2773_v53, %v2773_v53  ;;  %v2042_v60 = vmul.f32 %v4165_v40, %v1664_v56  ;;  %v2098_v61 = vmul.f32 %v4165_v40, %v1804_v57  ;;  %v1386_v62 = vpop.f32.mrf.mxu0  ;;  %v1526_v63 = vpop.f32.mrf.mxu1 }
  0xfe   : > { %v2830_v0 = vpack.c.bf16 %v2606_v54, %v2606_v54  ;;  %v2886_v1 = vpack.c.bf16 %v2662_v55, %v2662_v55  ;;  %v1931_v2 = vmul.f32 %v4165_v40, %v1386_v62  ;;  %v1987_v3 = vmul.f32 %v4165_v40, %v1526_v63 }
  0xff   : > { %3166 = vst.msk [vmem:[%s4189_s8 + $0x1ec] sm:$0xf] %vm3042_vm3, %v2941_v58  ;;  %v2270_v4 = vadd.f32 %v4170_v41, %v2042_v60  ;;  %v2326_v5 = vadd.f32 %v4170_v41, %v2098_v61 }
 0x100   : > { %3222 = vst.msk [vmem:[%s4189_s8 + $0x2cc] sm:$0xf] %vm3042_vm3, %v2997_v59  ;;  %v2159_v6 = vadd.f32 %v4170_v41, %v1931_v2  ;;  %v2215_v7 = vadd.f32 %v4170_v41, %v1987_v3 }
 0x101   : > { %3055 = vst.msk [vmem:[%s4189_s8 + $0x30] sm:$0xf] %vm3042_vm3, %v2830_v0  ;;  %v2494_v8 = vmax.f32 %v2270_v4, 0.0  ;;  %v2550_v9 = vmax.f32 %v2326_v5, 0.0 }
 0x102   : > { %3111 = vst.msk [vmem:[%s4189_s8 + $0x110] sm:$0xf] %vm3042_vm3, %v2886_v1  ;;  %v2383_v10 = vmax.f32 %v2159_v6, 0.0  ;;  %v2439_v11 = vmax.f32 %v2215_v7, 0.0 }
 0x103   : > { %v2718_v12 = vmin.f32 %v2494_v8, 6.0  ;;  %v2774_v13 = vmin.f32 %v2550_v9, 6.0  ;;  %v3916_v8 = vld [vmem:[%s4096_s27 + $0x80] sm:$0xff] }
 0x104   : > { %v2607_v14 = vmin.f32 %v2383_v10, 6.0  ;;  %v2663_v15 = vmin.f32 %v2439_v11, 6.0  ;;  %v1666_v16 = vpop.f32.mrf.mxu2  ;;  %v1806_v17 = vpop.f32.mrf.mxu3  ;;  %v3944_v9 = vld [vmem:[%s4096_s27 + $0x160] sm:$0xff] }
 0x105   : > { %v2942_v20 = vpack.c.bf16 %v2718_v12, %v2718_v12  ;;  %v2998_v21 = vpack.c.bf16 %v2774_v13, %v2774_v13  ;;  %v2043_v22 = vmul.f32 %v4165_v40, %v1666_v16  ;;  %v2099_v23 = vmul.f32 %v4165_v40, %v1806_v17  ;;  %v1389_v24 = vpop.f32.mrf.mxu0  ;;  %v1529_v25 = vpop.f32.mrf.mxu1  ;;  %v3972_v16 = vld [vmem:[%s4096_s27 + $0x240] sm:$0xff] }
 0x106   : > { %v2831_v28 = vpack.c.bf16 %v2607_v14, %v2607_v14  ;;  %v2887_v29 = vpack.c.bf16 %v2663_v15, %v2663_v15  ;;  %v1932_v30 = vmul.f32 %v4165_v40, %v1389_v24  ;;  %v1988_v31 = vmul.f32 %v4165_v40, %v1529_v25  ;;  %v4000_v17 = vld [vmem:[%s4096_s27 + $0x320] sm:$0xff] }
 0x107   : > { %3167 = vst.msk [vmem:[%s4189_s8 + $0x1f0] sm:$0xf] %vm3042_vm3, %v2942_v20  ;;  %v2271_v32 = vadd.f32 %v4170_v41, %v2043_v22  ;;  %v2327_v33 = vadd.f32 %v4170_v41, %v2099_v23  ;;  %v4500_v24 = vld [vmem:[%s5271_s3] ss:$0 sm:$0xff] }
 0x108   : > { %3223 = vst.msk [vmem:[%s4189_s8 + $0x2d0] sm:$0xf] %vm3042_vm3, %v2998_v21  ;;  %v2160_v34 = vadd.f32 %v4170_v41, %v1932_v30  ;;  %v2216_v35 = vadd.f32 %v4170_v41, %v1988_v31  ;;  %3801 = vmatmul.msk.bf16.gmra.mxu0 %vm1001_vm2, %v3915_v18  ;;  %3829 = vmatmul.msk.bf16.gmra.mxu1 %vm1001_vm2, %v3943_v19 }
 0x109   : > { %3056 = vst.msk [vmem:[%s4189_s8 + $0x34] sm:$0xf] %vm3042_vm3, %v2831_v28  ;;  %v2495_v36 = vmax.f32 %v2271_v32, 0.0  ;;  %v2551_v37 = vmax.f32 %v2327_v33, 0.0  ;;  %3857 = vmatmul.msk.bf16.gmra.mxu2 %vm1001_vm2, %v3971_v26  ;;  %3885 = vmatmul.msk.bf16.gmra.mxu3 %vm1001_vm2, %v3999_v27 }
 0x10a   : > { %3112 = vst.msk [vmem:[%s4189_s8 + $0x114] sm:$0xf] %vm3042_vm3, %v2887_v29  ;;  %v2384_v38 = vmax.f32 %v2160_v34, 0.0  ;;  %v2440_v39 = vmax.f32 %v2216_v35, 0.0 }
 0x10b   : > { %v2719_v42 = vmin.f32 %v2495_v36, 6.0  ;;  %v2775_v43 = vmin.f32 %v2551_v37, 6.0  ;;  %v4515_v37 = vld [vmem:[%s5270_s2] ss:$0 sm:$0xff] }
 0x10c   : > { %v2608_v44 = vmin.f32 %v2384_v38, 6.0  ;;  %v2664_v45 = vmin.f32 %v2440_v39, 6.0  ;;  %v1669_v46 = vpop.f32.mrf.mxu2  ;;  %v1809_v47 = vpop.f32.mrf.mxu3 }
 0x10d   : > { %v2943_v48 = vpack.c.bf16 %v2719_v42, %v2719_v42  ;;  %v2999_v49 = vpack.c.bf16 %v2775_v43, %v2775_v43  ;;  %v2044_v50 = vmul.f32 %v4165_v40, %v1669_v46  ;;  %v2100_v51 = vmul.f32 %v4165_v40, %v1809_v47  ;;  %v1391_v52 = vpop.f32.mrf.mxu0  ;;  %v1531_v53 = vpop.f32.mrf.mxu1 }
 0x10e   : > { %v2832_v54 = vpack.c.bf16 %v2608_v44, %v2608_v44  ;;  %v2888_v55 = vpack.c.bf16 %v2664_v45, %v2664_v45  ;;  %v1933_v56 = vmul.f32 %v4165_v40, %v1391_v52  ;;  %v1989_v57 = vmul.f32 %v4165_v40, %v1531_v53 }
 0x10f   : > { %3168 = vst.msk [vmem:[%s4189_s8 + $0x1f4] sm:$0xf] %vm3042_vm3, %v2943_v48  ;;  %v2272_v58 = vadd.f32 %v4170_v41, %v2044_v50  ;;  %v2328_v59 = vadd.f32 %v4170_v41, %v2100_v51 }
 0x110   : > { %3224 = vst.msk [vmem:[%s4189_s8 + $0x2d4] sm:$0xf] %vm3042_vm3, %v2999_v49  ;;  %v2161_v60 = vadd.f32 %v4170_v41, %v1933_v56  ;;  %v2217_v61 = vadd.f32 %v4170_v41, %v1989_v57 }
 0x111   : > { %3057 = vst.msk [vmem:[%s4189_s8 + $0x38] sm:$0xf] %vm3042_vm3, %v2832_v54  ;;  %v2496_v62 = vmax.f32 %v2272_v58, 0.0  ;;  %v2552_v63 = vmax.f32 %v2328_v59, 0.0 }
 0x112   : > { %3113 = vst.msk [vmem:[%s4189_s8 + $0x118] sm:$0xf] %vm3042_vm3, %v2888_v55  ;;  %v2385_v0 = vmax.f32 %v2161_v60, 0.0  ;;  %v2441_v1 = vmax.f32 %v2217_v61, 0.0 }
 0x113   : > { %v2720_v2 = vmin.f32 %v2496_v62, 6.0  ;;  %v2776_v3 = vmin.f32 %v2552_v63, 6.0  ;;  %v3917_v62 = vld [vmem:[%s4096_s27 + $0x88] sm:$0xff] }
 0x114   : > { %v2609_v4 = vmin.f32 %v2385_v0, 6.0  ;;  %v2665_v5 = vmin.f32 %v2441_v1, 6.0  ;;  %v1671_v6 = vpop.f32.mrf.mxu2  ;;  %v1811_v7 = vpop.f32.mrf.mxu3  ;;  %v3945_v63 = vld [vmem:[%s4096_s27 + $0x168] sm:$0xff] }
 0x115   : > { %v2944_v10 = vpack.c.bf16 %v2720_v2, %v2720_v2  ;;  %v3000_v11 = vpack.c.bf16 %v2776_v3, %v2776_v3  ;;  %v2045_v12 = vmul.f32 %v4165_v40, %v1671_v6  ;;  %v2101_v13 = vmul.f32 %v4165_v40, %v1811_v7  ;;  %v1394_v14 = vpop.f32.mrf.mxu0  ;;  %v1534_v15 = vpop.f32.mrf.mxu1  ;;  %v3973_v6 = vld [vmem:[%s4096_s27 + $0x248] sm:$0xff] }
 0x116   : > { %v2833_v18 = vpack.c.bf16 %v2609_v4, %v2609_v4  ;;  %v2889_v19 = vpack.c.bf16 %v2665_v5, %v2665_v5  ;;  %v1934_v20 = vmul.f32 %v4165_v40, %v1394_v14  ;;  %v1990_v21 = vmul.f32 %v4165_v40, %v1534_v15  ;;  %v4001_v7 = vld [vmem:[%s4096_s27 + $0x328] sm:$0xff] }
 0x117   : > { %3169 = vst.msk [vmem:[%s4189_s8 + $0x1f8] sm:$0xf] %vm3042_vm3, %v2944_v10  ;;  %v2273_v22 = vadd.f32 %v4170_v41, %v2045_v12  ;;  %v2329_v23 = vadd.f32 %v4170_v41, %v2101_v13 }
 0x118   : > { %3225 = vst.msk [vmem:[%s4189_s8 + $0x2d8] sm:$0xf] %vm3042_vm3, %v3000_v11  ;;  %v2162_v25 = vadd.f32 %v4500_v24, %v1934_v20  ;;  %v2218_v26 = vadd.f32 %v4500_v24, %v1990_v21  ;;  %3802 = vmatmul.msk.bf16.gmra.mxu0 %vm1001_vm2, %v3916_v8  ;;  %3830 = vmatmul.msk.bf16.gmra.mxu1 %vm1001_vm2, %v3944_v9 }
 0x119   : > { %3058 = vst.msk [vmem:[%s4189_s8 + $0x3c] sm:$0xf] %vm3042_vm3, %v2833_v18  ;;  %v2497_v40 = vmax.f32 %v2273_v22, 0.0  ;;  %v2553_v27 = vmax.f32 %v2329_v23, 0.0  ;;  %3858 = vmatmul.msk.bf16.gmra.mxu2 %vm1001_vm2, %v3972_v16  ;;  %3886 = vmatmul.msk.bf16.gmra.mxu3 %vm1001_vm2, %v4000_v17 }
 0x11a   : > { %3114 = vst.msk [vmem:[%s4189_s8 + $0x11c] sm:$0xf] %vm3042_vm3, %v2889_v19  ;;  %v2386_v41 = vmax.f32 %v2162_v25, 0.0  ;;  %v2442_v28 = vmax.f32 %v2218_v26, 0.0 }
 0x11b   : > { %v2721_v29 = vmin.f32 %v2497_v40, 6.0  ;;  %v2777_v30 = vmin.f32 %v2553_v27, 6.0 }
 0x11c   : > { %v2610_v31 = vmin.f32 %v2386_v41, 6.0  ;;  %v2666_v32 = vmin.f32 %v2442_v28, 6.0  ;;  %v1674_v33 = vpop.f32.mrf.mxu2  ;;  %v1814_v34 = vpop.f32.mrf.mxu3 }
 0x11d   : > { %v2945_v35 = vpack.c.bf16 %v2721_v29, %v2721_v29  ;;  %v3001_v36 = vpack.c.bf16 %v2777_v30, %v2777_v30  ;;  %v2046_v38 = vmul.f32 %v4515_v37, %v1674_v33  ;;  %v2102_v39 = vmul.f32 %v4515_v37, %v1814_v34  ;;  %v1396_v42 = vpop.f32.mrf.mxu0  ;;  %v1536_v43 = vpop.f32.mrf.mxu1 }
 0x11e   : > { %v2834_v44 = vpack.c.bf16 %v2610_v31, %v2610_v31  ;;  %v2890_v45 = vpack.c.bf16 %v2666_v32, %v2666_v32  ;;  %v1935_v46 = vmul.f32 %v4515_v37, %v1396_v42  ;;  %v1991_v47 = vmul.f32 %v4515_v37, %v1536_v43 }
 0x11f   : > { %3170 = vst.msk [vmem:[%s4189_s8 + $0x1fc] sm:$0xf] %vm3042_vm3, %v2945_v35  ;;  %v2274_v48 = vadd.f32 %v4500_v24, %v2046_v38  ;;  %v2330_v49 = vadd.f32 %v4500_v24, %v2102_v39 }
 0x120   : > { %3226 = vst.msk [vmem:[%s4189_s8 + $0x2dc] sm:$0xf] %vm3042_vm3, %v3001_v36  ;;  %v2163_v50 = vadd.f32 %v4500_v24, %v1935_v46  ;;  %v2219_v51 = vadd.f32 %v4500_v24, %v1991_v47 }
 0x121   : > { %3059 = vst.msk [vmem:[%s4189_s8 + $0x40] sm:$0xf] %vm3042_vm3, %v2834_v44  ;;  %v2498_v52 = vmax.f32 %v2274_v48, 0.0  ;;  %v2554_v53 = vmax.f32 %v2330_v49, 0.0 }
 0x122   : > { %3115 = vst.msk [vmem:[%s4189_s8 + $0x120] sm:$0xf] %vm3042_vm3, %v2890_v45  ;;  %v2387_v54 = vmax.f32 %v2163_v50, 0.0  ;;  %v2443_v55 = vmax.f32 %v2219_v51, 0.0 }
 0x123   : > { %v2722_v56 = vmin.f32 %v2498_v52, 6.0  ;;  %v2778_v57 = vmin.f32 %v2554_v53, 6.0  ;;  %v3918_v52 = vld [vmem:[%s4096_s27 + $0x90] sm:$0xff] }
 0x124   : > { %v2611_v58 = vmin.f32 %v2387_v54, 6.0  ;;  %v2667_v59 = vmin.f32 %v2443_v55, 6.0  ;;  %v1676_v60 = vpop.f32.mrf.mxu2  ;;  %v1816_v61 = vpop.f32.mrf.mxu3  ;;  %v3946_v53 = vld [vmem:[%s4096_s27 + $0x170] sm:$0xff] }
 0x125   : > { %v2946_v0 = vpack.c.bf16 %v2722_v56, %v2722_v56  ;;  %v3002_v1 = vpack.c.bf16 %v2778_v57, %v2778_v57  ;;  %v2047_v2 = vmul.f32 %v4515_v37, %v1676_v60  ;;  %v2103_v3 = vmul.f32 %v4515_v37, %v1816_v61  ;;  %v1399_v4 = vpop.f32.mrf.mxu0  ;;  %v1539_v5 = vpop.f32.mrf.mxu1  ;;  %v3974_v60 = vld [vmem:[%s4096_s27 + $0x250] sm:$0xff] }
 0x126   : > { %v2835_v8 = vpack.c.bf16 %v2611_v58, %v2611_v58  ;;  %v2891_v9 = vpack.c.bf16 %v2667_v59, %v2667_v59  ;;  %v1936_v10 = vmul.f32 %v4515_v37, %v1399_v4  ;;  %v1992_v11 = vmul.f32 %v4515_v37, %v1539_v5  ;;  %v4002_v61 = vld [vmem:[%s4096_s27 + $0x330] sm:$0xff] }
 0x127   : > { %3171 = vst.msk [vmem:[%s4189_s8 + $0x200] sm:$0xf] %vm3042_vm3, %v2946_v0  ;;  %v2275_v12 = vadd.f32 %v4500_v24, %v2047_v2  ;;  %v2331_v13 = vadd.f32 %v4500_v24, %v2103_v3 }
 0x128   : > { %3227 = vst.msk [vmem:[%s4189_s8 + $0x2e0] sm:$0xf] %vm3042_vm3, %v3002_v1  ;;  %v2164_v14 = vadd.f32 %v4500_v24, %v1936_v10  ;;  %v2220_v15 = vadd.f32 %v4500_v24, %v1992_v11  ;;  %3803 = vmatmul.msk.bf16.gmra.mxu0 %vm1001_vm2, %v3917_v62  ;;  %3831 = vmatmul.msk.bf16.gmra.mxu1 %vm1001_vm2, %v3945_v63 }
 0x129   : > { %3060 = vst.msk [vmem:[%s4189_s8 + $0x44] sm:$0xf] %vm3042_vm3, %v2835_v8  ;;  %v2499_v16 = vmax.f32 %v2275_v12, 0.0  ;;  %v2555_v17 = vmax.f32 %v2331_v13, 0.0  ;;  %3859 = vmatmul.msk.bf16.gmra.mxu2 %vm1001_vm2, %v3973_v6  ;;  %3887 = vmatmul.msk.bf16.gmra.mxu3 %vm1001_vm2, %v4001_v7 }
 0x12a   : > { %3116 = vst.msk [vmem:[%s4189_s8 + $0x124] sm:$0xf] %vm3042_vm3, %v2891_v9  ;;  %v2388_v18 = vmax.f32 %v2164_v14, 0.0  ;;  %v2444_v19 = vmax.f32 %v2220_v15, 0.0 }
 0x12b   : > { %v2723_v20 = vmin.f32 %v2499_v16, 6.0  ;;  %v2779_v21 = vmin.f32 %v2555_v17, 6.0 }
 0x12c   : > { %v2612_v22 = vmin.f32 %v2388_v18, 6.0  ;;  %v2668_v23 = vmin.f32 %v2444_v19, 6.0  ;;  %v1679_v25 = vpop.f32.mrf.mxu2  ;;  %v1819_v26 = vpop.f32.mrf.mxu3 }
 0x12d   : > { %v2947_v40 = vpack.c.bf16 %v2723_v20, %v2723_v20  ;;  %v3003_v27 = vpack.c.bf16 %v2779_v21, %v2779_v21  ;;  %v2048_v41 = vmul.f32 %v4515_v37, %v1679_v25  ;;  %v2104_v28 = vmul.f32 %v4515_v37, %v1819_v26  ;;  %v1401_v29 = vpop.f32.mrf.mxu0  ;;  %v1541_v30 = vpop.f32.mrf.mxu1 }
 0x12e   : > { %v2836_v31 = vpack.c.bf16 %v2612_v22, %v2612_v22  ;;  %v2892_v32 = vpack.c.bf16 %v2668_v23, %v2668_v23  ;;  %v1937_v33 = vmul.f32 %v4515_v37, %v1401_v29  ;;  %v1993_v34 = vmul.f32 %v4515_v37, %v1541_v30 }
 0x12f   : > { %3172 = vst.msk [vmem:[%s4189_s8 + $0x204] sm:$0xf] %vm3042_vm3, %v2947_v40  ;;  %v2276_v35 = vadd.f32 %v4500_v24, %v2048_v41  ;;  %v2332_v36 = vadd.f32 %v4500_v24, %v2104_v28 }
 0x130   : > { %3228 = vst.msk [vmem:[%s4189_s8 + $0x2e4] sm:$0xf] %vm3042_vm3, %v3003_v27  ;;  %v2165_v38 = vadd.f32 %v4500_v24, %v1937_v33  ;;  %v2221_v39 = vadd.f32 %v4500_v24, %v1993_v34 }
 0x131   : > { %3061 = vst.msk [vmem:[%s4189_s8 + $0x48] sm:$0xf] %vm3042_vm3, %v2836_v31  ;;  %v2500_v42 = vmax.f32 %v2276_v35, 0.0  ;;  %v2556_v43 = vmax.f32 %v2332_v36, 0.0 }
 0x132   : > { %3117 = vst.msk [vmem:[%s4189_s8 + $0x128] sm:$0xf] %vm3042_vm3, %v2892_v32  ;;  %v2389_v44 = vmax.f32 %v2165_v38, 0.0  ;;  %v2445_v45 = vmax.f32 %v2221_v39, 0.0 }
 0x133   : > { %v2724_v46 = vmin.f32 %v2500_v42, 6.0  ;;  %v2780_v47 = vmin.f32 %v2556_v43, 6.0  ;;  %v3919_v42 = vld [vmem:[%s4096_s27 + $0x98] sm:$0xff] }
 0x134   : > { %v2613_v48 = vmin.f32 %v2389_v44, 6.0  ;;  %v2669_v49 = vmin.f32 %v2445_v45, 6.0  ;;  %v1681_v50 = vpop.f32.mrf.mxu2  ;;  %v1821_v51 = vpop.f32.mrf.mxu3  ;;  %v3947_v43 = vld [vmem:[%s4096_s27 + $0x178] sm:$0xff] }
 0x135   : > { %v2948_v54 = vpack.c.bf16 %v2724_v46, %v2724_v46  ;;  %v3004_v55 = vpack.c.bf16 %v2780_v47, %v2780_v47  ;;  %v2049_v56 = vmul.f32 %v4515_v37, %v1681_v50  ;;  %v2105_v57 = vmul.f32 %v4515_v37, %v1821_v51  ;;  %v1404_v58 = vpop.f32.mrf.mxu0  ;;  %v1544_v59 = vpop.f32.mrf.mxu1  ;;  %v3975_v50 = vld [vmem:[%s4096_s27 + $0x258] sm:$0xff] }
 0x136   : > { %v2837_v62 = vpack.c.bf16 %v2613_v48, %v2613_v48  ;;  %v2893_v63 = vpack.c.bf16 %v2669_v49, %v2669_v49  ;;  %v1938_v0 = vmul.f32 %v4515_v37, %v1404_v58  ;;  %v1994_v1 = vmul.f32 %v4515_v37, %v1544_v59  ;;  %v4003_v51 = vld [vmem:[%s4096_s27 + $0x338] sm:$0xff] }
 0x137   : > { %3173 = vst.msk [vmem:[%s4189_s8 + $0x208] sm:$0xf] %vm3042_vm3, %v2948_v54  ;;  %v2277_v2 = vadd.f32 %v4500_v24, %v2049_v56  ;;  %v2333_v3 = vadd.f32 %v4500_v24, %v2105_v57 }
 0x138   : > { %3229 = vst.msk [vmem:[%s4189_s8 + $0x2e8] sm:$0xf] %vm3042_vm3, %v3004_v55  ;;  %v2166_v4 = vadd.f32 %v4500_v24, %v1938_v0  ;;  %v2222_v5 = vadd.f32 %v4500_v24, %v1994_v1  ;;  %3804 = vmatmul.msk.bf16.gmra.mxu0 %vm1001_vm2, %v3918_v52  ;;  %3832 = vmatmul.msk.bf16.gmra.mxu1 %vm1001_vm2, %v3946_v53 }
 0x139   : > { %3062 = vst.msk [vmem:[%s4189_s8 + $0x4c] sm:$0xf] %vm3042_vm3, %v2837_v62  ;;  %v2501_v6 = vmax.f32 %v2277_v2, 0.0  ;;  %v2557_v7 = vmax.f32 %v2333_v3, 0.0  ;;  %3860 = vmatmul.msk.bf16.gmra.mxu2 %vm1001_vm2, %v3974_v60  ;;  %3888 = vmatmul.msk.bf16.gmra.mxu3 %vm1001_vm2, %v4002_v61 }
 0x13a   : > { %3118 = vst.msk [vmem:[%s4189_s8 + $0x12c] sm:$0xf] %vm3042_vm3, %v2893_v63  ;;  %v2390_v8 = vmax.f32 %v2166_v4, 0.0  ;;  %v2446_v9 = vmax.f32 %v2222_v5, 0.0 }
 0x13b   : > { %v2725_v10 = vmin.f32 %v2501_v6, 6.0  ;;  %v2781_v11 = vmin.f32 %v2557_v7, 6.0 }
 0x13c   : > { %v2614_v12 = vmin.f32 %v2390_v8, 6.0  ;;  %v2670_v13 = vmin.f32 %v2446_v9, 6.0  ;;  %v1684_v14 = vpop.f32.mrf.mxu2  ;;  %v1824_v15 = vpop.f32.mrf.mxu3 }
 0x13d   : > { %v2949_v16 = vpack.c.bf16 %v2725_v10, %v2725_v10  ;;  %v3005_v17 = vpack.c.bf16 %v2781_v11, %v2781_v11  ;;  %v2050_v18 = vmul.f32 %v4515_v37, %v1684_v14  ;;  %v2106_v19 = vmul.f32 %v4515_v37, %v1824_v15  ;;  %v1406_v20 = vpop.f32.mrf.mxu0  ;;  %v1546_v21 = vpop.f32.mrf.mxu1 }
 0x13e   : > { %v2838_v22 = vpack.c.bf16 %v2614_v12, %v2614_v12  ;;  %v2894_v23 = vpack.c.bf16 %v2670_v13, %v2670_v13  ;;  %v1939_v25 = vmul.f32 %v4515_v37, %v1406_v20  ;;  %v1995_v26 = vmul.f32 %v4515_v37, %v1546_v21 }
 0x13f   : > { %3174 = vst.msk [vmem:[%s4189_s8 + $0x20c] sm:$0xf] %vm3042_vm3, %v2949_v16  ;;  %v2278_v40 = vadd.f32 %v4500_v24, %v2050_v18  ;;  %v2334_v27 = vadd.f32 %v4500_v24, %v2106_v19 }
 0x140   : > { %3230 = vst.msk [vmem:[%s4189_s8 + $0x2ec] sm:$0xf] %vm3042_vm3, %v3005_v17  ;;  %v2167_v41 = vadd.f32 %v4500_v24, %v1939_v25  ;;  %v2223_v28 = vadd.f32 %v4500_v24, %v1995_v26 }
 0x141   : > { %3063 = vst.msk [vmem:[%s4189_s8 + $0x50] sm:$0xf] %vm3042_vm3, %v2838_v22  ;;  %v2502_v29 = vmax.f32 %v2278_v40, 0.0  ;;  %v2558_v30 = vmax.f32 %v2334_v27, 0.0 }
 0x142   : > { %3119 = vst.msk [vmem:[%s4189_s8 + $0x130] sm:$0xf] %vm3042_vm3, %v2894_v23  ;;  %v2391_v31 = vmax.f32 %v2167_v41, 0.0  ;;  %v2447_v32 = vmax.f32 %v2223_v28, 0.0 }
 0x143   : > { %v2726_v33 = vmin.f32 %v2502_v29, 6.0  ;;  %v2782_v34 = vmin.f32 %v2558_v30, 6.0  ;;  %v3920_v29 = vld [vmem:[%s4096_s27 + $0xa0] sm:$0xff] }
 0x144   : > { %v2615_v35 = vmin.f32 %v2391_v31, 6.0  ;;  %v2671_v36 = vmin.f32 %v2447_v32, 6.0  ;;  %v1686_v38 = vpop.f32.mrf.mxu2  ;;  %v1826_v39 = vpop.f32.mrf.mxu3  ;;  %v3948_v30 = vld [vmem:[%s4096_s27 + $0x180] sm:$0xff] }
 0x145   : > { %v2950_v44 = vpack.c.bf16 %v2726_v33, %v2726_v33  ;;  %v3006_v45 = vpack.c.bf16 %v2782_v34, %v2782_v34  ;;  %v2051_v46 = vmul.f32 %v4515_v37, %v1686_v38  ;;  %v2107_v47 = vmul.f32 %v4515_v37, %v1826_v39  ;;  %v1409_v48 = vpop.f32.mrf.mxu0  ;;  %v1549_v49 = vpop.f32.mrf.mxu1  ;;  %v3976_v38 = vld [vmem:[%s4096_s27 + $0x260] sm:$0xff] }
 0x146   : > { %v2839_v52 = vpack.c.bf16 %v2615_v35, %v2615_v35  ;;  %v2895_v53 = vpack.c.bf16 %v2671_v36, %v2671_v36  ;;  %v1940_v54 = vmul.f32 %v4515_v37, %v1409_v48  ;;  %v1996_v55 = vmul.f32 %v4515_v37, %v1549_v49  ;;  %v4004_v39 = vld [vmem:[%s4096_s27 + $0x340] sm:$0xff] }
 0x147   : > { %3175 = vst.msk [vmem:[%s4189_s8 + $0x210] sm:$0xf] %vm3042_vm3, %v2950_v44  ;;  %v2279_v56 = vadd.f32 %v4500_v24, %v2051_v46  ;;  %v2335_v57 = vadd.f32 %v4500_v24, %v2107_v47 }
 0x148   : > { %3231 = vst.msk [vmem:[%s4189_s8 + $0x2f0] sm:$0xf] %vm3042_vm3, %v3006_v45  ;;  %v2168_v58 = vadd.f32 %v4500_v24, %v1940_v54  ;;  %v2224_v59 = vadd.f32 %v4500_v24, %v1996_v55  ;;  %3805 = vmatmul.msk.bf16.gmra.mxu0 %vm1001_vm2, %v3919_v42  ;;  %3833 = vmatmul.msk.bf16.gmra.mxu1 %vm1001_vm2, %v3947_v43 }
 0x149   : > { %3064 = vst.msk [vmem:[%s4189_s8 + $0x54] sm:$0xf] %vm3042_vm3, %v2839_v52  ;;  %v2503_v60 = vmax.f32 %v2279_v56, 0.0  ;;  %v2559_v61 = vmax.f32 %v2335_v57, 0.0  ;;  %3861 = vmatmul.msk.bf16.gmra.mxu2 %vm1001_vm2, %v3975_v50  ;;  %3889 = vmatmul.msk.bf16.gmra.mxu3 %vm1001_vm2, %v4003_v51 }
 0x14a   : > { %3120 = vst.msk [vmem:[%s4189_s8 + $0x134] sm:$0xf] %vm3042_vm3, %v2895_v53  ;;  %v2392_v62 = vmax.f32 %v2168_v58, 0.0  ;;  %v2448_v63 = vmax.f32 %v2224_v59, 0.0 }
 0x14b   : > { %v2727_v0 = vmin.f32 %v2503_v60, 6.0  ;;  %v2783_v1 = vmin.f32 %v2559_v61, 6.0 }
 0x14c   : > { %v2616_v2 = vmin.f32 %v2392_v62, 6.0  ;;  %v2672_v3 = vmin.f32 %v2448_v63, 6.0  ;;  %v1689_v4 = vpop.f32.mrf.mxu2  ;;  %v1829_v5 = vpop.f32.mrf.mxu3 }
 0x14d   : > { %v2951_v6 = vpack.c.bf16 %v2727_v0, %v2727_v0  ;;  %v3007_v7 = vpack.c.bf16 %v2783_v1, %v2783_v1  ;;  %v2052_v8 = vmul.f32 %v4515_v37, %v1689_v4  ;;  %v2108_v9 = vmul.f32 %v4515_v37, %v1829_v5  ;;  %v1411_v10 = vpop.f32.mrf.mxu0  ;;  %v1551_v11 = vpop.f32.mrf.mxu1 }
 0x14e   : > { %v2840_v12 = vpack.c.bf16 %v2616_v2, %v2616_v2  ;;  %v2896_v13 = vpack.c.bf16 %v2672_v3, %v2672_v3  ;;  %v1941_v14 = vmul.f32 %v4515_v37, %v1411_v10  ;;  %v1997_v15 = vmul.f32 %v4515_v37, %v1551_v11 }
 0x14f   : > { %3176 = vst.msk [vmem:[%s4189_s8 + $0x214] sm:$0xf] %vm3042_vm3, %v2951_v6  ;;  %v2280_v16 = vadd.f32 %v4500_v24, %v2052_v8  ;;  %v2336_v17 = vadd.f32 %v4500_v24, %v2108_v9 }
 0x150   : > { %3232 = vst.msk [vmem:[%s4189_s8 + $0x2f4] sm:$0xf] %vm3042_vm3, %v3007_v7  ;;  %v2169_v18 = vadd.f32 %v4500_v24, %v1941_v14  ;;  %v2225_v19 = vadd.f32 %v4500_v24, %v1997_v15 }
 0x151   : > { %3065 = vst.msk [vmem:[%s4189_s8 + $0x58] sm:$0xf] %vm3042_vm3, %v2840_v12  ;;  %v2504_v20 = vmax.f32 %v2280_v16, 0.0  ;;  %v2560_v21 = vmax.f32 %v2336_v17, 0.0 }
 0x152   : > { %3121 = vst.msk [vmem:[%s4189_s8 + $0x138] sm:$0xf] %vm3042_vm3, %v2896_v13  ;;  %v2393_v22 = vmax.f32 %v2169_v18, 0.0  ;;  %v2449_v23 = vmax.f32 %v2225_v19, 0.0 }
 0x153   : > { %v2728_v25 = vmin.f32 %v2504_v20, 6.0  ;;  %v2784_v26 = vmin.f32 %v2560_v21, 6.0  ;;  %v3921_v20 = vld [vmem:[%s4096_s27 + $0xa8] sm:$0xff] }
 0x154   : > { %v2617_v40 = vmin.f32 %v2393_v22, 6.0  ;;  %v2673_v27 = vmin.f32 %v2449_v23, 6.0  ;;  %v1691_v41 = vpop.f32.mrf.mxu2  ;;  %v1831_v28 = vpop.f32.mrf.mxu3  ;;  %v3949_v21 = vld [vmem:[%s4096_s27 + $0x188] sm:$0xff] }
 0x155   : > { %v2952_v31 = vpack.c.bf16 %v2728_v25, %v2728_v25  ;;  %v3008_v32 = vpack.c.bf16 %v2784_v26, %v2784_v26  ;;  %v2053_v33 = vmul.f32 %v4515_v37, %v1691_v41  ;;  %v2109_v34 = vmul.f32 %v4515_v37, %v1831_v28  ;;  %v1414_v35 = vpop.f32.mrf.mxu0  ;;  %v1554_v36 = vpop.f32.mrf.mxu1  ;;  %v3977_v41 = vld [vmem:[%s4096_s27 + $0x268] sm:$0xff] }
 0x156   : > { %v2841_v42 = vpack.c.bf16 %v2617_v40, %v2617_v40  ;;  %v2897_v43 = vpack.c.bf16 %v2673_v27, %v2673_v27  ;;  %v1942_v44 = vmul.f32 %v4515_v37, %v1414_v35  ;;  %v1998_v45 = vmul.f32 %v4515_v37, %v1554_v36  ;;  %v4005_v28 = vld [vmem:[%s4096_s27 + $0x348] sm:$0xff] }
 0x157   : > { %3177 = vst.msk [vmem:[%s4189_s8 + $0x218] sm:$0xf] %vm3042_vm3, %v2952_v31  ;;  %v2281_v46 = vadd.f32 %v4500_v24, %v2053_v33  ;;  %v2337_v47 = vadd.f32 %v4500_v24, %v2109_v34 }
 0x158   : > { %3233 = vst.msk [vmem:[%s4189_s8 + $0x2f8] sm:$0xf] %vm3042_vm3, %v3008_v32  ;;  %v2170_v48 = vadd.f32 %v4500_v24, %v1942_v44  ;;  %v2226_v49 = vadd.f32 %v4500_v24, %v1998_v45  ;;  %3806 = vmatmul.msk.bf16.gmra.mxu0 %vm1001_vm2, %v3920_v29  ;;  %3834 = vmatmul.msk.bf16.gmra.mxu1 %vm1001_vm2, %v3948_v30 }
 0x159   : > { %3066 = vst.msk [vmem:[%s4189_s8 + $0x5c] sm:$0xf] %vm3042_vm3, %v2841_v42  ;;  %v2505_v50 = vmax.f32 %v2281_v46, 0.0  ;;  %v2561_v51 = vmax.f32 %v2337_v47, 0.0  ;;  %3862 = vmatmul.msk.bf16.gmra.mxu2 %vm1001_vm2, %v3976_v38  ;;  %3890 = vmatmul.msk.bf16.gmra.mxu3 %vm1001_vm2, %v4004_v39 }
 0x15a   : > { %3122 = vst.msk [vmem:[%s4189_s8 + $0x13c] sm:$0xf] %vm3042_vm3, %v2897_v43  ;;  %v2394_v52 = vmax.f32 %v2170_v48, 0.0  ;;  %v2450_v53 = vmax.f32 %v2226_v49, 0.0 }
 0x15b   : > { %v2729_v54 = vmin.f32 %v2505_v50, 6.0  ;;  %v2785_v55 = vmin.f32 %v2561_v51, 6.0 }
 0x15c   : > { %v2618_v56 = vmin.f32 %v2394_v52, 6.0  ;;  %v2674_v57 = vmin.f32 %v2450_v53, 6.0  ;;  %v1694_v58 = vpop.f32.mrf.mxu2  ;;  %v1834_v59 = vpop.f32.mrf.mxu3 }
 0x15d   : > { %v2953_v60 = vpack.c.bf16 %v2729_v54, %v2729_v54  ;;  %v3009_v61 = vpack.c.bf16 %v2785_v55, %v2785_v55  ;;  %v2054_v62 = vmul.f32 %v4515_v37, %v1694_v58  ;;  %v2110_v63 = vmul.f32 %v4515_v37, %v1834_v59  ;;  %v1416_v0 = vpop.f32.mrf.mxu0  ;;  %v1556_v1 = vpop.f32.mrf.mxu1 }
 0x15e   : > { %v2842_v2 = vpack.c.bf16 %v2618_v56, %v2618_v56  ;;  %v2898_v3 = vpack.c.bf16 %v2674_v57, %v2674_v57  ;;  %v1943_v4 = vmul.f32 %v4515_v37, %v1416_v0  ;;  %v1999_v5 = vmul.f32 %v4515_v37, %v1556_v1 }
 0x15f   : > { %3178 = vst.msk [vmem:[%s4189_s8 + $0x21c] sm:$0xf] %vm3042_vm3, %v2953_v60  ;;  %v2282_v6 = vadd.f32 %v4500_v24, %v2054_v62  ;;  %v2338_v7 = vadd.f32 %v4500_v24, %v2110_v63 }
 0x160   : > { %3234 = vst.msk [vmem:[%s4189_s8 + $0x2fc] sm:$0xf] %vm3042_vm3, %v3009_v61  ;;  %v2171_v8 = vadd.f32 %v4500_v24, %v1943_v4  ;;  %v2227_v9 = vadd.f32 %v4500_v24, %v1999_v5 }
 0x161   : > { %3067 = vst.msk [vmem:[%s4189_s8 + $0x60] sm:$0xf] %vm3042_vm3, %v2842_v2  ;;  %v2506_v10 = vmax.f32 %v2282_v6, 0.0  ;;  %v2562_v11 = vmax.f32 %v2338_v7, 0.0 }
 0x162   : > { %3123 = vst.msk [vmem:[%s4189_s8 + $0x140] sm:$0xf] %vm3042_vm3, %v2898_v3  ;;  %v2395_v12 = vmax.f32 %v2171_v8, 0.0  ;;  %v2451_v13 = vmax.f32 %v2227_v9, 0.0 }
 0x163   : > { %v2730_v14 = vmin.f32 %v2506_v10, 6.0  ;;  %v2786_v15 = vmin.f32 %v2562_v11, 6.0  ;;  %v3922_v10 = vld [vmem:[%s4096_s27 + $0xb0] sm:$0xff] }
 0x164   : > { %v2619_v16 = vmin.f32 %v2395_v12, 6.0  ;;  %v2675_v17 = vmin.f32 %v2451_v13, 6.0  ;;  %v1696_v18 = vpop.f32.mrf.mxu2  ;;  %v1836_v19 = vpop.f32.mrf.mxu3  ;;  %v3950_v11 = vld [vmem:[%s4096_s27 + $0x190] sm:$0xff] }
 0x165   : > { %v2954_v22 = vpack.c.bf16 %v2730_v14, %v2730_v14  ;;  %v3010_v23 = vpack.c.bf16 %v2786_v15, %v2786_v15  ;;  %v2055_v25 = vmul.f32 %v4515_v37, %v1696_v18  ;;  %v2111_v26 = vmul.f32 %v4515_v37, %v1836_v19  ;;  %v1419_v40 = vpop.f32.mrf.mxu0  ;;  %v1559_v27 = vpop.f32.mrf.mxu1  ;;  %v3978_v18 = vld [vmem:[%s4096_s27 + $0x270] sm:$0xff] }
 0x166   : > { %v2843_v29 = vpack.c.bf16 %v2619_v16, %v2619_v16  ;;  %v2899_v30 = vpack.c.bf16 %v2675_v17, %v2675_v17  ;;  %v1944_v31 = vmul.f32 %v4515_v37, %v1419_v40  ;;  %v2000_v32 = vmul.f32 %v4515_v37, %v1559_v27  ;;  %v4006_v19 = vld [vmem:[%s4096_s27 + $0x350] sm:$0xff] }
 0x167   : > { %3179 = vst.msk [vmem:[%s4189_s8 + $0x220] sm:$0xf] %vm3042_vm3, %v2954_v22  ;;  %v2283_v33 = vadd.f32 %v4500_v24, %v2055_v25  ;;  %v2339_v34 = vadd.f32 %v4500_v24, %v2111_v26 }
 0x168   : > { %3235 = vst.msk [vmem:[%s4189_s8 + $0x300] sm:$0xf] %vm3042_vm3, %v3010_v23  ;;  %v2172_v35 = vadd.f32 %v4500_v24, %v1944_v31  ;;  %v2228_v36 = vadd.f32 %v4500_v24, %v2000_v32  ;;  %3807 = vmatmul.msk.bf16.gmra.mxu0 %vm1001_vm2, %v3921_v20  ;;  %3835 = vmatmul.msk.bf16.gmra.mxu1 %vm1001_vm2, %v3949_v21 }
 0x169   : > { %3068 = vst.msk [vmem:[%s4189_s8 + $0x64] sm:$0xf] %vm3042_vm3, %v2843_v29  ;;  %v2507_v38 = vmax.f32 %v2283_v33, 0.0  ;;  %v2563_v39 = vmax.f32 %v2339_v34, 0.0  ;;  %3863 = vmatmul.msk.bf16.gmra.mxu2 %vm1001_vm2, %v3977_v41  ;;  %3891 = vmatmul.msk.bf16.gmra.mxu3 %vm1001_vm2, %v4005_v28 }
 0x16a   : > { %3124 = vst.msk [vmem:[%s4189_s8 + $0x144] sm:$0xf] %vm3042_vm3, %v2899_v30  ;;  %v2396_v42 = vmax.f32 %v2172_v35, 0.0  ;;  %v2452_v43 = vmax.f32 %v2228_v36, 0.0 }
 0x16b   : > { %v2731_v44 = vmin.f32 %v2507_v38, 6.0  ;;  %v2787_v45 = vmin.f32 %v2563_v39, 6.0 }
 0x16c   : > { %v2620_v46 = vmin.f32 %v2396_v42, 6.0  ;;  %v2676_v47 = vmin.f32 %v2452_v43, 6.0  ;;  %v1699_v48 = vpop.f32.mrf.mxu2  ;;  %v1839_v49 = vpop.f32.mrf.mxu3 }
 0x16d   : > { %v2955_v50 = vpack.c.bf16 %v2731_v44, %v2731_v44  ;;  %v3011_v51 = vpack.c.bf16 %v2787_v45, %v2787_v45  ;;  %v2056_v52 = vmul.f32 %v4515_v37, %v1699_v48  ;;  %v2112_v53 = vmul.f32 %v4515_v37, %v1839_v49  ;;  %v1421_v54 = vpop.f32.mrf.mxu0  ;;  %v1561_v55 = vpop.f32.mrf.mxu1 }
 0x16e   : > { %v2844_v56 = vpack.c.bf16 %v2620_v46, %v2620_v46  ;;  %v2900_v57 = vpack.c.bf16 %v2676_v47, %v2676_v47  ;;  %v1945_v58 = vmul.f32 %v4515_v37, %v1421_v54  ;;  %v2001_v59 = vmul.f32 %v4515_v37, %v1561_v55 }
 0x16f   : > { %3180 = vst.msk [vmem:[%s4189_s8 + $0x224] sm:$0xf] %vm3042_vm3, %v2955_v50  ;;  %v2284_v60 = vadd.f32 %v4500_v24, %v2056_v52  ;;  %v2340_v61 = vadd.f32 %v4500_v24, %v2112_v53 }
 0x170   : > { %3236 = vst.msk [vmem:[%s4189_s8 + $0x304] sm:$0xf] %vm3042_vm3, %v3011_v51  ;;  %v2173_v62 = vadd.f32 %v4500_v24, %v1945_v58  ;;  %v2229_v63 = vadd.f32 %v4500_v24, %v2001_v59 }
 0x171   : > { %3069 = vst.msk [vmem:[%s4189_s8 + $0x68] sm:$0xf] %vm3042_vm3, %v2844_v56  ;;  %v2508_v0 = vmax.f32 %v2284_v60, 0.0  ;;  %v2564_v1 = vmax.f32 %v2340_v61, 0.0 }
 0x172   : > { %3125 = vst.msk [vmem:[%s4189_s8 + $0x148] sm:$0xf] %vm3042_vm3, %v2900_v57  ;;  %v2397_v2 = vmax.f32 %v2173_v62, 0.0  ;;  %v2453_v3 = vmax.f32 %v2229_v63, 0.0 }
 0x173   : > { %v2732_v4 = vmin.f32 %v2508_v0, 6.0  ;;  %v2788_v5 = vmin.f32 %v2564_v1, 6.0  ;;  %v3923_v0 = vld [vmem:[%s4096_s27 + $0xb8] sm:$0xff] }
 0x174   : > { %v2621_v6 = vmin.f32 %v2397_v2, 6.0  ;;  %v2677_v7 = vmin.f32 %v2453_v3, 6.0  ;;  %v1701_v8 = vpop.f32.mrf.mxu2  ;;  %v1841_v9 = vpop.f32.mrf.mxu3  ;;  %v3951_v1 = vld [vmem:[%s4096_s27 + $0x198] sm:$0xff] }
 0x175   : > { %v2956_v12 = vpack.c.bf16 %v2732_v4, %v2732_v4  ;;  %v3012_v13 = vpack.c.bf16 %v2788_v5, %v2788_v5  ;;  %v2057_v14 = vmul.f32 %v4515_v37, %v1701_v8  ;;  %v2113_v15 = vmul.f32 %v4515_v37, %v1841_v9  ;;  %v1424_v16 = vpop.f32.mrf.mxu0  ;;  %v1564_v17 = vpop.f32.mrf.mxu1  ;;  %v3979_v8 = vld [vmem:[%s4096_s27 + $0x278] sm:$0xff] }
 0x176   : > { %v2845_v20 = vpack.c.bf16 %v2621_v6, %v2621_v6  ;;  %v2901_v21 = vpack.c.bf16 %v2677_v7, %v2677_v7  ;;  %v1946_v22 = vmul.f32 %v4515_v37, %v1424_v16  ;;  %v2002_v23 = vmul.f32 %v4515_v37, %v1564_v17  ;;  %v4007_v9 = vld [vmem:[%s4096_s27 + $0x358] sm:$0xff] }
 0x177   : > { %3181 = vst.msk [vmem:[%s4189_s8 + $0x228] sm:$0xf] %vm3042_vm3, %v2956_v12  ;;  %v2285_v25 = vadd.f32 %v4500_v24, %v2057_v14  ;;  %v2341_v26 = vadd.f32 %v4500_v24, %v2113_v15 }
 0x178   : > { %3237 = vst.msk [vmem:[%s4189_s8 + $0x308] sm:$0xf] %vm3042_vm3, %v3012_v13  ;;  %v2174_v40 = vadd.f32 %v4500_v24, %v1946_v22  ;;  %v2230_v27 = vadd.f32 %v4500_v24, %v2002_v23  ;;  %3808 = vmatmul.msk.bf16.gmra.mxu0 %vm1001_vm2, %v3922_v10  ;;  %3836 = vmatmul.msk.bf16.gmra.mxu1 %vm1001_vm2, %v3950_v11 }
 0x179   : > { %3070 = vst.msk [vmem:[%s4189_s8 + $0x6c] sm:$0xf] %vm3042_vm3, %v2845_v20  ;;  %v2509_v41 = vmax.f32 %v2285_v25, 0.0  ;;  %v2565_v28 = vmax.f32 %v2341_v26, 0.0  ;;  %3864 = vmatmul.msk.bf16.gmra.mxu2 %vm1001_vm2, %v3978_v18  ;;  %3892 = vmatmul.msk.bf16.gmra.mxu3 %vm1001_vm2, %v4006_v19 }
 0x17a   : > { %3126 = vst.msk [vmem:[%s4189_s8 + $0x14c] sm:$0xf] %vm3042_vm3, %v2901_v21  ;;  %v2398_v29 = vmax.f32 %v2174_v40, 0.0  ;;  %v2454_v30 = vmax.f32 %v2230_v27, 0.0 }
 0x17b   : > { %v2733_v31 = vmin.f32 %v2509_v41, 6.0  ;;  %v2789_v32 = vmin.f32 %v2565_v28, 6.0 }
 0x17c   : > { %v2622_v33 = vmin.f32 %v2398_v29, 6.0  ;;  %v2678_v34 = vmin.f32 %v2454_v30, 6.0  ;;  %v1704_v35 = vpop.f32.mrf.mxu2  ;;  %v1844_v36 = vpop.f32.mrf.mxu3 }
 0x17d   : > { %v2957_v38 = vpack.c.bf16 %v2733_v31, %v2733_v31  ;;  %v3013_v39 = vpack.c.bf16 %v2789_v32, %v2789_v32  ;;  %v2058_v42 = vmul.f32 %v4515_v37, %v1704_v35  ;;  %v2114_v43 = vmul.f32 %v4515_v37, %v1844_v36  ;;  %v1426_v44 = vpop.f32.mrf.mxu0  ;;  %v1566_v45 = vpop.f32.mrf.mxu1 }
 0x17e   : > { %v2846_v46 = vpack.c.bf16 %v2622_v33, %v2622_v33  ;;  %v2902_v47 = vpack.c.bf16 %v2678_v34, %v2678_v34  ;;  %v1947_v48 = vmul.f32 %v4515_v37, %v1426_v44  ;;  %v2003_v49 = vmul.f32 %v4515_v37, %v1566_v45 }
 0x17f   : > { %3182 = vst.msk [vmem:[%s4189_s8 + $0x22c] sm:$0xf] %vm3042_vm3, %v2957_v38  ;;  %v2286_v50 = vadd.f32 %v4500_v24, %v2058_v42  ;;  %v2342_v51 = vadd.f32 %v4500_v24, %v2114_v43 }
 0x180   : > { %3238 = vst.msk [vmem:[%s4189_s8 + $0x30c] sm:$0xf] %vm3042_vm3, %v3013_v39  ;;  %v2175_v52 = vadd.f32 %v4500_v24, %v1947_v48  ;;  %v2231_v53 = vadd.f32 %v4500_v24, %v2003_v49 }
 0x181   : > { %3071 = vst.msk [vmem:[%s4189_s8 + $0x70] sm:$0xf] %vm3042_vm3, %v2846_v46  ;;  %v2510_v54 = vmax.f32 %v2286_v50, 0.0  ;;  %v2566_v55 = vmax.f32 %v2342_v51, 0.0 }
 0x182   : > { %3127 = vst.msk [vmem:[%s4189_s8 + $0x150] sm:$0xf] %vm3042_vm3, %v2902_v47  ;;  %v2399_v56 = vmax.f32 %v2175_v52, 0.0  ;;  %v2455_v57 = vmax.f32 %v2231_v53, 0.0 }
 0x183   : > { %v2734_v58 = vmin.f32 %v2510_v54, 6.0  ;;  %v2790_v59 = vmin.f32 %v2566_v55, 6.0  ;;  %v3924_v54 = vld [vmem:[%s4096_s27 + $0xc0] sm:$0xff] }
 0x184   : > { %v2623_v60 = vmin.f32 %v2399_v56, 6.0  ;;  %v2679_v61 = vmin.f32 %v2455_v57, 6.0  ;;  %v1706_v62 = vpop.f32.mrf.mxu2  ;;  %v1846_v63 = vpop.f32.mrf.mxu3  ;;  %v3952_v55 = vld [vmem:[%s4096_s27 + $0x1a0] sm:$0xff] }
 0x185   : > { %v2958_v2 = vpack.c.bf16 %v2734_v58, %v2734_v58  ;;  %v3014_v3 = vpack.c.bf16 %v2790_v59, %v2790_v59  ;;  %v2059_v4 = vmul.f32 %v4515_v37, %v1706_v62  ;;  %v2115_v5 = vmul.f32 %v4515_v37, %v1846_v63  ;;  %v1429_v6 = vpop.f32.mrf.mxu0  ;;  %v1569_v7 = vpop.f32.mrf.mxu1  ;;  %v3980_v62 = vld [vmem:[%s4096_s27 + $0x280] sm:$0xff] }
 0x186   : > { %v2847_v10 = vpack.c.bf16 %v2623_v60, %v2623_v60  ;;  %v2903_v11 = vpack.c.bf16 %v2679_v61, %v2679_v61  ;;  %v1948_v12 = vmul.f32 %v4515_v37, %v1429_v6  ;;  %v2004_v13 = vmul.f32 %v4515_v37, %v1569_v7  ;;  %v4008_v63 = vld [vmem:[%s4096_s27 + $0x360] sm:$0xff] }
 0x187   : > { %3183 = vst.msk [vmem:[%s4189_s8 + $0x230] sm:$0xf] %vm3042_vm3, %v2958_v2  ;;  %v2287_v14 = vadd.f32 %v4500_v24, %v2059_v4  ;;  %v2343_v15 = vadd.f32 %v4500_v24, %v2115_v5  ;;  %v4830_v6 = vld [vmem:[%s5271_s3] ss:$0 sm:$0xff] }
 0x188   : > { %3239 = vst.msk [vmem:[%s4189_s8 + $0x310] sm:$0xf] %vm3042_vm3, %v3014_v3  ;;  %v2176_v16 = vadd.f32 %v4500_v24, %v1948_v12  ;;  %v2232_v17 = vadd.f32 %v4500_v24, %v2004_v13  ;;  %3809 = vmatmul.msk.bf16.gmra.mxu0 %vm1001_vm2, %v3923_v0  ;;  %3837 = vmatmul.msk.bf16.gmra.mxu1 %vm1001_vm2, %v3951_v1 }
 0x189   : > { %3072 = vst.msk [vmem:[%s4189_s8 + $0x74] sm:$0xf] %vm3042_vm3, %v2847_v10  ;;  %v2511_v18 = vmax.f32 %v2287_v14, 0.0  ;;  %v2567_v19 = vmax.f32 %v2343_v15, 0.0  ;;  %3865 = vmatmul.msk.bf16.gmra.mxu2 %vm1001_vm2, %v3979_v8  ;;  %3893 = vmatmul.msk.bf16.gmra.mxu3 %vm1001_vm2, %v4007_v9 }
 0x18a   : > { %3128 = vst.msk [vmem:[%s4189_s8 + $0x154] sm:$0xf] %vm3042_vm3, %v2903_v11  ;;  %v2400_v20 = vmax.f32 %v2176_v16, 0.0  ;;  %v2456_v21 = vmax.f32 %v2232_v17, 0.0 }
 0x18b   : > { %v2735_v22 = vmin.f32 %v2511_v18, 6.0  ;;  %v2791_v23 = vmin.f32 %v2567_v19, 6.0  ;;  %v4845_v19 = vld [vmem:[%s5270_s2] ss:$0 sm:$0xff] }
 0x18c   : > { %v2624_v25 = vmin.f32 %v2400_v20, 6.0  ;;  %v2680_v26 = vmin.f32 %v2456_v21, 6.0  ;;  %v1709_v40 = vpop.f32.mrf.mxu2  ;;  %v1849_v27 = vpop.f32.mrf.mxu3 }
 0x18d   : > { %v2959_v41 = vpack.c.bf16 %v2735_v22, %v2735_v22  ;;  %v3015_v28 = vpack.c.bf16 %v2791_v23, %v2791_v23  ;;  %v2060_v29 = vmul.f32 %v4515_v37, %v1709_v40  ;;  %v2116_v30 = vmul.f32 %v4515_v37, %v1849_v27  ;;  %v1431_v31 = vpop.f32.mrf.mxu0  ;;  %v1571_v32 = vpop.f32.mrf.mxu1 }
 0x18e   : > { %v2848_v33 = vpack.c.bf16 %v2624_v25, %v2624_v25  ;;  %v2904_v34 = vpack.c.bf16 %v2680_v26, %v2680_v26  ;;  %v1949_v35 = vmul.f32 %v4515_v37, %v1431_v31  ;;  %v2005_v36 = vmul.f32 %v4515_v37, %v1571_v32 }
 0x18f   : > { %3184 = vst.msk [vmem:[%s4189_s8 + $0x234] sm:$0xf] %vm3042_vm3, %v2959_v41  ;;  %v2288_v38 = vadd.f32 %v4500_v24, %v2060_v29  ;;  %v2344_v39 = vadd.f32 %v4500_v24, %v2116_v30 }
 0x190   : > { %3240 = vst.msk [vmem:[%s4189_s8 + $0x314] sm:$0xf] %vm3042_vm3, %v3015_v28  ;;  %v2177_v42 = vadd.f32 %v4500_v24, %v1949_v35  ;;  %v2233_v43 = vadd.f32 %v4500_v24, %v2005_v36 }
 0x191   : > { %3073 = vst.msk [vmem:[%s4189_s8 + $0x78] sm:$0xf] %vm3042_vm3, %v2848_v33  ;;  %v2512_v44 = vmax.f32 %v2288_v38, 0.0  ;;  %v2568_v45 = vmax.f32 %v2344_v39, 0.0 }
 0x192   : > { %3129 = vst.msk [vmem:[%s4189_s8 + $0x158] sm:$0xf] %vm3042_vm3, %v2904_v34  ;;  %v2401_v46 = vmax.f32 %v2177_v42, 0.0  ;;  %v2457_v47 = vmax.f32 %v2233_v43, 0.0 }
 0x193   : > { %v2736_v48 = vmin.f32 %v2512_v44, 6.0  ;;  %v2792_v49 = vmin.f32 %v2568_v45, 6.0  ;;  %v3925_v44 = vld [vmem:[%s4096_s27 + $0xc8] sm:$0xff] }
 0x194   : > { %v2625_v50 = vmin.f32 %v2401_v46, 6.0  ;;  %v2681_v51 = vmin.f32 %v2457_v47, 6.0  ;;  %v1711_v52 = vpop.f32.mrf.mxu2  ;;  %v1851_v53 = vpop.f32.mrf.mxu3  ;;  %v3953_v45 = vld [vmem:[%s4096_s27 + $0x1a8] sm:$0xff] }
 0x195   : > { %v2960_v56 = vpack.c.bf16 %v2736_v48, %v2736_v48  ;;  %v3016_v57 = vpack.c.bf16 %v2792_v49, %v2792_v49  ;;  %v2061_v58 = vmul.f32 %v4515_v37, %v1711_v52  ;;  %v2117_v59 = vmul.f32 %v4515_v37, %v1851_v53  ;;  %v1434_v60 = vpop.f32.mrf.mxu0  ;;  %v1574_v61 = vpop.f32.mrf.mxu1  ;;  %v3981_v52 = vld [vmem:[%s4096_s27 + $0x288] sm:$0xff] }
 0x196   : > { %v2849_v0 = vpack.c.bf16 %v2625_v50, %v2625_v50  ;;  %v2905_v1 = vpack.c.bf16 %v2681_v51, %v2681_v51  ;;  %v1950_v2 = vmul.f32 %v4515_v37, %v1434_v60  ;;  %v2006_v3 = vmul.f32 %v4515_v37, %v1574_v61  ;;  %v4009_v53 = vld [vmem:[%s4096_s27 + $0x368] sm:$0xff] }
 0x197   : > { %3185 = vst.msk [vmem:[%s4189_s8 + $0x238] sm:$0xf] %vm3042_vm3, %v2960_v56  ;;  %v2289_v4 = vadd.f32 %v4500_v24, %v2061_v58  ;;  %v2345_v5 = vadd.f32 %v4500_v24, %v2117_v59 }
 0x198   : > { %3241 = vst.msk [vmem:[%s4189_s8 + $0x318] sm:$0xf] %vm3042_vm3, %v3016_v57  ;;  %v2178_v7 = vadd.f32 %v4830_v6, %v1950_v2  ;;  %v2234_v8 = vadd.f32 %v4830_v6, %v2006_v3  ;;  %3810 = vmatmul.msk.bf16.gmra.mxu0 %vm1001_vm2, %v3924_v54  ;;  %3838 = vmatmul.msk.bf16.gmra.mxu1 %vm1001_vm2, %v3952_v55 }
 0x199   : > { %3074 = vst.msk [vmem:[%s4189_s8 + $0x7c] sm:$0xf] %vm3042_vm3, %v2849_v0  ;;  %v2513_v37 = vmax.f32 %v2289_v4, 0.0  ;;  %v2569_v9 = vmax.f32 %v2345_v5, 0.0  ;;  %3866 = vmatmul.msk.bf16.gmra.mxu2 %vm1001_vm2, %v3980_v62  ;;  %3894 = vmatmul.msk.bf16.gmra.mxu3 %vm1001_vm2, %v4008_v63 }
 0x19a   : > { %3130 = vst.msk [vmem:[%s4189_s8 + $0x15c] sm:$0xf] %vm3042_vm3, %v2905_v1  ;;  %v2402_v24 = vmax.f32 %v2178_v7, 0.0  ;;  %v2458_v10 = vmax.f32 %v2234_v8, 0.0 }
 0x19b   : > { %v2737_v11 = vmin.f32 %v2513_v37, 6.0  ;;  %v2793_v12 = vmin.f32 %v2569_v9, 6.0 }
 0x19c   : > { %v2626_v13 = vmin.f32 %v2402_v24, 6.0  ;;  %v2682_v14 = vmin.f32 %v2458_v10, 6.0  ;;  %v1714_v15 = vpop.f32.mrf.mxu2  ;;  %v1854_v16 = vpop.f32.mrf.mxu3 }
 0x19d   : > { %v2961_v17 = vpack.c.bf16 %v2737_v11, %v2737_v11  ;;  %v3017_v18 = vpack.c.bf16 %v2793_v12, %v2793_v12  ;;  %v2062_v20 = vmul.f32 %v4845_v19, %v1714_v15  ;;  %v2118_v21 = vmul.f32 %v4845_v19, %v1854_v16  ;;  %v1436_v22 = vpop.f32.mrf.mxu0  ;;  %v1576_v23 = vpop.f32.mrf.mxu1 }
 0x19e   : > { %v2850_v25 = vpack.c.bf16 %v2626_v13, %v2626_v13  ;;  %v2906_v26 = vpack.c.bf16 %v2682_v14, %v2682_v14  ;;  %v1951_v40 = vmul.f32 %v4845_v19, %v1436_v22  ;;  %v2007_v27 = vmul.f32 %v4845_v19, %v1576_v23 }
 0x19f   : > { %3186 = vst.msk [vmem:[%s4189_s8 + $0x23c] sm:$0xf] %vm3042_vm3, %v2961_v17  ;;  %v2290_v41 = vadd.f32 %v4830_v6, %v2062_v20  ;;  %v2346_v28 = vadd.f32 %v4830_v6, %v2118_v21 }
 0x1a0   : > { %3242 = vst.msk [vmem:[%s4189_s8 + $0x31c] sm:$0xf] %vm3042_vm3, %v3017_v18  ;;  %v2179_v29 = vadd.f32 %v4830_v6, %v1951_v40  ;;  %v2235_v30 = vadd.f32 %v4830_v6, %v2007_v27 }
 0x1a1   : > { %3075 = vst.msk [vmem:[%s4189_s8 + $0x80] sm:$0xf] %vm3042_vm3, %v2850_v25  ;;  %v2514_v31 = vmax.f32 %v2290_v41, 0.0  ;;  %v2570_v32 = vmax.f32 %v2346_v28, 0.0 }
 0x1a2   : > { %3131 = vst.msk [vmem:[%s4189_s8 + $0x160] sm:$0xf] %vm3042_vm3, %v2906_v26  ;;  %v2403_v33 = vmax.f32 %v2179_v29, 0.0  ;;  %v2459_v34 = vmax.f32 %v2235_v30, 0.0 }
 0x1a3   : > { %v2738_v35 = vmin.f32 %v2514_v31, 6.0  ;;  %v2794_v36 = vmin.f32 %v2570_v32, 6.0  ;;  %v3926_v31 = vld [vmem:[%s4096_s27 + $0xd0] sm:$0xff] }
 0x1a4   : > { %v2627_v38 = vmin.f32 %v2403_v33, 6.0  ;;  %v2683_v39 = vmin.f32 %v2459_v34, 6.0  ;;  %v1716_v42 = vpop.f32.mrf.mxu2  ;;  %v1856_v43 = vpop.f32.mrf.mxu3  ;;  %v3954_v32 = vld [vmem:[%s4096_s27 + $0x1b0] sm:$0xff] }
 0x1a5   : > { %v2962_v46 = vpack.c.bf16 %v2738_v35, %v2738_v35  ;;  %v3018_v47 = vpack.c.bf16 %v2794_v36, %v2794_v36  ;;  %v2063_v48 = vmul.f32 %v4845_v19, %v1716_v42  ;;  %v2119_v49 = vmul.f32 %v4845_v19, %v1856_v43  ;;  %v1439_v50 = vpop.f32.mrf.mxu0  ;;  %v1579_v51 = vpop.f32.mrf.mxu1  ;;  %v3982_v42 = vld [vmem:[%s4096_s27 + $0x290] sm:$0xff] }
 0x1a6   : > { %v2851_v54 = vpack.c.bf16 %v2627_v38, %v2627_v38  ;;  %v2907_v55 = vpack.c.bf16 %v2683_v39, %v2683_v39  ;;  %v1952_v56 = vmul.f32 %v4845_v19, %v1439_v50  ;;  %v2008_v57 = vmul.f32 %v4845_v19, %v1579_v51  ;;  %v4010_v43 = vld [vmem:[%s4096_s27 + $0x370] sm:$0xff] }
 0x1a7   : > { %3187 = vst.msk [vmem:[%s4189_s8 + $0x240] sm:$0xf] %vm3042_vm3, %v2962_v46  ;;  %v2291_v58 = vadd.f32 %v4830_v6, %v2063_v48  ;;  %v2347_v59 = vadd.f32 %v4830_v6, %v2119_v49 }
 0x1a8   : > { %3243 = vst.msk [vmem:[%s4189_s8 + $0x320] sm:$0xf] %vm3042_vm3, %v3018_v47  ;;  %v2180_v60 = vadd.f32 %v4830_v6, %v1952_v56  ;;  %v2236_v61 = vadd.f32 %v4830_v6, %v2008_v57  ;;  %3811 = vmatmul.msk.bf16.gmra.mxu0 %vm1001_vm2, %v3925_v44  ;;  %3839 = vmatmul.msk.bf16.gmra.mxu1 %vm1001_vm2, %v3953_v45 }
 0x1a9   : > { %3076 = vst.msk [vmem:[%s4189_s8 + $0x84] sm:$0xf] %vm3042_vm3, %v2851_v54  ;;  %v2515_v62 = vmax.f32 %v2291_v58, 0.0  ;;  %v2571_v63 = vmax.f32 %v2347_v59, 0.0  ;;  %3867 = vmatmul.msk.bf16.gmra.mxu2 %vm1001_vm2, %v3981_v52  ;;  %3895 = vmatmul.msk.bf16.gmra.mxu3 %vm1001_vm2, %v4009_v53 }
 0x1aa   : > { %3132 = vst.msk [vmem:[%s4189_s8 + $0x164] sm:$0xf] %vm3042_vm3, %v2907_v55  ;;  %v2404_v0 = vmax.f32 %v2180_v60, 0.0  ;;  %v2460_v1 = vmax.f32 %v2236_v61, 0.0 }
 0x1ab   : > { %v2739_v2 = vmin.f32 %v2515_v62, 6.0  ;;  %v2795_v3 = vmin.f32 %v2571_v63, 6.0 }
 0x1ac   : > { %v2628_v4 = vmin.f32 %v2404_v0, 6.0  ;;  %v2684_v5 = vmin.f32 %v2460_v1, 6.0  ;;  %v1719_v7 = vpop.f32.mrf.mxu2  ;;  %v1859_v8 = vpop.f32.mrf.mxu3 }
 0x1ad   : > { %v2963_v37 = vpack.c.bf16 %v2739_v2, %v2739_v2  ;;  %v3019_v9 = vpack.c.bf16 %v2795_v3, %v2795_v3  ;;  %v2064_v24 = vmul.f32 %v4845_v19, %v1719_v7  ;;  %v2120_v10 = vmul.f32 %v4845_v19, %v1859_v8  ;;  %v1441_v11 = vpop.f32.mrf.mxu0  ;;  %v1581_v12 = vpop.f32.mrf.mxu1 }
 0x1ae   : > { %v2852_v13 = vpack.c.bf16 %v2628_v4, %v2628_v4  ;;  %v2908_v14 = vpack.c.bf16 %v2684_v5, %v2684_v5  ;;  %v1953_v15 = vmul.f32 %v4845_v19, %v1441_v11  ;;  %v2009_v16 = vmul.f32 %v4845_v19, %v1581_v12 }
 0x1af   : > { %3188 = vst.msk [vmem:[%s4189_s8 + $0x244] sm:$0xf] %vm3042_vm3, %v2963_v37  ;;  %v2292_v17 = vadd.f32 %v4830_v6, %v2064_v24  ;;  %v2348_v18 = vadd.f32 %v4830_v6, %v2120_v10 }
 0x1b0   : > { %3244 = vst.msk [vmem:[%s4189_s8 + $0x324] sm:$0xf] %vm3042_vm3, %v3019_v9  ;;  %v2181_v20 = vadd.f32 %v4830_v6, %v1953_v15  ;;  %v2237_v21 = vadd.f32 %v4830_v6, %v2009_v16 }
 0x1b1   : > { %3077 = vst.msk [vmem:[%s4189_s8 + $0x88] sm:$0xf] %vm3042_vm3, %v2852_v13  ;;  %v2516_v22 = vmax.f32 %v2292_v17, 0.0  ;;  %v2572_v23 = vmax.f32 %v2348_v18, 0.0 }
 0x1b2   : > { %3133 = vst.msk [vmem:[%s4189_s8 + $0x168] sm:$0xf] %vm3042_vm3, %v2908_v14  ;;  %v2405_v25 = vmax.f32 %v2181_v20, 0.0  ;;  %v2461_v26 = vmax.f32 %v2237_v21, 0.0 }
 0x1b3   : > { %v2740_v40 = vmin.f32 %v2516_v22, 6.0  ;;  %v2796_v27 = vmin.f32 %v2572_v23, 6.0  ;;  %v3927_v22 = vld [vmem:[%s4096_s27 + $0xd8] sm:$0xff] }
 0x1b4   : > { %v2629_v41 = vmin.f32 %v2405_v25, 6.0  ;;  %v2685_v28 = vmin.f32 %v2461_v26, 6.0  ;;  %v1721_v29 = vpop.f32.mrf.mxu2  ;;  %v1861_v30 = vpop.f32.mrf.mxu3  ;;  %v3955_v23 = vld [vmem:[%s4096_s27 + $0x1b8] sm:$0xff] }
 0x1b5   : > { %v2964_v33 = vpack.c.bf16 %v2740_v40, %v2740_v40  ;;  %v3020_v34 = vpack.c.bf16 %v2796_v27, %v2796_v27  ;;  %v2065_v35 = vmul.f32 %v4845_v19, %v1721_v29  ;;  %v2121_v36 = vmul.f32 %v4845_v19, %v1861_v30  ;;  %v1444_v38 = vpop.f32.mrf.mxu0  ;;  %v1584_v39 = vpop.f32.mrf.mxu1  ;;  %v3983_v29 = vld [vmem:[%s4096_s27 + $0x298] sm:$0xff] }
 0x1b6   : > { %v2853_v44 = vpack.c.bf16 %v2629_v41, %v2629_v41  ;;  %v2909_v45 = vpack.c.bf16 %v2685_v28, %v2685_v28  ;;  %v1954_v46 = vmul.f32 %v4845_v19, %v1444_v38  ;;  %v2010_v47 = vmul.f32 %v4845_v19, %v1584_v39  ;;  %v4011_v30 = vld [vmem:[%s4096_s27 + $0x378] sm:$0xff] }
 0x1b7   : > { %3189 = vst.msk [vmem:[%s4189_s8 + $0x248] sm:$0xf] %vm3042_vm3, %v2964_v33  ;;  %v2293_v48 = vadd.f32 %v4830_v6, %v2065_v35  ;;  %v2349_v49 = vadd.f32 %v4830_v6, %v2121_v36 }
 0x1b8   : > { %3245 = vst.msk [vmem:[%s4189_s8 + $0x328] sm:$0xf] %vm3042_vm3, %v3020_v34  ;;  %v2182_v50 = vadd.f32 %v4830_v6, %v1954_v46  ;;  %v2238_v51 = vadd.f32 %v4830_v6, %v2010_v47  ;;  %3812 = vmatmul.msk.bf16.gmra.mxu0 %vm1001_vm2, %v3926_v31  ;;  %3840 = vmatmul.msk.bf16.gmra.mxu1 %vm1001_vm2, %v3954_v32 }
 0x1b9   : > { %3078 = vst.msk [vmem:[%s4189_s8 + $0x8c] sm:$0xf] %vm3042_vm3, %v2853_v44  ;;  %v2517_v52 = vmax.f32 %v2293_v48, 0.0  ;;  %v2573_v53 = vmax.f32 %v2349_v49, 0.0  ;;  %3868 = vmatmul.msk.bf16.gmra.mxu2 %vm1001_vm2, %v3982_v42  ;;  %3896 = vmatmul.msk.bf16.gmra.mxu3 %vm1001_vm2, %v4010_v43 }
 0x1ba   : > { %3134 = vst.msk [vmem:[%s4189_s8 + $0x16c] sm:$0xf] %vm3042_vm3, %v2909_v45  ;;  %v2406_v54 = vmax.f32 %v2182_v50, 0.0  ;;  %v2462_v55 = vmax.f32 %v2238_v51, 0.0 }
 0x1bb   : > { %v2741_v56 = vmin.f32 %v2517_v52, 6.0  ;;  %v2797_v57 = vmin.f32 %v2573_v53, 6.0 }
 0x1bc   : > { %v2630_v58 = vmin.f32 %v2406_v54, 6.0  ;;  %v2686_v59 = vmin.f32 %v2462_v55, 6.0  ;;  %v1724_v60 = vpop.f32.mrf.mxu2  ;;  %v1864_v61 = vpop.f32.mrf.mxu3 }
 0x1bd   : > { %v2965_v62 = vpack.c.bf16 %v2741_v56, %v2741_v56  ;;  %v3021_v63 = vpack.c.bf16 %v2797_v57, %v2797_v57  ;;  %v2066_v0 = vmul.f32 %v4845_v19, %v1724_v60  ;;  %v2122_v1 = vmul.f32 %v4845_v19, %v1864_v61  ;;  %v1446_v2 = vpop.f32.mrf.mxu0  ;;  %v1586_v3 = vpop.f32.mrf.mxu1 }
 0x1be   : > { %v2854_v4 = vpack.c.bf16 %v2630_v58, %v2630_v58  ;;  %v2910_v5 = vpack.c.bf16 %v2686_v59, %v2686_v59  ;;  %v1955_v7 = vmul.f32 %v4845_v19, %v1446_v2  ;;  %v2011_v8 = vmul.f32 %v4845_v19, %v1586_v3 }
 0x1bf   : > { %3190 = vst.msk [vmem:[%s4189_s8 + $0x24c] sm:$0xf] %vm3042_vm3, %v2965_v62  ;;  %v2294_v37 = vadd.f32 %v4830_v6, %v2066_v0  ;;  %v2350_v9 = vadd.f32 %v4830_v6, %v2122_v1 }
 0x1c0   : > { %3246 = vst.msk [vmem:[%s4189_s8 + $0x32c] sm:$0xf] %vm3042_vm3, %v3021_v63  ;;  %v2183_v24 = vadd.f32 %v4830_v6, %v1955_v7  ;;  %v2239_v10 = vadd.f32 %v4830_v6, %v2011_v8 }
 0x1c1   : > { %3079 = vst.msk [vmem:[%s4189_s8 + $0x90] sm:$0xf] %vm3042_vm3, %v2854_v4  ;;  %v2518_v11 = vmax.f32 %v2294_v37, 0.0  ;;  %v2574_v12 = vmax.f32 %v2350_v9, 0.0 }
 0x1c2   : > { %3135 = vst.msk [vmem:[%s4189_s8 + $0x170] sm:$0xf] %vm3042_vm3, %v2910_v5  ;;  %v2407_v13 = vmax.f32 %v2183_v24, 0.0  ;;  %v2463_v14 = vmax.f32 %v2239_v10, 0.0 }
 0x1c3   : > { %v2742_v15 = vmin.f32 %v2518_v11, 6.0  ;;  %v2798_v16 = vmin.f32 %v2574_v12, 6.0 }
 0x1c4   : > { %v2631_v17 = vmin.f32 %v2407_v13, 6.0  ;;  %v2687_v18 = vmin.f32 %v2463_v14, 6.0  ;;  %v1726_v20 = vpop.f32.mrf.mxu2  ;;  %v1866_v21 = vpop.f32.mrf.mxu3 }
 0x1c5   : > { %v2966_v25 = vpack.c.bf16 %v2742_v15, %v2742_v15  ;;  %v3022_v26 = vpack.c.bf16 %v2798_v16, %v2798_v16  ;;  %v2067_v40 = vmul.f32 %v4845_v19, %v1726_v20  ;;  %v2123_v27 = vmul.f32 %v4845_v19, %v1866_v21  ;;  %v1449_v41 = vpop.f32.mrf.mxu0  ;;  %v1589_v28 = vpop.f32.mrf.mxu1 }
 0x1c6   : > { %v2855_v31 = vpack.c.bf16 %v2631_v17, %v2631_v17  ;;  %v2911_v32 = vpack.c.bf16 %v2687_v18, %v2687_v18  ;;  %v1956_v33 = vmul.f32 %v4845_v19, %v1449_v41  ;;  %v2012_v34 = vmul.f32 %v4845_v19, %v1589_v28 }
 0x1c7   : > { %3191 = vst.msk [vmem:[%s4189_s8 + $0x250] sm:$0xf] %vm3042_vm3, %v2966_v25  ;;  %v2295_v35 = vadd.f32 %v4830_v6, %v2067_v40  ;;  %v2351_v36 = vadd.f32 %v4830_v6, %v2123_v27 }
 0x1c8   : > { %3247 = vst.msk [vmem:[%s4189_s8 + $0x330] sm:$0xf] %vm3042_vm3, %v3022_v26  ;;  %v2184_v38 = vadd.f32 %v4830_v6, %v1956_v33  ;;  %v2240_v39 = vadd.f32 %v4830_v6, %v2012_v34  ;;  %3813 = vmatmul.msk.bf16.gmra.mxu0 %vm1001_vm2, %v3927_v22  ;;  %3841 = vmatmul.msk.bf16.gmra.mxu1 %vm1001_vm2, %v3955_v23 }
 0x1c9   : > { %3080 = vst.msk [vmem:[%s4189_s8 + $0x94] sm:$0xf] %vm3042_vm3, %v2855_v31  ;;  %v2519_v42 = vmax.f32 %v2295_v35, 0.0  ;;  %v2575_v43 = vmax.f32 %v2351_v36, 0.0  ;;  %3869 = vmatmul.msk.bf16.gmra.mxu2 %vm1001_vm2, %v3983_v29  ;;  %3897 = vmatmul.msk.bf16.gmra.mxu3 %vm1001_vm2, %v4011_v30 }
 0x1ca   : > { %3136 = vst.msk [vmem:[%s4189_s8 + $0x174] sm:$0xf] %vm3042_vm3, %v2911_v32  ;;  %v2408_v44 = vmax.f32 %v2184_v38, 0.0  ;;  %v2464_v45 = vmax.f32 %v2240_v39, 0.0 }
 0x1cb   : > { %v2743_v46 = vmin.f32 %v2519_v42, 6.0  ;;  %v2799_v47 = vmin.f32 %v2575_v43, 6.0 }
 0x1cc   : > { %v2632_v48 = vmin.f32 %v2408_v44, 6.0  ;;  %v2688_v49 = vmin.f32 %v2464_v45, 6.0  ;;  %v1729_v50 = vpop.f32.mrf.mxu2  ;;  %v1869_v51 = vpop.f32.mrf.mxu3 }
 0x1cd   : > { %v2967_v52 = vpack.c.bf16 %v2743_v46, %v2743_v46  ;;  %v3023_v53 = vpack.c.bf16 %v2799_v47, %v2799_v47  ;;  %v2068_v54 = vmul.f32 %v4845_v19, %v1729_v50  ;;  %v2124_v55 = vmul.f32 %v4845_v19, %v1869_v51  ;;  %v1451_v56 = vpop.f32.mrf.mxu0  ;;  %v1591_v57 = vpop.f32.mrf.mxu1 }
 0x1ce   : > { %v2856_v58 = vpack.c.bf16 %v2632_v48, %v2632_v48  ;;  %v2912_v59 = vpack.c.bf16 %v2688_v49, %v2688_v49  ;;  %v1957_v60 = vmul.f32 %v4845_v19, %v1451_v56  ;;  %v2013_v61 = vmul.f32 %v4845_v19, %v1591_v57 }
 0x1cf   : > { %3192 = vst.msk [vmem:[%s4189_s8 + $0x254] sm:$0xf] %vm3042_vm3, %v2967_v52  ;;  %v2296_v62 = vadd.f32 %v4830_v6, %v2068_v54  ;;  %v2352_v63 = vadd.f32 %v4830_v6, %v2124_v55 }
 0x1d0   : > { %3248 = vst.msk [vmem:[%s4189_s8 + $0x334] sm:$0xf] %vm3042_vm3, %v3023_v53  ;;  %v2185_v0 = vadd.f32 %v4830_v6, %v1957_v60  ;;  %v2241_v1 = vadd.f32 %v4830_v6, %v2013_v61 }
 0x1d1   : > { %3081 = vst.msk [vmem:[%s4189_s8 + $0x98] sm:$0xf] %vm3042_vm3, %v2856_v58  ;;  %v2520_v2 = vmax.f32 %v2296_v62, 0.0  ;;  %v2576_v3 = vmax.f32 %v2352_v63, 0.0 }
 0x1d2   : > { %3137 = vst.msk [vmem:[%s4189_s8 + $0x178] sm:$0xf] %vm3042_vm3, %v2912_v59  ;;  %v2409_v4 = vmax.f32 %v2185_v0, 0.0  ;;  %v2465_v5 = vmax.f32 %v2241_v1, 0.0 }
 0x1d3   : > { %v2744_v7 = vmin.f32 %v2520_v2, 6.0  ;;  %v2800_v8 = vmin.f32 %v2576_v3, 6.0 }
 0x1d4   : > { %v2633_v37 = vmin.f32 %v2409_v4, 6.0  ;;  %v2689_v9 = vmin.f32 %v2465_v5, 6.0  ;;  %v1731_v24 = vpop.f32.mrf.mxu2  ;;  %v1871_v10 = vpop.f32.mrf.mxu3 }
 0x1d5   : > { %v2968_v11 = vpack.c.bf16 %v2744_v7, %v2744_v7  ;;  %v3024_v12 = vpack.c.bf16 %v2800_v8, %v2800_v8  ;;  %v2069_v13 = vmul.f32 %v4845_v19, %v1731_v24  ;;  %v2125_v14 = vmul.f32 %v4845_v19, %v1871_v10  ;;  %v1454_v15 = vpop.f32.mrf.mxu0  ;;  %v1594_v16 = vpop.f32.mrf.mxu1 }
 0x1d6   : > { %v2857_v17 = vpack.c.bf16 %v2633_v37, %v2633_v37  ;;  %v2913_v18 = vpack.c.bf16 %v2689_v9, %v2689_v9  ;;  %v1958_v20 = vmul.f32 %v4845_v19, %v1454_v15  ;;  %v2014_v21 = vmul.f32 %v4845_v19, %v1594_v16 }
 0x1d7   : > { %3193 = vst.msk [vmem:[%s4189_s8 + $0x258] sm:$0xf] %vm3042_vm3, %v2968_v11  ;;  %v2297_v22 = vadd.f32 %v4830_v6, %v2069_v13  ;;  %v2353_v23 = vadd.f32 %v4830_v6, %v2125_v14 }
 0x1d8   : > { %3249 = vst.msk [vmem:[%s4189_s8 + $0x338] sm:$0xf] %vm3042_vm3, %v3024_v12  ;;  %v2186_v25 = vadd.f32 %v4830_v6, %v1958_v20  ;;  %v2242_v26 = vadd.f32 %v4830_v6, %v2014_v21 }
 0x1d9   : > { %3082 = vst.msk [vmem:[%s4189_s8 + $0x9c] sm:$0xf] %vm3042_vm3, %v2857_v17  ;;  %v2521_v40 = vmax.f32 %v2297_v22, 0.0  ;;  %v2577_v27 = vmax.f32 %v2353_v23, 0.0 }
 0x1da   : > { %3138 = vst.msk [vmem:[%s4189_s8 + $0x17c] sm:$0xf] %vm3042_vm3, %v2913_v18  ;;  %v2410_v41 = vmax.f32 %v2186_v25, 0.0  ;;  %v2466_v28 = vmax.f32 %v2242_v26, 0.0 }
 0x1db   : > { %v2745_v29 = vmin.f32 %v2521_v40, 6.0  ;;  %v2801_v30 = vmin.f32 %v2577_v27, 6.0 }
 0x1dc   : > { %v2634_v31 = vmin.f32 %v2410_v41, 6.0  ;;  %v2690_v32 = vmin.f32 %v2466_v28, 6.0  ;;  %v1734_v33 = vpop.f32.mrf.mxu2  ;;  %v1874_v34 = vpop.f32.mrf.mxu3 }
 0x1dd   : > { %v2969_v35 = vpack.c.bf16 %v2745_v29, %v2745_v29  ;;  %v3025_v36 = vpack.c.bf16 %v2801_v30, %v2801_v30  ;;  %v2070_v38 = vmul.f32 %v4845_v19, %v1734_v33  ;;  %v2126_v39 = vmul.f32 %v4845_v19, %v1874_v34  ;;  %v1456_v42 = vpop.f32.mrf.mxu0  ;;  %v1596_v43 = vpop.f32.mrf.mxu1 }
 0x1de   : > { %v2858_v44 = vpack.c.bf16 %v2634_v31, %v2634_v31  ;;  %v2914_v45 = vpack.c.bf16 %v2690_v32, %v2690_v32  ;;  %v1959_v46 = vmul.f32 %v4845_v19, %v1456_v42  ;;  %v2015_v47 = vmul.f32 %v4845_v19, %v1596_v43 }
 0x1df   : > { %3194 = vst.msk [vmem:[%s4189_s8 + $0x25c] sm:$0xf] %vm3042_vm3, %v2969_v35  ;;  %v2298_v48 = vadd.f32 %v4830_v6, %v2070_v38  ;;  %v2354_v49 = vadd.f32 %v4830_v6, %v2126_v39 }
 0x1e0   : > { %3250 = vst.msk [vmem:[%s4189_s8 + $0x33c] sm:$0xf] %vm3042_vm3, %v3025_v36  ;;  %v2187_v50 = vadd.f32 %v4830_v6, %v1959_v46  ;;  %v2243_v51 = vadd.f32 %v4830_v6, %v2015_v47 }
 0x1e1   : > { %3083 = vst.msk [vmem:[%s4189_s8 + $0xa0] sm:$0xf] %vm3042_vm3, %v2858_v44  ;;  %v2522_v52 = vmax.f32 %v2298_v48, 0.0  ;;  %v2578_v53 = vmax.f32 %v2354_v49, 0.0 }
 0x1e2   : > { %3139 = vst.msk [vmem:[%s4189_s8 + $0x180] sm:$0xf] %vm3042_vm3, %v2914_v45  ;;  %v2411_v54 = vmax.f32 %v2187_v50, 0.0  ;;  %v2467_v55 = vmax.f32 %v2243_v51, 0.0 }
 0x1e3   : > { %v2746_v56 = vmin.f32 %v2522_v52, 6.0  ;;  %v2802_v57 = vmin.f32 %v2578_v53, 6.0 }
 0x1e4   : > { %v2635_v58 = vmin.f32 %v2411_v54, 6.0  ;;  %v2691_v59 = vmin.f32 %v2467_v55, 6.0  ;;  %v1736_v60 = vpop.f32.mrf.mxu2  ;;  %v1876_v61 = vpop.f32.mrf.mxu3 }
 0x1e5   : > { %v2970_v62 = vpack.c.bf16 %v2746_v56, %v2746_v56  ;;  %v3026_v63 = vpack.c.bf16 %v2802_v57, %v2802_v57  ;;  %v2071_v0 = vmul.f32 %v4845_v19, %v1736_v60  ;;  %v2127_v1 = vmul.f32 %v4845_v19, %v1876_v61  ;;  %v1459_v2 = vpop.f32.mrf.mxu0  ;;  %v1599_v3 = vpop.f32.mrf.mxu1 }
 0x1e6   : > { %v2859_v4 = vpack.c.bf16 %v2635_v58, %v2635_v58  ;;  %v2915_v5 = vpack.c.bf16 %v2691_v59, %v2691_v59  ;;  %v1960_v7 = vmul.f32 %v4845_v19, %v1459_v2  ;;  %v2016_v8 = vmul.f32 %v4845_v19, %v1599_v3 }
 0x1e7   : > { %3195 = vst.msk [vmem:[%s4189_s8 + $0x260] sm:$0xf] %vm3042_vm3, %v2970_v62  ;;  %v2299_v37 = vadd.f32 %v4830_v6, %v2071_v0  ;;  %v2355_v9 = vadd.f32 %v4830_v6, %v2127_v1 }
 0x1e8   : > { %3251 = vst.msk [vmem:[%s4189_s8 + $0x340] sm:$0xf] %vm3042_vm3, %v3026_v63  ;;  %v2188_v24 = vadd.f32 %v4830_v6, %v1960_v7  ;;  %v2244_v10 = vadd.f32 %v4830_v6, %v2016_v8 }
 0x1e9   : > { %3084 = vst.msk [vmem:[%s4189_s8 + $0xa4] sm:$0xf] %vm3042_vm3, %v2859_v4  ;;  %v2523_v11 = vmax.f32 %v2299_v37, 0.0  ;;  %v2579_v12 = vmax.f32 %v2355_v9, 0.0 }
 0x1ea   : > { %3140 = vst.msk [vmem:[%s4189_s8 + $0x184] sm:$0xf] %vm3042_vm3, %v2915_v5  ;;  %v2412_v13 = vmax.f32 %v2188_v24, 0.0  ;;  %v2468_v14 = vmax.f32 %v2244_v10, 0.0 }
 0x1eb   : > { %v2747_v15 = vmin.f32 %v2523_v11, 6.0  ;;  %v2803_v16 = vmin.f32 %v2579_v12, 6.0 }
 0x1ec   : > { %v2636_v17 = vmin.f32 %v2412_v13, 6.0  ;;  %v2692_v18 = vmin.f32 %v2468_v14, 6.0  ;;  %v1739_v20 = vpop.f32.mrf.mxu2  ;;  %v1879_v21 = vpop.f32.mrf.mxu3 }
 0x1ed   : > { %v2971_v22 = vpack.c.bf16 %v2747_v15, %v2747_v15  ;;  %v3027_v23 = vpack.c.bf16 %v2803_v16, %v2803_v16  ;;  %v2072_v25 = vmul.f32 %v4845_v19, %v1739_v20  ;;  %v2128_v26 = vmul.f32 %v4845_v19, %v1879_v21  ;;  %v1461_v40 = vpop.f32.mrf.mxu0  ;;  %v1601_v27 = vpop.f32.mrf.mxu1 }
 0x1ee   : > { %v2860_v41 = vpack.c.bf16 %v2636_v17, %v2636_v17  ;;  %v2916_v28 = vpack.c.bf16 %v2692_v18, %v2692_v18  ;;  %v1961_v29 = vmul.f32 %v4845_v19, %v1461_v40  ;;  %v2017_v30 = vmul.f32 %v4845_v19, %v1601_v27 }
 0x1ef   : > { %3196 = vst.msk [vmem:[%s4189_s8 + $0x264] sm:$0xf] %vm3042_vm3, %v2971_v22  ;;  %v2300_v31 = vadd.f32 %v4830_v6, %v2072_v25  ;;  %v2356_v32 = vadd.f32 %v4830_v6, %v2128_v26 }
 0x1f0   : > { %3252 = vst.msk [vmem:[%s4189_s8 + $0x344] sm:$0xf] %vm3042_vm3, %v3027_v23  ;;  %v2189_v33 = vadd.f32 %v4830_v6, %v1961_v29  ;;  %v2245_v34 = vadd.f32 %v4830_v6, %v2017_v30 }
 0x1f1   : > { %3085 = vst.msk [vmem:[%s4189_s8 + $0xa8] sm:$0xf] %vm3042_vm3, %v2860_v41  ;;  %v2524_v35 = vmax.f32 %v2300_v31, 0.0  ;;  %v2580_v36 = vmax.f32 %v2356_v32, 0.0 }
 0x1f2   : > { %3141 = vst.msk [vmem:[%s4189_s8 + $0x188] sm:$0xf] %vm3042_vm3, %v2916_v28  ;;  %v2413_v38 = vmax.f32 %v2189_v33, 0.0  ;;  %v2469_v39 = vmax.f32 %v2245_v34, 0.0 }
 0x1f3   : > { %v2748_v42 = vmin.f32 %v2524_v35, 6.0  ;;  %v2804_v43 = vmin.f32 %v2580_v36, 6.0 }
 0x1f4   : > { %v2637_v44 = vmin.f32 %v2413_v38, 6.0  ;;  %v2693_v45 = vmin.f32 %v2469_v39, 6.0  ;;  %v1741_v46 = vpop.f32.mrf.mxu2  ;;  %v1881_v47 = vpop.f32.mrf.mxu3 }
 0x1f5   : > { %v2972_v48 = vpack.c.bf16 %v2748_v42, %v2748_v42  ;;  %v3028_v49 = vpack.c.bf16 %v2804_v43, %v2804_v43  ;;  %v2073_v50 = vmul.f32 %v4845_v19, %v1741_v46  ;;  %v2129_v51 = vmul.f32 %v4845_v19, %v1881_v47  ;;  %v1464_v52 = vpop.f32.mrf.mxu0  ;;  %v1604_v53 = vpop.f32.mrf.mxu1 }
 0x1f6   : > { %v2861_v54 = vpack.c.bf16 %v2637_v44, %v2637_v44  ;;  %v2917_v55 = vpack.c.bf16 %v2693_v45, %v2693_v45  ;;  %v1962_v56 = vmul.f32 %v4845_v19, %v1464_v52  ;;  %v2018_v57 = vmul.f32 %v4845_v19, %v1604_v53 }
 0x1f7   : > { %3197 = vst.msk [vmem:[%s4189_s8 + $0x268] sm:$0xf] %vm3042_vm3, %v2972_v48  ;;  %v2301_v58 = vadd.f32 %v4830_v6, %v2073_v50  ;;  %v2357_v59 = vadd.f32 %v4830_v6, %v2129_v51 }
 0x1f8   : > { %3253 = vst.msk [vmem:[%s4189_s8 + $0x348] sm:$0xf] %vm3042_vm3, %v3028_v49  ;;  %v2190_v60 = vadd.f32 %v4830_v6, %v1962_v56  ;;  %v2246_v61 = vadd.f32 %v4830_v6, %v2018_v57 }
 0x1f9   : > { %3086 = vst.msk [vmem:[%s4189_s8 + $0xac] sm:$0xf] %vm3042_vm3, %v2861_v54  ;;  %v2525_v62 = vmax.f32 %v2301_v58, 0.0  ;;  %v2581_v63 = vmax.f32 %v2357_v59, 0.0 }
 0x1fa   : > { %3142 = vst.msk [vmem:[%s4189_s8 + $0x18c] sm:$0xf] %vm3042_vm3, %v2917_v55  ;;  %v2414_v0 = vmax.f32 %v2190_v60, 0.0  ;;  %v2470_v1 = vmax.f32 %v2246_v61, 0.0 }
 0x1fb   : > { %v2749_v2 = vmin.f32 %v2525_v62, 6.0  ;;  %v2805_v3 = vmin.f32 %v2581_v63, 6.0 }
 0x1fc   : > { %v2638_v4 = vmin.f32 %v2414_v0, 6.0  ;;  %v2694_v5 = vmin.f32 %v2470_v1, 6.0  ;;  %v1744_v7 = vpop.f32.mrf.mxu2  ;;  %v1884_v8 = vpop.f32.mrf.mxu3 }
 0x1fd   : > { %v2973_v37 = vpack.c.bf16 %v2749_v2, %v2749_v2  ;;  %v3029_v9 = vpack.c.bf16 %v2805_v3, %v2805_v3  ;;  %v2074_v24 = vmul.f32 %v4845_v19, %v1744_v7  ;;  %v2130_v10 = vmul.f32 %v4845_v19, %v1884_v8  ;;  %v1466_v11 = vpop.f32.mrf.mxu0  ;;  %v1606_v12 = vpop.f32.mrf.mxu1 }
 0x1fe   : > { %v2862_v13 = vpack.c.bf16 %v2638_v4, %v2638_v4  ;;  %v2918_v14 = vpack.c.bf16 %v2694_v5, %v2694_v5  ;;  %v1963_v15 = vmul.f32 %v4845_v19, %v1466_v11  ;;  %v2019_v16 = vmul.f32 %v4845_v19, %v1606_v12 }
 0x1ff   : > { %3198 = vst.msk [vmem:[%s4189_s8 + $0x26c] sm:$0xf] %vm3042_vm3, %v2973_v37  ;;  %v2302_v17 = vadd.f32 %v4830_v6, %v2074_v24  ;;  %v2358_v18 = vadd.f32 %v4830_v6, %v2130_v10 }
 0x200   : > { %3254 = vst.msk [vmem:[%s4189_s8 + $0x34c] sm:$0xf] %vm3042_vm3, %v3029_v9  ;;  %v2191_v20 = vadd.f32 %v4830_v6, %v1963_v15  ;;  %v2247_v21 = vadd.f32 %v4830_v6, %v2019_v16 }
 0x201   : > { %3087 = vst.msk [vmem:[%s4189_s8 + $0xb0] sm:$0xf] %vm3042_vm3, %v2862_v13  ;;  %v2526_v22 = vmax.f32 %v2302_v17, 0.0  ;;  %v2582_v23 = vmax.f32 %v2358_v18, 0.0 }
 0x202   : > { %3143 = vst.msk [vmem:[%s4189_s8 + $0x190] sm:$0xf] %vm3042_vm3, %v2918_v14  ;;  %v2415_v25 = vmax.f32 %v2191_v20, 0.0  ;;  %v2471_v26 = vmax.f32 %v2247_v21, 0.0 }
 0x203   : > { %v2750_v40 = vmin.f32 %v2526_v22, 6.0  ;;  %v2806_v27 = vmin.f32 %v2582_v23, 6.0 }
 0x204   : > { %v2639_v41 = vmin.f32 %v2415_v25, 6.0  ;;  %v2695_v28 = vmin.f32 %v2471_v26, 6.0  ;;  %v1746_v29 = vpop.f32.mrf.mxu2  ;;  %v1886_v30 = vpop.f32.mrf.mxu3 }
 0x205   : > { %v2974_v31 = vpack.c.bf16 %v2750_v40, %v2750_v40  ;;  %v3030_v32 = vpack.c.bf16 %v2806_v27, %v2806_v27  ;;  %v2075_v33 = vmul.f32 %v4845_v19, %v1746_v29  ;;  %v2131_v34 = vmul.f32 %v4845_v19, %v1886_v30  ;;  %v1469_v35 = vpop.f32.mrf.mxu0  ;;  %v1609_v36 = vpop.f32.mrf.mxu1 }
 0x206   : > { %v2863_v38 = vpack.c.bf16 %v2639_v41, %v2639_v41  ;;  %v2919_v39 = vpack.c.bf16 %v2695_v28, %v2695_v28  ;;  %v1964_v42 = vmul.f32 %v4845_v19, %v1469_v35  ;;  %v2020_v43 = vmul.f32 %v4845_v19, %v1609_v36 }
 0x207   : > { %3199 = vst.msk [vmem:[%s4189_s8 + $0x270] sm:$0xf] %vm3042_vm3, %v2974_v31  ;;  %v2303_v44 = vadd.f32 %v4830_v6, %v2075_v33  ;;  %v2359_v45 = vadd.f32 %v4830_v6, %v2131_v34 }
 0x208   : > { %3255 = vst.msk [vmem:[%s4189_s8 + $0x350] sm:$0xf] %vm3042_vm3, %v3030_v32  ;;  %v2192_v46 = vadd.f32 %v4830_v6, %v1964_v42  ;;  %v2248_v47 = vadd.f32 %v4830_v6, %v2020_v43 }
 0x209   : > { %3088 = vst.msk [vmem:[%s4189_s8 + $0xb4] sm:$0xf] %vm3042_vm3, %v2863_v38  ;;  %v2527_v48 = vmax.f32 %v2303_v44, 0.0  ;;  %v2583_v49 = vmax.f32 %v2359_v45, 0.0 }
 0x20a   : > { %3144 = vst.msk [vmem:[%s4189_s8 + $0x194] sm:$0xf] %vm3042_vm3, %v2919_v39  ;;  %v2416_v50 = vmax.f32 %v2192_v46, 0.0  ;;  %v2472_v51 = vmax.f32 %v2248_v47, 0.0 }
 0x20b   : > { %v2751_v52 = vmin.f32 %v2527_v48, 6.0  ;;  %v2807_v53 = vmin.f32 %v2583_v49, 6.0 }
 0x20c   : > { %v2640_v54 = vmin.f32 %v2416_v50, 6.0  ;;  %v2696_v55 = vmin.f32 %v2472_v51, 6.0  ;;  %v1749_v56 = vpop.f32.mrf.mxu2  ;;  %v1889_v57 = vpop.f32.mrf.mxu3 }
 0x20d   : > { %v2975_v58 = vpack.c.bf16 %v2751_v52, %v2751_v52  ;;  %v3031_v59 = vpack.c.bf16 %v2807_v53, %v2807_v53  ;;  %v2076_v60 = vmul.f32 %v4845_v19, %v1749_v56  ;;  %v2132_v61 = vmul.f32 %v4845_v19, %v1889_v57  ;;  %v1471_v62 = vpop.f32.mrf.mxu0  ;;  %v1611_v63 = vpop.f32.mrf.mxu1 }
 0x20e   : > { %v2864_v0 = vpack.c.bf16 %v2640_v54, %v2640_v54  ;;  %v2920_v1 = vpack.c.bf16 %v2696_v55, %v2696_v55  ;;  %v1965_v2 = vmul.f32 %v4845_v19, %v1471_v62  ;;  %v2021_v3 = vmul.f32 %v4845_v19, %v1611_v63 }
 0x20f   : > { %3200 = vst.msk [vmem:[%s4189_s8 + $0x274] sm:$0xf] %vm3042_vm3, %v2975_v58  ;;  %v2304_v4 = vadd.f32 %v4830_v6, %v2076_v60  ;;  %v2360_v5 = vadd.f32 %v4830_v6, %v2132_v61 }
 0x210   : > { %3256 = vst.msk [vmem:[%s4189_s8 + $0x354] sm:$0xf] %vm3042_vm3, %v3031_v59  ;;  %v2193_v7 = vadd.f32 %v4830_v6, %v1965_v2  ;;  %v2249_v8 = vadd.f32 %v4830_v6, %v2021_v3 }
 0x211   : > { %3089 = vst.msk [vmem:[%s4189_s8 + $0xb8] sm:$0xf] %vm3042_vm3, %v2864_v0  ;;  %v2528_v37 = vmax.f32 %v2304_v4, 0.0  ;;  %v2584_v9 = vmax.f32 %v2360_v5, 0.0 }
 0x212   : > { %3145 = vst.msk [vmem:[%s4189_s8 + $0x198] sm:$0xf] %vm3042_vm3, %v2920_v1  ;;  %v2417_v24 = vmax.f32 %v2193_v7, 0.0  ;;  %v2473_v10 = vmax.f32 %v2249_v8, 0.0 }
 0x213   : > { %v2752_v11 = vmin.f32 %v2528_v37, 6.0  ;;  %v2808_v12 = vmin.f32 %v2584_v9, 6.0 }
 0x214   : > { %v2641_v13 = vmin.f32 %v2417_v24, 6.0  ;;  %v2697_v14 = vmin.f32 %v2473_v10, 6.0  ;;  %v1751_v15 = vpop.f32.mrf.mxu2  ;;  %v1891_v16 = vpop.f32.mrf.mxu3 }
 0x215   : > { %v2976_v17 = vpack.c.bf16 %v2752_v11, %v2752_v11  ;;  %v3032_v18 = vpack.c.bf16 %v2808_v12, %v2808_v12  ;;  %v2077_v20 = vmul.f32 %v4845_v19, %v1751_v15  ;;  %v2133_v21 = vmul.f32 %v4845_v19, %v1891_v16  ;;  %v1474_v22 = vpop.f32.mrf.mxu0  ;;  %v1614_v23 = vpop.f32.mrf.mxu1  ;;  %v5152_v12 = vld [vmem:[%s5271_s3] ss:$0 sm:$0xff] }
 0x216   : > { %v2865_v25 = vpack.c.bf16 %v2641_v13, %v2641_v13  ;;  %v2921_v26 = vpack.c.bf16 %v2697_v14, %v2697_v14  ;;  %v1966_v40 = vmul.f32 %v4845_v19, %v1474_v22  ;;  %v2022_v27 = vmul.f32 %v4845_v19, %v1614_v23 }
 0x217   : > { %3201 = vst.msk [vmem:[%s4189_s8 + $0x278] sm:$0xf] %vm3042_vm3, %v2976_v17  ;;  %v2305_v41 = vadd.f32 %v4830_v6, %v2077_v20  ;;  %v2361_v28 = vadd.f32 %v4830_v6, %v2133_v21 }
 0x218   : > { %3257 = vst.msk [vmem:[%s4189_s8 + $0x358] sm:$0xf] %vm3042_vm3, %v3032_v18  ;;  %v2194_v29 = vadd.f32 %v4830_v6, %v1966_v40  ;;  %v2250_v30 = vadd.f32 %v4830_v6, %v2022_v27 }
 0x219   : > { %3090 = vst.msk [vmem:[%s4189_s8 + $0xbc] sm:$0xf] %vm3042_vm3, %v2865_v25  ;;  %v2529_v31 = vmax.f32 %v2305_v41, 0.0  ;;  %v2585_v32 = vmax.f32 %v2361_v28, 0.0  ;;  %v5167_v28 = vld [vmem:[%s5270_s2] ss:$0 sm:$0xff] }
 0x21a   : > { %3146 = vst.msk [vmem:[%s4189_s8 + $0x19c] sm:$0xf] %vm3042_vm3, %v2921_v26  ;;  %v2418_v33 = vmax.f32 %v2194_v29, 0.0  ;;  %v2474_v34 = vmax.f32 %v2250_v30, 0.0 }
 0x21b   : > { %v2753_v35 = vmin.f32 %v2529_v31, 6.0  ;;  %v2809_v36 = vmin.f32 %v2585_v32, 6.0 }
 0x21c   : > { %v2642_v38 = vmin.f32 %v2418_v33, 6.0  ;;  %v2698_v39 = vmin.f32 %v2474_v34, 6.0  ;;  %v1754_v42 = vpop.f32.mrf.mxu2  ;;  %v1894_v43 = vpop.f32.mrf.mxu3 }
 0x21d   : > { %v2977_v44 = vpack.c.bf16 %v2753_v35, %v2753_v35  ;;  %v3033_v45 = vpack.c.bf16 %v2809_v36, %v2809_v36  ;;  %v2078_v46 = vmul.f32 %v4845_v19, %v1754_v42  ;;  %v2134_v47 = vmul.f32 %v4845_v19, %v1894_v43  ;;  %v1476_v48 = vpop.f32.mrf.mxu0  ;;  %v1616_v49 = vpop.f32.mrf.mxu1 }
 0x21e   : > { %v2866_v50 = vpack.c.bf16 %v2642_v38, %v2642_v38  ;;  %v2922_v51 = vpack.c.bf16 %v2698_v39, %v2698_v39  ;;  %v1967_v52 = vmul.f32 %v4845_v19, %v1476_v48  ;;  %v2023_v53 = vmul.f32 %v4845_v19, %v1616_v49 }
 0x21f   : > { %3202 = vst.msk [vmem:[%s4189_s8 + $0x27c] sm:$0xf] %vm3042_vm3, %v2977_v44  ;;  %v2306_v54 = vadd.f32 %v4830_v6, %v2078_v46  ;;  %v2362_v55 = vadd.f32 %v4830_v6, %v2134_v47 }
 0x220   : > { %3258 = vst.msk [vmem:[%s4189_s8 + $0x35c] sm:$0xf] %vm3042_vm3, %v3033_v45  ;;  %v2195_v56 = vadd.f32 %v4830_v6, %v1967_v52  ;;  %v2251_v57 = vadd.f32 %v4830_v6, %v2023_v53 }
 0x221   : > { %3091 = vst.msk [vmem:[%s4189_s8 + $0xc0] sm:$0xf] %vm3042_vm3, %v2866_v50  ;;  %v2530_v58 = vmax.f32 %v2306_v54, 0.0  ;;  %v2586_v59 = vmax.f32 %v2362_v55, 0.0 }
 0x222   : > { %3147 = vst.msk [vmem:[%s4189_s8 + $0x1a0] sm:$0xf] %vm3042_vm3, %v2922_v51  ;;  %v2419_v60 = vmax.f32 %v2195_v56, 0.0  ;;  %v2475_v61 = vmax.f32 %v2251_v57, 0.0 }
 0x223   : > { %v2754_v62 = vmin.f32 %v2530_v58, 6.0  ;;  %v2810_v63 = vmin.f32 %v2586_v59, 6.0 }
 0x224   : > { %v2643_v0 = vmin.f32 %v2419_v60, 6.0  ;;  %v2699_v1 = vmin.f32 %v2475_v61, 6.0  ;;  %v1756_v2 = vpop.f32.mrf.mxu2  ;;  %v1896_v3 = vpop.f32.mrf.mxu3 }
 0x225   : > { %v2978_v4 = vpack.c.bf16 %v2754_v62, %v2754_v62  ;;  %v3034_v5 = vpack.c.bf16 %v2810_v63, %v2810_v63  ;;  %v2079_v6 = vmul.f32 %v4845_v19, %v1756_v2  ;;  %v2135_v7 = vmul.f32 %v4845_v19, %v1896_v3  ;;  %v1479_v8 = vpop.f32.mrf.mxu0  ;;  %v1619_v37 = vpop.f32.mrf.mxu1 }
 0x226   : > { %v2867_v9 = vpack.c.bf16 %v2643_v0, %v2643_v0  ;;  %v2923_v24 = vpack.c.bf16 %v2699_v1, %v2699_v1  ;;  %v1968_v10 = vmul.f32 %v4845_v19, %v1479_v8  ;;  %v2024_v11 = vmul.f32 %v4845_v19, %v1619_v37 }
 0x227   : > { %3203 = vst.msk [vmem:[%s4189_s8 + $0x280] sm:$0xf] %vm3042_vm3, %v2978_v4  ;;  %v2307_v13 = vadd.f32 %v5152_v12, %v2079_v6  ;;  %v2363_v14 = vadd.f32 %v5152_v12, %v2135_v7 }
 0x228   : > { %3259 = vst.msk [vmem:[%s4189_s8 + $0x360] sm:$0xf] %vm3042_vm3, %v3034_v5  ;;  %v2196_v15 = vadd.f32 %v5152_v12, %v1968_v10  ;;  %v2252_v16 = vadd.f32 %v5152_v12, %v2024_v11 }
 0x229   : > { %3092 = vst.msk [vmem:[%s4189_s8 + $0xc4] sm:$0xf] %vm3042_vm3, %v2867_v9  ;;  %v2531_v19 = vmax.f32 %v2307_v13, 0.0  ;;  %v2587_v17 = vmax.f32 %v2363_v14, 0.0 }
 0x22a   : > { %3148 = vst.msk [vmem:[%s4189_s8 + $0x1a4] sm:$0xf] %vm3042_vm3, %v2923_v24  ;;  %v2420_v18 = vmax.f32 %v2196_v15, 0.0  ;;  %v2476_v20 = vmax.f32 %v2252_v16, 0.0 }
 0x22b   : > { %v2755_v21 = vmin.f32 %v2531_v19, 6.0  ;;  %v2811_v22 = vmin.f32 %v2587_v17, 6.0 }
 0x22c   : > { %v2644_v23 = vmin.f32 %v2420_v18, 6.0  ;;  %v2700_v25 = vmin.f32 %v2476_v20, 6.0  ;;  %v1759_v26 = vpop.f32.mrf.mxu2  ;;  %v1899_v40 = vpop.f32.mrf.mxu3 }
 0x22d   : > { %v2979_v27 = vpack.c.bf16 %v2755_v21, %v2755_v21  ;;  %v3035_v41 = vpack.c.bf16 %v2811_v22, %v2811_v22  ;;  %v2080_v29 = vmul.f32 %v5167_v28, %v1759_v26  ;;  %v2136_v30 = vmul.f32 %v5167_v28, %v1899_v40  ;;  %v1481_v31 = vpop.f32.mrf.mxu0  ;;  %v1621_v32 = vpop.f32.mrf.mxu1 }
 0x22e   : > { %v2868_v33 = vpack.c.bf16 %v2644_v23, %v2644_v23  ;;  %v2924_v34 = vpack.c.bf16 %v2700_v25, %v2700_v25  ;;  %v1969_v35 = vmul.f32 %v5167_v28, %v1481_v31  ;;  %v2025_v36 = vmul.f32 %v5167_v28, %v1621_v32 }
 0x22f   : > { %3204 = vst.msk [vmem:[%s4189_s8 + $0x284] sm:$0xf] %vm3042_vm3, %v2979_v27  ;;  %v2308_v38 = vadd.f32 %v5152_v12, %v2080_v29  ;;  %v2364_v39 = vadd.f32 %v5152_v12, %v2136_v30 }
 0x230   : > { %3260 = vst.msk [vmem:[%s4189_s8 + $0x364] sm:$0xf] %vm3042_vm3, %v3035_v41  ;;  %v2197_v42 = vadd.f32 %v5152_v12, %v1969_v35  ;;  %v2253_v43 = vadd.f32 %v5152_v12, %v2025_v36 }
 0x231   : > { %3093 = vst.msk [vmem:[%s4189_s8 + $0xc8] sm:$0xf] %vm3042_vm3, %v2868_v33  ;;  %v2532_v44 = vmax.f32 %v2308_v38, 0.0  ;;  %v2588_v45 = vmax.f32 %v2364_v39, 0.0 }
 0x232   : > { %3149 = vst.msk [vmem:[%s4189_s8 + $0x1a8] sm:$0xf] %vm3042_vm3, %v2924_v34  ;;  %v2421_v46 = vmax.f32 %v2197_v42, 0.0  ;;  %v2477_v47 = vmax.f32 %v2253_v43, 0.0 }
 0x233   : > { %v2756_v48 = vmin.f32 %v2532_v44, 6.0  ;;  %v2812_v49 = vmin.f32 %v2588_v45, 6.0 }
 0x234   : > { %v2645_v50 = vmin.f32 %v2421_v46, 6.0  ;;  %v2701_v51 = vmin.f32 %v2477_v47, 6.0  ;;  %v1761_v52 = vpop.f32.mrf.mxu2  ;;  %v1901_v53 = vpop.f32.mrf.mxu3 }
 0x235   : > { %v2980_v54 = vpack.c.bf16 %v2756_v48, %v2756_v48  ;;  %v3036_v55 = vpack.c.bf16 %v2812_v49, %v2812_v49  ;;  %v2081_v56 = vmul.f32 %v5167_v28, %v1761_v52  ;;  %v2137_v57 = vmul.f32 %v5167_v28, %v1901_v53  ;;  %v1484_v58 = vpop.f32.mrf.mxu0  ;;  %v1624_v59 = vpop.f32.mrf.mxu1 }
 0x236   : > { %v2869_v60 = vpack.c.bf16 %v2645_v50, %v2645_v50  ;;  %v2925_v61 = vpack.c.bf16 %v2701_v51, %v2701_v51  ;;  %v1970_v62 = vmul.f32 %v5167_v28, %v1484_v58  ;;  %v2026_v63 = vmul.f32 %v5167_v28, %v1624_v59 }
 0x237   : > { %3205 = vst.msk [vmem:[%s4189_s8 + $0x288] sm:$0xf] %vm3042_vm3, %v2980_v54  ;;  %v2309_v0 = vadd.f32 %v5152_v12, %v2081_v56  ;;  %v2365_v1 = vadd.f32 %v5152_v12, %v2137_v57 }
 0x238   : > { %3261 = vst.msk [vmem:[%s4189_s8 + $0x368] sm:$0xf] %vm3042_vm3, %v3036_v55  ;;  %v2198_v2 = vadd.f32 %v5152_v12, %v1970_v62  ;;  %v2254_v3 = vadd.f32 %v5152_v12, %v2026_v63 }
 0x239   : > { %3094 = vst.msk [vmem:[%s4189_s8 + $0xcc] sm:$0xf] %vm3042_vm3, %v2869_v60  ;;  %v2533_v4 = vmax.f32 %v2309_v0, 0.0  ;;  %v2589_v5 = vmax.f32 %v2365_v1, 0.0 }
 0x23a   : > { %3150 = vst.msk [vmem:[%s4189_s8 + $0x1ac] sm:$0xf] %vm3042_vm3, %v2925_v61  ;;  %v2422_v6 = vmax.f32 %v2198_v2, 0.0  ;;  %v2478_v7 = vmax.f32 %v2254_v3, 0.0 }
 0x23b   : > { %v2757_v8 = vmin.f32 %v2533_v4, 6.0  ;;  %v2813_v37 = vmin.f32 %v2589_v5, 6.0 }
 0x23c   : > { %v2646_v9 = vmin.f32 %v2422_v6, 6.0  ;;  %v2702_v24 = vmin.f32 %v2478_v7, 6.0  ;;  %v1764_v10 = vpop.f32.mrf.mxu2  ;;  %v1904_v11 = vpop.f32.mrf.mxu3 }
 0x23d   : > { %v2981_v13 = vpack.c.bf16 %v2757_v8, %v2757_v8  ;;  %v3037_v14 = vpack.c.bf16 %v2813_v37, %v2813_v37  ;;  %v2082_v15 = vmul.f32 %v5167_v28, %v1764_v10  ;;  %v2138_v16 = vmul.f32 %v5167_v28, %v1904_v11  ;;  %v1486_v19 = vpop.f32.mrf.mxu0  ;;  %v1626_v17 = vpop.f32.mrf.mxu1 }
 0x23e   : > { %v2870_v18 = vpack.c.bf16 %v2646_v9, %v2646_v9  ;;  %v2926_v20 = vpack.c.bf16 %v2702_v24, %v2702_v24  ;;  %v1971_v21 = vmul.f32 %v5167_v28, %v1486_v19  ;;  %v2027_v22 = vmul.f32 %v5167_v28, %v1626_v17 }
 0x23f   : > { %3206 = vst.msk [vmem:[%s4189_s8 + $0x28c] sm:$0xf] %vm3042_vm3, %v2981_v13  ;;  %v2310_v23 = vadd.f32 %v5152_v12, %v2082_v15  ;;  %v2366_v25 = vadd.f32 %v5152_v12, %v2138_v16 }
 0x240   : > { %3262 = vst.msk [vmem:[%s4189_s8 + $0x36c] sm:$0xf] %vm3042_vm3, %v3037_v14  ;;  %v2199_v26 = vadd.f32 %v5152_v12, %v1971_v21  ;;  %v2255_v40 = vadd.f32 %v5152_v12, %v2027_v22 }
 0x241   : > { %3095 = vst.msk [vmem:[%s4189_s8 + $0xd0] sm:$0xf] %vm3042_vm3, %v2870_v18  ;;  %v2534_v27 = vmax.f32 %v2310_v23, 0.0  ;;  %v2590_v41 = vmax.f32 %v2366_v25, 0.0 }
 0x242   : > { %3151 = vst.msk [vmem:[%s4189_s8 + $0x1b0] sm:$0xf] %vm3042_vm3, %v2926_v20  ;;  %v2423_v29 = vmax.f32 %v2199_v26, 0.0  ;;  %v2479_v30 = vmax.f32 %v2255_v40, 0.0 }
 0x243   : > { %v2758_v31 = vmin.f32 %v2534_v27, 6.0  ;;  %v2814_v32 = vmin.f32 %v2590_v41, 6.0 }
 0x244   : > { %v2647_v33 = vmin.f32 %v2423_v29, 6.0  ;;  %v2703_v34 = vmin.f32 %v2479_v30, 6.0  ;;  %v1766_v35 = vpop.f32.mrf.mxu2  ;;  %v1906_v36 = vpop.f32.mrf.mxu3 }
 0x245   : > { %v2982_v38 = vpack.c.bf16 %v2758_v31, %v2758_v31  ;;  %v3038_v39 = vpack.c.bf16 %v2814_v32, %v2814_v32  ;;  %v2083_v42 = vmul.f32 %v5167_v28, %v1766_v35  ;;  %v2139_v43 = vmul.f32 %v5167_v28, %v1906_v36  ;;  %v1489_v44 = vpop.f32.mrf.mxu0  ;;  %v1629_v45 = vpop.f32.mrf.mxu1 }
 0x246   : > { %v2871_v46 = vpack.c.bf16 %v2647_v33, %v2647_v33  ;;  %v2927_v47 = vpack.c.bf16 %v2703_v34, %v2703_v34  ;;  %v1972_v48 = vmul.f32 %v5167_v28, %v1489_v44  ;;  %v2028_v49 = vmul.f32 %v5167_v28, %v1629_v45 }
 0x247   : > { %3207 = vst.msk [vmem:[%s4189_s8 + $0x290] sm:$0xf] %vm3042_vm3, %v2982_v38  ;;  %v2311_v50 = vadd.f32 %v5152_v12, %v2083_v42  ;;  %v2367_v51 = vadd.f32 %v5152_v12, %v2139_v43 }
 0x248   : > { %3263 = vst.msk [vmem:[%s4189_s8 + $0x370] sm:$0xf] %vm3042_vm3, %v3038_v39  ;;  %v2200_v52 = vadd.f32 %v5152_v12, %v1972_v48  ;;  %v2256_v53 = vadd.f32 %v5152_v12, %v2028_v49 }
 0x249   : > { %3096 = vst.msk [vmem:[%s4189_s8 + $0xd4] sm:$0xf] %vm3042_vm3, %v2871_v46  ;;  %v2535_v54 = vmax.f32 %v2311_v50, 0.0  ;;  %v2591_v55 = vmax.f32 %v2367_v51, 0.0 }
 0x24a   : > { %3152 = vst.msk [vmem:[%s4189_s8 + $0x1b4] sm:$0xf] %vm3042_vm3, %v2927_v47  ;;  %v2424_v56 = vmax.f32 %v2200_v52, 0.0  ;;  %v2480_v57 = vmax.f32 %v2256_v53, 0.0 }
 0x24b   : > { %v2759_v58 = vmin.f32 %v2535_v54, 6.0  ;;  %v2815_v59 = vmin.f32 %v2591_v55, 6.0 }
 0x24c   : > { %v2648_v60 = vmin.f32 %v2424_v56, 6.0  ;;  %v2704_v61 = vmin.f32 %v2480_v57, 6.0  ;;  %v1769_v62 = vpop.f32.mrf.mxu2  ;;  %v1909_v63 = vpop.f32.mrf.mxu3 }
 0x24d   : > { %v2983_v0 = vpack.c.bf16 %v2759_v58, %v2759_v58  ;;  %v3039_v1 = vpack.c.bf16 %v2815_v59, %v2815_v59  ;;  %v2084_v2 = vmul.f32 %v5167_v28, %v1769_v62  ;;  %v2140_v3 = vmul.f32 %v5167_v28, %v1909_v63  ;;  %v1491_v4 = vpop.f32.mrf.mxu0  ;;  %v1631_v5 = vpop.f32.mrf.mxu1 }
 0x24e   : > { %v2872_v6 = vpack.c.bf16 %v2648_v60, %v2648_v60  ;;  %v2928_v7 = vpack.c.bf16 %v2704_v61, %v2704_v61  ;;  %v1973_v8 = vmul.f32 %v5167_v28, %v1491_v4  ;;  %v2029_v37 = vmul.f32 %v5167_v28, %v1631_v5 }
 0x24f   : > { %3208 = vst.msk [vmem:[%s4189_s8 + $0x294] sm:$0xf] %vm3042_vm3, %v2983_v0  ;;  %v2312_v9 = vadd.f32 %v5152_v12, %v2084_v2  ;;  %v2368_v24 = vadd.f32 %v5152_v12, %v2140_v3 }
 0x250   : > { %3264 = vst.msk [vmem:[%s4189_s8 + $0x374] sm:$0xf] %vm3042_vm3, %v3039_v1  ;;  %v2201_v10 = vadd.f32 %v5152_v12, %v1973_v8  ;;  %v2257_v11 = vadd.f32 %v5152_v12, %v2029_v37 }
 0x251   : > { %3097 = vst.msk [vmem:[%s4189_s8 + $0xd8] sm:$0xf] %vm3042_vm3, %v2872_v6  ;;  %v2536_v13 = vmax.f32 %v2312_v9, 0.0  ;;  %v2592_v14 = vmax.f32 %v2368_v24, 0.0 }
 0x252   : > { %3153 = vst.msk [vmem:[%s4189_s8 + $0x1b8] sm:$0xf] %vm3042_vm3, %v2928_v7  ;;  %v2425_v15 = vmax.f32 %v2201_v10, 0.0  ;;  %v2481_v16 = vmax.f32 %v2257_v11, 0.0 }
 0x253   : > { %v2760_v19 = vmin.f32 %v2536_v13, 6.0  ;;  %v2816_v17 = vmin.f32 %v2592_v14, 6.0 }
 0x254   : > { %v2649_v18 = vmin.f32 %v2425_v15, 6.0  ;;  %v2705_v20 = vmin.f32 %v2481_v16, 6.0  ;;  %v1771_v21 = vpop.f32.mrf.mxu2  ;;  %v1911_v22 = vpop.f32.mrf.mxu3 }
 0x255   : > { %v2984_v23 = vpack.c.bf16 %v2760_v19, %v2760_v19  ;;  %v3040_v25 = vpack.c.bf16 %v2816_v17, %v2816_v17  ;;  %v2085_v26 = vmul.f32 %v5167_v28, %v1771_v21  ;;  %v2141_v40 = vmul.f32 %v5167_v28, %v1911_v22 }
 0x256   : > { %v2873_v27 = vpack.c.bf16 %v2649_v18, %v2649_v18  ;;  %v2929_v41 = vpack.c.bf16 %v2705_v20, %v2705_v20 }
 0x257   : > { %3209 = vst.msk [vmem:[%s4189_s8 + $0x298] sm:$0xf] %vm3042_vm3, %v2984_v23  ;;  %v2313_v29 = vadd.f32 %v5152_v12, %v2085_v26  ;;  %v2369_v30 = vadd.f32 %v5152_v12, %v2141_v40 }
 0x258   : > { %3265 = vst.msk [vmem:[%s4189_s8 + $0x378] sm:$0xf] %vm3042_vm3, %v3040_v25 }
 0x259   : > { %3098 = vst.msk [vmem:[%s4189_s8 + $0xdc] sm:$0xf] %vm3042_vm3, %v2873_v27  ;;  %v2537_v31 = vmax.f32 %v2313_v29, 0.0  ;;  %v2593_v32 = vmax.f32 %v2369_v30, 0.0 }
 0x25a   : > { %3154 = vst.msk [vmem:[%s4189_s8 + $0x1bc] sm:$0xf] %vm3042_vm3, %v2929_v41 }
 0x25b   : > { %v2761_v33 = vmin.f32 %v2537_v31, 6.0  ;;  %v2817_v34 = vmin.f32 %v2593_v32, 6.0 }
 0x25d   : > { %v2985_v28 = vpack.c.bf16 %v2761_v33, %v2761_v33  ;;  %v3041_v35 = vpack.c.bf16 %v2817_v34, %v2817_v34 }
 0x25f   : > { %3210 = vst.msk [vmem:[%s4189_s8 + $0x29c] sm:$0xf] %vm3042_vm3, %v2985_v28 }
 0x260   : > { %3266 = vst.msk [vmem:[%s4189_s8 + $0x37c] sm:$0xf] %vm3042_vm3, %v3041_v35 }
 0x261 PF: > { %s14_s15 = sadd.s32 1, %s4043_s15  }
 0x262   : > { %p11_p4 = scmp.ge.s32.totalorder %s14_s15, 16  }
 0x264   :  { %13 = sbr.rel (!%p11_p4) target bundleno = 1 (0x1), region = 66 }

</bundles_post_ra>
